<compile_context>
chip_gen: v7x
topology: tpu7x:2x2x1
jax: 0.10.0
libtpu: 0.0.40
codegen_flags: <defaults>
</compile_context>

<pallas_src>
import functools

import jax
import jax.numpy as jnp
import numpy as np
from jax.experimental import pallas as pl
from jax.experimental.pallas import tpu as pltpu

BT = 8  # images per grid step (rows per step = BT * 32 = 256)


# ------------------------------ Pallas kernel -------------------------------

def _lenet_kernel(x_ref, w1_ref, w2_ref, wf1_ref, wf2_ref, wf3_ref, b_ref,
                  o_ref, p1_ref, p2_ref, flat_ref, *, bt):
    f32 = jnp.float32
    R = bt * 32          # rows in this batch tile: r = b*32 + h
    M1 = R - 4           # conv1 output rows (valid h = 0..27 per image)
    M2 = R - 13          # conv2 output rows (valid r = b*32 + 2*h2, h2 = 0..9)

    # ---- conv1 (1->6, k=5): 5 shifted-window matmuls; bias/ReLU/pool fused ----
    y1 = jnp.zeros((M1, 256), f32)
    for kh in range(5):
        y1 = y1 + jnp.dot(x_ref[pl.ds(kh, M1), :],
                          w1_ref[pl.ds(kh * 32, 32), :],
                          preferred_element_type=f32)
    # horizontal 2x2-pool candidates live in lane blocks [0:128] / [128:256]
    z1 = jnp.maximum(y1[:, 0:128], y1[:, 128:256]) + b_ref[0:1, :]
    a1 = jnp.maximum(z1, 0.0)                        # [M1, 128]; col = c1*14 + wp
    p1 = jnp.maximum(a1[0:M1 - 1, :], a1[1:M1, :])   # vertical pool (rows h, h+1)
    p1_ref[pl.ds(0, M1 - 1), :] = p1                 # valid at rows b*32 + 2*hp

    # ---- conv2 (6->16, k=5): same scheme, input rows stride 2 ----
    y2 = jnp.zeros((M2, 256), f32)
    for kh in range(5):
        y2 = y2 + jnp.dot(p1_ref[pl.ds(2 * kh, M2), :],
                          w2_ref[pl.ds(kh * 128, 128), :],
                          preferred_element_type=f32)
    z2 = jnp.maximum(y2[:, 0:128], y2[:, 128:256]) + b_ref[1:2, :]
    a2 = jnp.maximum(z2, 0.0)                        # [M2, 128]; col = c2*5 + w2p
    p2 = jnp.maximum(a2[0:M2 - 2, :], a2[2:M2, :])   # vertical pool (rows h2, h2+1)
    p2_ref[pl.ds(0, M2 - 2), :] = p2                 # valid at rows b*32 + 4*hp2

    # ---- flatten: per image gather its 5 pooled rows into [1, 640] ----
    for b in range(bt):
        for hp in range(5):
            flat_ref[pl.ds(b, 1), pl.ds(hp * 128, 128)] = \
                p2_ref[pl.ds(b * 32 + 4 * hp, 1), :]
    flat = flat_ref[...]                             # [bt, 640]

    # ---- fc1 + ReLU, fc2 + ReLU, fc3 (all N padded to 128 lanes) ----
    h1 = jnp.maximum(
        jnp.dot(flat, wf1_ref[...], preferred_element_type=f32) + b_ref[2:3, :],
        0.0)
    h2 = jnp.maximum(
        jnp.dot(h1, wf2_ref[...], preferred_element_type=f32) + b_ref[3:4, :],
        0.0)
    o_ref[...] = (jnp.dot(h2, wf3_ref[...], preferred_element_type=f32)
                  + b_ref[4:5, :])


# -------------------- one-time host-side weight packing ---------------------

def pack_params(p):
    w1 = np.asarray(p["w1"], np.float32)    # [6, 1, 5, 5]
    b1 = np.asarray(p["b1"], np.float32)    # [6]
    w2 = np.asarray(p["w2"], np.float32)    # [16, 6, 5, 5]
    b2 = np.asarray(p["b2"], np.float32)    # [16]
    wf1 = np.asarray(p["wf1"], np.float32)  # [120, 400]
    bf1 = np.asarray(p["bf1"], np.float32)
    wf2 = np.asarray(p["wf2"], np.float32)  # [84, 120]
    bf2 = np.asarray(p["bf2"], np.float32)
    wf3 = np.asarray(p["wf3"], np.float32)  # [10, 84]
    bf3 = np.asarray(p["bf3"], np.float32)

    # conv1 banded matrix: rows = kh*32 + w_in, cols = dw*128 + c1*14 + wp.
    W1f = np.zeros((5 * 32, 256), np.float32)
    for c1 in range(6):
        for kh in range(5):
            for kw in range(5):
                for wp in range(14):
                    for dw in range(2):
                        W1f[kh * 32 + 2 * wp + dw + kw,
                            dw * 128 + c1 * 14 + wp] = w1[c1, 0, kh, kw]

    # conv2 banded matrix: rows = kh*128 + c1*14 + w_in, cols = dw*128 + c2*5 + w2p.
    W2f = np.zeros((5 * 128, 256), np.float32)
    for c2 in range(16):
        for c1 in range(6):
            for kh in range(5):
                for kw in range(5):
                    for w2p in range(5):
                        for dw in range(2):
                            W2f[kh * 128 + c1 * 14 + 2 * w2p + dw + kw,
                                dw * 128 + c2 * 5 + w2p] = w2[c2, c1, kh, kw]

    # fc1: rows follow the kernel's flatten order (hp*128 + c2*5 + w2p); the
    # matching PyTorch flatten column is c2*25 + hp*5 + w2p.  N padded 120->128.
    Wf1p = np.zeros((640, 128), np.float32)
    for hp in range(5):
        for c2 in range(16):
            for w2p in range(5):
                Wf1p[hp * 128 + c2 * 5 + w2p, :120] = wf1[:, c2 * 25 + hp * 5 + w2p]

    Wf2p = np.zeros((128, 128), np.float32)
    Wf2p[:120, :84] = wf2.T
    Wf3p = np.zeros((128, 128), np.float32)
    Wf3p[:84, :10] = wf3.T

    bias = np.zeros((5, 128), np.float32)
    for c1 in range(6):
        bias[0, c1 * 14:(c1 + 1) * 14] = b1[c1]
    for c2 in range(16):
        bias[1, c2 * 5:(c2 + 1) * 5] = b2[c2]
    bias[2, :120] = bf1
    bias[3, :84] = bf2
    bias[4, :10] = bf3

    return tuple(jnp.asarray(a) for a in (W1f, W2f, Wf1p, Wf2p, Wf3p, bias))


# ------------------------------- parameters ---------------------------------

def _uniform(key, shape, bound):
    return jax.random.uniform(key, shape, jnp.float32, -bound, bound)


def init_params(key):
    ks = jax.random.split(key, 10)

    def conv_init(kw_, kb_, cout, cin, k):
        bound = 1.0 / float(np.sqrt(cin * k * k))
        return _uniform(kw_, (cout, cin, k, k), bound), _uniform(kb_, (cout,), bound)

    def fc_init(kw_, kb_, nout, nin):
        bound = 1.0 / float(np.sqrt(nin))
        return _uniform(kw_, (nout, nin), bound), _uniform(kb_, (nout,), bound)

    w1, b1 = conv_init(ks[0], ks[1], 6, 1, 5)
    w2, b2 = conv_init(ks[2], ks[3], 16, 6, 5)
    wf1, bf1 = fc_init(ks[4], ks[5], 120, 16 * 5 * 5)
    wf2, bf2 = fc_init(ks[6], ks[7], 84, 120)
    wf3, bf3 = fc_init(ks[8], ks[9], 10, 84)
    return dict(w1=w1, b1=b1, w2=w2, b2=b2,
                wf1=wf1, bf1=bf1, wf2=wf2, bf2=bf2, wf3=wf3, bf3=bf3)


# --------------------------------- forward ----------------------------------

def net_forward(x, packed):
    """x: NCHW [B, 1, 32, 32] float32 -> logits [B, 10]."""
    W1f, W2f, Wf1p, Wf2p, Wf3p, bias = packed
    B = x.shape[0]
    Bp = ((B + BT - 1) // BT) * BT
    x = x.reshape(B, 32, 32).astype(jnp.float32)
    if Bp != B:
        x = jnp.concatenate([x, jnp.zeros((Bp - B, 32, 32), jnp.float32)], 0)
    x2d = x.reshape(Bp * 32, 32)

    out = pl.pallas_call(
        functools.partial(_lenet_kernel, bt=BT),
        out_shape=jax.ShapeDtypeStruct((Bp, 128), jnp.float32),
        grid_spec=pltpu.PrefetchScalarGridSpec(
            num_scalar_prefetch=0,
            grid=(Bp // BT,),
            in_specs=[
                pl.BlockSpec((BT * 32, 32), lambda i: (i, 0)),    # input rows
                pl.BlockSpec((5 * 32, 256), lambda i: (0, 0)),    # conv1 banded W
                pl.BlockSpec((5 * 128, 256), lambda i: (0, 0)),   # conv2 banded W
                pl.BlockSpec((640, 128), lambda i: (0, 0)),       # fc1 (permuted)
                pl.BlockSpec((128, 128), lambda i: (0, 0)),       # fc2
                pl.BlockSpec((128, 128), lambda i: (0, 0)),       # fc3
                pl.BlockSpec((5, 128), lambda i: (0, 0)),         # biases
            ],
            out_specs=pl.BlockSpec((BT, 128), lambda i: (i, 0)),
            scratch_shapes=[
                pltpu.VMEM((BT * 32, 128), jnp.float32),  # pooled conv1
                pltpu.VMEM((BT * 32, 128), jnp.float32),  # pooled conv2
                pltpu.VMEM((BT, 640), jnp.float32),       # flattened fc1 input
            ],
        ),
        compiler_params=pltpu.CompilerParams(
            dimension_semantics=("parallel",)),
    )(x2d, W1f, W2f, Wf1p, Wf2p, Wf3p, bias)
    return out[:B, :10]


# ------------------------- pure-JAX reference check -------------------------

def reference_forward(x, p):
    y = jax.lax.conv_general_dilated(
        x, p["w1"], (1, 1), "VALID",
        dimension_numbers=("NCHW", "OIHW", "NCHW"))
    y = jnp.maximum(y + p["b1"][None, :, None, None], 0.0)
    y = jax.lax.reduce_window(y, -jnp.inf, jax.lax.max,
                              (1, 1, 2, 2), (1, 1, 2, 2), "VALID")
    y = jax.lax.conv_general_dilated(
        y, p["w2"], (1, 1), "VALID",
        dimension_numbers=("NCHW", "OIHW", "NCHW"))
    y = jnp.maximum(y + p["b2"][None, :, None, None], 0.0)
    y = jax.lax.reduce_window(y, -jnp.inf, jax.lax.max,
                              (1, 1, 2, 2), (1, 1, 2, 2), "VALID")
    flat = y.reshape(x.shape[0], -1)
    h = jnp.maximum(flat @ p["wf1"].T + p["bf1"], 0.0)
    h = jnp.maximum(h @ p["wf2"].T + p["bf2"], 0.0)
    return h @ p["wf3"].T + p["bf3"]


# ----------------------------------- main ------------------------------------

if __name__ == "__main__":
    key = jax.random.PRNGKey(0)
    k_in, k_params = jax.random.split(key)

    # LeNet-5 requires 32x32 single-channel input so that conv/pool -> 16*5*5.
    x = jax.random.normal(k_in, (2, 1, 32, 32), dtype=jnp.float32)
    params = init_params(k_params)
    packed = pack_params(params)

    fwd = jax.jit(net_forward)
    logits = fwd(x, packed)
    jax.block_until_ready(logits)
    assert logits.shape == (2, 10), logits.shape

    ref = reference_forward(x, params)
    np.testing.assert_allclose(np.asarray(logits), np.asarray(ref),
                               atol=3e-2, rtol=3e-2)
    print("KERNEL_OK")
</pallas_src>

<mosaic_0001>
module attributes {stable_mosaic.version = 11 : i64} {
  func.func @_lenet_kernel(%arg0: i32, %arg1: memref<256x32xf32, #tpu.memory_space<vmem>>, %arg2: memref<160x256xf32, #tpu.memory_space<vmem>>, %arg3: memref<640x256xf32, #tpu.memory_space<vmem>>, %arg4: memref<640x128xf32, #tpu.memory_space<vmem>>, %arg5: memref<128x128xf32, #tpu.memory_space<vmem>>, %arg6: memref<128x128xf32, #tpu.memory_space<vmem>>, %arg7: memref<5x128xf32, #tpu.memory_space<vmem>>, %arg8: memref<8x128xf32, #tpu.memory_space<vmem>>, %arg9: memref<256x128xf32, #tpu.memory_space<vmem>>, %arg10: memref<256x128xf32, #tpu.memory_space<vmem>>, %arg11: memref<8x640xf32, #tpu.memory_space<vmem>>) attributes {dimension_semantics = [#tpu.dimension_semantics<parallel>], iteration_bounds = array<i64: 1>, scalar_prefetch = 0 : i64, scratch_operands = 3 : i64, tpu.core_type = #tpu.core_type<tc>, window_params = [{transform_indices = @transform_0, window_bounds = array<i64: 256, 32>}, {pipeline_mode = #tpu.pipeline_mode<synchronous>, transform_indices = @transform_1, window_bounds = array<i64: 160, 256>}, {pipeline_mode = #tpu.pipeline_mode<synchronous>, transform_indices = @transform_2, window_bounds = array<i64: 640, 256>}, {pipeline_mode = #tpu.pipeline_mode<synchronous>, transform_indices = @transform_3, window_bounds = array<i64: 640, 128>}, {pipeline_mode = #tpu.pipeline_mode<synchronous>, transform_indices = @transform_4, window_bounds = array<i64: 128, 128>}, {pipeline_mode = #tpu.pipeline_mode<synchronous>, transform_indices = @transform_5, window_bounds = array<i64: 128, 128>}, {pipeline_mode = #tpu.pipeline_mode<synchronous>, transform_indices = @transform_6, window_bounds = array<i64: 5, 128>}, {transform_indices = @transform_7, window_bounds = array<i64: 8, 128>}]} {
    %cst = arith.constant 0.000000e+00 : f32
    %0 = vector.broadcast %cst : f32 to vector<252x256xf32>
    %c0 = arith.constant 0 : index
    %c0_0 = arith.constant 0 : index
    %1 = vector.load %arg1[%c0, %c0_0] : memref<256x32xf32, #tpu.memory_space<vmem>>, vector<252x32xf32>
    %c0_1 = arith.constant 0 : index
    %c0_2 = arith.constant 0 : index
    %2 = vector.load %arg2[%c0_1, %c0_2] : memref<160x256xf32, #tpu.memory_space<vmem>>, vector<32x256xf32>
    %cst_3 = arith.constant dense<0.000000e+00> : vector<252x256xf32>
    %3 = tpu.matmul %1, %2, %cst_3 {dimension_numbers = #tpu.dot_dimension_numbers<[1], [0], [0], [1], [0, 0, 1, 1], [], []>} : vector<252x32xf32>, vector<32x256xf32>, vector<252x256xf32> -> vector<252x256xf32>
    %4 = arith.addf %0, %3 : vector<252x256xf32>
    %c1 = arith.constant 1 : index
    %c0_4 = arith.constant 0 : index
    %5 = vector.load %arg1[%c1, %c0_4] : memref<256x32xf32, #tpu.memory_space<vmem>>, vector<252x32xf32>
    %c32 = arith.constant 32 : index
    %c0_5 = arith.constant 0 : index
    %6 = vector.load %arg2[%c32, %c0_5] : memref<160x256xf32, #tpu.memory_space<vmem>>, vector<32x256xf32>
    %cst_6 = arith.constant dense<0.000000e+00> : vector<252x256xf32>
    %7 = tpu.matmul %5, %6, %cst_6 {dimension_numbers = #tpu.dot_dimension_numbers<[1], [0], [0], [1], [0, 0, 1, 1], [], []>} : vector<252x32xf32>, vector<32x256xf32>, vector<252x256xf32> -> vector<252x256xf32>
    %8 = arith.addf %4, %7 : vector<252x256xf32>
    %c2 = arith.constant 2 : index
    %c0_7 = arith.constant 0 : index
    %9 = vector.load %arg1[%c2, %c0_7] : memref<256x32xf32, #tpu.memory_space<vmem>>, vector<252x32xf32>
    %c64 = arith.constant 64 : index
    %c0_8 = arith.constant 0 : index
    %10 = vector.load %arg2[%c64, %c0_8] : memref<160x256xf32, #tpu.memory_space<vmem>>, vector<32x256xf32>
    %cst_9 = arith.constant dense<0.000000e+00> : vector<252x256xf32>
    %11 = tpu.matmul %9, %10, %cst_9 {dimension_numbers = #tpu.dot_dimension_numbers<[1], [0], [0], [1], [0, 0, 1, 1], [], []>} : vector<252x32xf32>, vector<32x256xf32>, vector<252x256xf32> -> vector<252x256xf32>
    %12 = arith.addf %8, %11 : vector<252x256xf32>
    %c3 = arith.constant 3 : index
    %c0_10 = arith.constant 0 : index
    %13 = vector.load %arg1[%c3, %c0_10] : memref<256x32xf32, #tpu.memory_space<vmem>>, vector<252x32xf32>
    %c96 = arith.constant 96 : index
    %c0_11 = arith.constant 0 : index
    %14 = vector.load %arg2[%c96, %c0_11] : memref<160x256xf32, #tpu.memory_space<vmem>>, vector<32x256xf32>
    %cst_12 = arith.constant dense<0.000000e+00> : vector<252x256xf32>
    %15 = tpu.matmul %13, %14, %cst_12 {dimension_numbers = #tpu.dot_dimension_numbers<[1], [0], [0], [1], [0, 0, 1, 1], [], []>} : vector<252x32xf32>, vector<32x256xf32>, vector<252x256xf32> -> vector<252x256xf32>
    %16 = arith.addf %12, %15 : vector<252x256xf32>
    %c4 = arith.constant 4 : index
    %c0_13 = arith.constant 0 : index
    %17 = vector.load %arg1[%c4, %c0_13] : memref<256x32xf32, #tpu.memory_space<vmem>>, vector<252x32xf32>
    %c128 = arith.constant 128 : index
    %c0_14 = arith.constant 0 : index
    %18 = vector.load %arg2[%c128, %c0_14] : memref<160x256xf32, #tpu.memory_space<vmem>>, vector<32x256xf32>
    %cst_15 = arith.constant dense<0.000000e+00> : vector<252x256xf32>
    %19 = tpu.matmul %17, %18, %cst_15 {dimension_numbers = #tpu.dot_dimension_numbers<[1], [0], [0], [1], [0, 0, 1, 1], [], []>} : vector<252x32xf32>, vector<32x256xf32>, vector<252x256xf32> -> vector<252x256xf32>
    %20 = arith.addf %16, %19 : vector<252x256xf32>
    %21 = vector.extract_strided_slice %20 {offsets = [0, 0], sizes = [252, 128], strides = [1, 1]} : vector<252x256xf32> to vector<252x128xf32>
    %22 = vector.extract_strided_slice %20 {offsets = [0, 128], sizes = [252, 128], strides = [1, 1]} : vector<252x256xf32> to vector<252x128xf32>
    %23 = arith.maximumf %21, %22 : vector<252x128xf32>
    %c0_16 = arith.constant 0 : index
    %c0_17 = arith.constant 0 : index
    %24 = vector.load %arg7[%c0_16, %c0_17] : memref<5x128xf32, #tpu.memory_space<vmem>>, vector<1x128xf32>
    %25 = vector.broadcast %24 : vector<1x128xf32> to vector<252x128xf32>
    %26 = arith.addf %23, %25 : vector<252x128xf32>
    %cst_18 = arith.constant 0.000000e+00 : f32
    %27 = vector.broadcast %cst_18 : f32 to vector<252x128xf32>
    %28 = arith.maximumf %26, %27 : vector<252x128xf32>
    %29 = vector.extract_strided_slice %28 {offsets = [0, 0], sizes = [251, 128], strides = [1, 1]} : vector<252x128xf32> to vector<251x128xf32>
    %30 = vector.extract_strided_slice %28 {offsets = [1, 0], sizes = [251, 128], strides = [1, 1]} : vector<252x128xf32> to vector<251x128xf32>
    %31 = arith.maximumf %29, %30 : vector<251x128xf32>
    %c0_19 = arith.constant 0 : index
    %c0_20 = arith.constant 0 : index
    %32 = vector.load %arg9[%c0_19, %c0_20] : memref<256x128xf32, #tpu.memory_space<vmem>>, vector<251x128xf32>
    tpu.vector_store %arg9[%c0_19, %c0_20], %31 {strides = array<i32>} : memref<256x128xf32, #tpu.memory_space<vmem>>, vector<251x128xf32>,
    %cst_21 = arith.constant 0.000000e+00 : f32
    %33 = vector.broadcast %cst_21 : f32 to vector<243x256xf32>
    %c0_22 = arith.constant 0 : index
    %c0_23 = arith.constant 0 : index
    %34 = vector.load %arg9[%c0_22, %c0_23] : memref<256x128xf32, #tpu.memory_space<vmem>>, vector<243x128xf32>
    %c0_24 = arith.constant 0 : index
    %c0_25 = arith.constant 0 : index
    %35 = vector.load %arg3[%c0_24, %c0_25] : memref<640x256xf32, #tpu.memory_space<vmem>>, vector<128x256xf32>
    %cst_26 = arith.constant dense<0.000000e+00> : vector<243x256xf32>
    %36 = tpu.matmul %34, %35, %cst_26 {dimension_numbers = #tpu.dot_dimension_numbers<[1], [0], [0], [1], [0, 0, 1, 1], [], []>} : vector<243x128xf32>, vector<128x256xf32>, vector<243x256xf32> -> vector<243x256xf32>
    %37 = arith.addf %33, %36 : vector<243x256xf32>
    %c2_27 = arith.constant 2 : index
    %c0_28 = arith.constant 0 : index
    %38 = vector.load %arg9[%c2_27, %c0_28] : memref<256x128xf32, #tpu.memory_space<vmem>>, vector<243x128xf32>
    %c128_29 = arith.constant 128 : index
    %c0_30 = arith.constant 0 : index
    %39 = vector.load %arg3[%c128_29, %c0_30] : memref<640x256xf32, #tpu.memory_space<vmem>>, vector<128x256xf32>
    %cst_31 = arith.constant dense<0.000000e+00> : vector<243x256xf32>
    %40 = tpu.matmul %38, %39, %cst_31 {dimension_numbers = #tpu.dot_dimension_numbers<[1], [0], [0], [1], [0, 0, 1, 1], [], []>} : vector<243x128xf32>, vector<128x256xf32>, vector<243x256xf32> -> vector<243x256xf32>
    %41 = arith.addf %37, %40 : vector<243x256xf32>
    %c4_32 = arith.constant 4 : index
    %c0_33 = arith.constant 0 : index
    %42 = vector.load %arg9[%c4_32, %c0_33] : memref<256x128xf32, #tpu.memory_space<vmem>>, vector<243x128xf32>
    %c256 = arith.constant 256 : index
    %c0_34 = arith.constant 0 : index
    %43 = vector.load %arg3[%c256, %c0_34] : memref<640x256xf32, #tpu.memory_space<vmem>>, vector<128x256xf32>
    %cst_35 = arith.constant dense<0.000000e+00> : vector<243x256xf32>
    %44 = tpu.matmul %42, %43, %cst_35 {dimension_numbers = #tpu.dot_dimension_numbers<[1], [0], [0], [1], [0, 0, 1, 1], [], []>} : vector<243x128xf32>, vector<128x256xf32>, vector<243x256xf32> -> vector<243x256xf32>
    %45 = arith.addf %41, %44 : vector<243x256xf32>
    %c6 = arith.constant 6 : index
    %c0_36 = arith.constant 0 : index
    %46 = vector.load %arg9[%c6, %c0_36] : memref<256x128xf32, #tpu.memory_space<vmem>>, vector<243x128xf32>
    %c384 = arith.constant 384 : index
    %c0_37 = arith.constant 0 : index
    %47 = vector.load %arg3[%c384, %c0_37] : memref<640x256xf32, #tpu.memory_space<vmem>>, vector<128x256xf32>
    %cst_38 = arith.constant dense<0.000000e+00> : vector<243x256xf32>
    %48 = tpu.matmul %46, %47, %cst_38 {dimension_numbers = #tpu.dot_dimension_numbers<[1], [0], [0], [1], [0, 0, 1, 1], [], []>} : vector<243x128xf32>, vector<128x256xf32>, vector<243x256xf32> -> vector<243x256xf32>
    %49 = arith.addf %45, %48 : vector<243x256xf32>
    %c8 = arith.constant 8 : index
    %c0_39 = arith.constant 0 : index
    %50 = vector.load %arg9[%c8, %c0_39] : memref<256x128xf32, #tpu.memory_space<vmem>>, vector<243x128xf32>
    %c512 = arith.constant 512 : index
    %c0_40 = arith.constant 0 : index
    %51 = vector.load %arg3[%c512, %c0_40] : memref<640x256xf32, #tpu.memory_space<vmem>>, vector<128x256xf32>
    %cst_41 = arith.constant dense<0.000000e+00> : vector<243x256xf32>
    %52 = tpu.matmul %50, %51, %cst_41 {dimension_numbers = #tpu.dot_dimension_numbers<[1], [0], [0], [1], [0, 0, 1, 1], [], []>} : vector<243x128xf32>, vector<128x256xf32>, vector<243x256xf32> -> vector<243x256xf32>
    %53 = arith.addf %49, %52 : vector<243x256xf32>
    %54 = vector.extract_strided_slice %53 {offsets = [0, 0], sizes = [243, 128], strides = [1, 1]} : vector<243x256xf32> to vector<243x128xf32>
    %55 = vector.extract_strided_slice %53 {offsets = [0, 128], sizes = [243, 128], strides = [1, 1]} : vector<243x256xf32> to vector<243x128xf32>
    %56 = arith.maximumf %54, %55 : vector<243x128xf32>
    %c1_42 = arith.constant 1 : index
    %c0_43 = arith.constant 0 : index
    %57 = vector.load %arg7[%c1_42, %c0_43] : memref<5x128xf32, #tpu.memory_space<vmem>>, vector<1x128xf32>
    %58 = vector.broadcast %57 : vector<1x128xf32> to vector<243x128xf32>
    %59 = arith.addf %56, %58 : vector<243x128xf32>
    %cst_44 = arith.constant 0.000000e+00 : f32
    %60 = vector.broadcast %cst_44 : f32 to vector<243x128xf32>
    %61 = arith.maximumf %59, %60 : vector<243x128xf32>
    %62 = vector.extract_strided_slice %61 {offsets = [0, 0], sizes = [241, 128], strides = [1, 1]} : vector<243x128xf32> to vector<241x128xf32>
    %63 = vector.extract_strided_slice %61 {offsets = [2, 0], sizes = [241, 128], strides = [1, 1]} : vector<243x128xf32> to vector<241x128xf32>
    %64 = arith.maximumf %62, %63 : vector<241x128xf32>
    %c0_45 = arith.constant 0 : index
    %c0_46 = arith.constant 0 : index
    %65 = vector.load %arg10[%c0_45, %c0_46] : memref<256x128xf32, #tpu.memory_space<vmem>>, vector<241x128xf32>
    tpu.vector_store %arg10[%c0_45, %c0_46], %64 {strides = array<i32>} : memref<256x128xf32, #tpu.memory_space<vmem>>, vector<241x128xf32>,
    %c0_47 = arith.constant 0 : index
    %c0_48 = arith.constant 0 : index
    %66 = vector.load %arg10[%c0_47, %c0_48] : memref<256x128xf32, #tpu.memory_space<vmem>>, vector<1x128xf32>
    %c0_49 = arith.constant 0 : index
    %c0_50 = arith.constant 0 : index
    %67 = vector.load %arg11[%c0_49, %c0_50] : memref<8x640xf32, #tpu.memory_space<vmem>>, vector<1x128xf32>
    tpu.vector_store %arg11[%c0_49, %c0_50], %66 {strides = array<i32>} : memref<8x640xf32, #tpu.memory_space<vmem>>, vector<1x128xf32>,
    %c4_51 = arith.constant 4 : index
    %c0_52 = arith.constant 0 : index
    %68 = vector.load %arg10[%c4_51, %c0_52] : memref<256x128xf32, #tpu.memory_space<vmem>>, vector<1x128xf32>
    %c0_53 = arith.constant 0 : index
    %c128_54 = arith.constant 128 : index
    %69 = vector.load %arg11[%c0_53, %c128_54] : memref<8x640xf32, #tpu.memory_space<vmem>>, vector<1x128xf32>
    tpu.vector_store %arg11[%c0_53, %c128_54], %68 {strides = array<i32>} : memref<8x640xf32, #tpu.memory_space<vmem>>, vector<1x128xf32>,
    %c8_55 = arith.constant 8 : index
    %c0_56 = arith.constant 0 : index
    %70 = vector.load %arg10[%c8_55, %c0_56] : memref<256x128xf32, #tpu.memory_space<vmem>>, vector<1x128xf32>
    %c0_57 = arith.constant 0 : index
    %c256_58 = arith.constant 256 : index
    %71 = vector.load %arg11[%c0_57, %c256_58] : memref<8x640xf32, #tpu.memory_space<vmem>>, vector<1x128xf32>
    tpu.vector_store %arg11[%c0_57, %c256_58], %70 {strides = array<i32>} : memref<8x640xf32, #tpu.memory_space<vmem>>, vector<1x128xf32>,
    %c12 = arith.constant 12 : index
    %c0_59 = arith.constant 0 : index
    %72 = vector.load %arg10[%c12, %c0_59] : memref<256x128xf32, #tpu.memory_space<vmem>>, vector<1x128xf32>
    %c0_60 = arith.constant 0 : index
    %c384_61 = arith.constant 384 : index
    %73 = vector.load %arg11[%c0_60, %c384_61] : memref<8x640xf32, #tpu.memory_space<vmem>>, vector<1x128xf32>
    tpu.vector_store %arg11[%c0_60, %c384_61], %72 {strides = array<i32>} : memref<8x640xf32, #tpu.memory_space<vmem>>, vector<1x128xf32>,
    %c16 = arith.constant 16 : index
    %c0_62 = arith.constant 0 : index
    %74 = vector.load %arg10[%c16, %c0_62] : memref<256x128xf32, #tpu.memory_space<vmem>>, vector<1x128xf32>
    %c0_63 = arith.constant 0 : index
    %c512_64 = arith.constant 512 : index
    %75 = vector.load %arg11[%c0_63, %c512_64] : memref<8x640xf32, #tpu.memory_space<vmem>>, vector<1x128xf32>
    tpu.vector_store %arg11[%c0_63, %c512_64], %74 {strides = array<i32>} : memref<8x640xf32, #tpu.memory_space<vmem>>, vector<1x128xf32>,
    %c32_65 = arith.constant 32 : index
    %c0_66 = arith.constant 0 : index
    %76 = vector.load %arg10[%c32_65, %c0_66] : memref<256x128xf32, #tpu.memory_space<vmem>>, vector<1x128xf32>
    %c1_67 = arith.constant 1 : index
    %c0_68 = arith.constant 0 : index
    %77 = vector.load %arg11[%c1_67, %c0_68] : memref<8x640xf32, #tpu.memory_space<vmem>>, vector<1x128xf32>
    tpu.vector_store %arg11[%c1_67, %c0_68], %76 {strides = array<i32>} : memref<8x640xf32, #tpu.memory_space<vmem>>, vector<1x128xf32>,
    %c36 = arith.constant 36 : index
    %c0_69 = arith.constant 0 : index
    %78 = vector.load %arg10[%c36, %c0_69] : memref<256x128xf32, #tpu.memory_space<vmem>>, vector<1x128xf32>
    %c1_70 = arith.constant 1 : index
    %c128_71 = arith.constant 128 : index
    %79 = vector.load %arg11[%c1_70, %c128_71] : memref<8x640xf32, #tpu.memory_space<vmem>>, vector<1x128xf32>
    tpu.vector_store %arg11[%c1_70, %c128_71], %78 {strides = array<i32>} : memref<8x640xf32, #tpu.memory_space<vmem>>, vector<1x128xf32>,
    %c40 = arith.constant 40 : index
    %c0_72 = arith.constant 0 : index
    %80 = vector.load %arg10[%c40, %c0_72] : memref<256x128xf32, #tpu.memory_space<vmem>>, vector<1x128xf32>
    %c1_73 = arith.constant 1 : index
    %c256_74 = arith.constant 256 : index
    %81 = vector.load %arg11[%c1_73, %c256_74] : memref<8x640xf32, #tpu.memory_space<vmem>>, vector<1x128xf32>
    tpu.vector_store %arg11[%c1_73, %c256_74], %80 {strides = array<i32>} : memref<8x640xf32, #tpu.memory_space<vmem>>, vector<1x128xf32>,
    %c44 = arith.constant 44 : index
    %c0_75 = arith.constant 0 : index
    %82 = vector.load %arg10[%c44, %c0_75] : memref<256x128xf32, #tpu.memory_space<vmem>>, vector<1x128xf32>
    %c1_76 = arith.constant 1 : index
    %c384_77 = arith.constant 384 : index
    %83 = vector.load %arg11[%c1_76, %c384_77] : memref<8x640xf32, #tpu.memory_space<vmem>>, vector<1x128xf32>
    tpu.vector_store %arg11[%c1_76, %c384_77], %82 {strides = array<i32>} : memref<8x640xf32, #tpu.memory_space<vmem>>, vector<1x128xf32>,
    %c48 = arith.constant 48 : index
    %c0_78 = arith.constant 0 : index
    %84 = vector.load %arg10[%c48, %c0_78] : memref<256x128xf32, #tpu.memory_space<vmem>>, vector<1x128xf32>
    %c1_79 = arith.constant 1 : index
    %c512_80 = arith.constant 512 : index
    %85 = vector.load %arg11[%c1_79, %c512_80] : memref<8x640xf32, #tpu.memory_space<vmem>>, vector<1x128xf32>
    tpu.vector_store %arg11[%c1_79, %c512_80], %84 {strides = array<i32>} : memref<8x640xf32, #tpu.memory_space<vmem>>, vector<1x128xf32>,
    %c64_81 = arith.constant 64 : index
    %c0_82 = arith.constant 0 : index
    %86 = vector.load %arg10[%c64_81, %c0_82] : memref<256x128xf32, #tpu.memory_space<vmem>>, vector<1x128xf32>
    %c2_83 = arith.constant 2 : index
    %c0_84 = arith.constant 0 : index
    %87 = vector.load %arg11[%c2_83, %c0_84] : memref<8x640xf32, #tpu.memory_space<vmem>>, vector<1x128xf32>
    tpu.vector_store %arg11[%c2_83, %c0_84], %86 {strides = array<i32>} : memref<8x640xf32, #tpu.memory_space<vmem>>, vector<1x128xf32>,
    %c68 = arith.constant 68 : index
    %c0_85 = arith.constant 0 : index
    %88 = vector.load %arg10[%c68, %c0_85] : memref<256x128xf32, #tpu.memory_space<vmem>>, vector<1x128xf32>
    %c2_86 = arith.constant 2 : index
    %c128_87 = arith.constant 128 : index
    %89 = vector.load %arg11[%c2_86, %c128_87] : memref<8x640xf32, #tpu.memory_space<vmem>>, vector<1x128xf32>
    tpu.vector_store %arg11[%c2_86, %c128_87], %88 {strides = array<i32>} : memref<8x640xf32, #tpu.memory_space<vmem>>, vector<1x128xf32>,
    %c72 = arith.constant 72 : index
    %c0_88 = arith.constant 0 : index
    %90 = vector.load %arg10[%c72, %c0_88] : memref<256x128xf32, #tpu.memory_space<vmem>>, vector<1x128xf32>
    %c2_89 = arith.constant 2 : index
    %c256_90 = arith.constant 256 : index
    %91 = vector.load %arg11[%c2_89, %c256_90] : memref<8x640xf32, #tpu.memory_space<vmem>>, vector<1x128xf32>
    tpu.vector_store %arg11[%c2_89, %c256_90], %90 {strides = array<i32>} : memref<8x640xf32, #tpu.memory_space<vmem>>, vector<1x128xf32>,
    %c76 = arith.constant 76 : index
    %c0_91 = arith.constant 0 : index
    %92 = vector.load %arg10[%c76, %c0_91] : memref<256x128xf32, #tpu.memory_space<vmem>>, vector<1x128xf32>
    %c2_92 = arith.constant 2 : index
    %c384_93 = arith.constant 384 : index
    %93 = vector.load %arg11[%c2_92, %c384_93] : memref<8x640xf32, #tpu.memory_space<vmem>>, vector<1x128xf32>
    tpu.vector_store %arg11[%c2_92, %c384_93], %92 {strides = array<i32>} : memref<8x640xf32, #tpu.memory_space<vmem>>, vector<1x128xf32>,
    %c80 = arith.constant 80 : index
    %c0_94 = arith.constant 0 : index
    %94 = vector.load %arg10[%c80, %c0_94] : memref<256x128xf32, #tpu.memory_space<vmem>>, vector<1x128xf32>
    %c2_95 = arith.constant 2 : index
    %c512_96 = arith.constant 512 : index
    %95 = vector.load %arg11[%c2_95, %c512_96] : memref<8x640xf32, #tpu.memory_space<vmem>>, vector<1x128xf32>
    tpu.vector_store %arg11[%c2_95, %c512_96], %94 {strides = array<i32>} : memref<8x640xf32, #tpu.memory_space<vmem>>, vector<1x128xf32>,
    %c96_97 = arith.constant 96 : index
    %c0_98 = arith.constant 0 : index
    %96 = vector.load %arg10[%c96_97, %c0_98] : memref<256x128xf32, #tpu.memory_space<vmem>>, vector<1x128xf32>
    %c3_99 = arith.constant 3 : index
    %c0_100 = arith.constant 0 : index
    %97 = vector.load %arg11[%c3_99, %c0_100] : memref<8x640xf32, #tpu.memory_space<vmem>>, vector<1x128xf32>
    tpu.vector_store %arg11[%c3_99, %c0_100], %96 {strides = array<i32>} : memref<8x640xf32, #tpu.memory_space<vmem>>, vector<1x128xf32>,
    %c100 = arith.constant 100 : index
    %c0_101 = arith.constant 0 : index
    %98 = vector.load %arg10[%c100, %c0_101] : memref<256x128xf32, #tpu.memory_space<vmem>>, vector<1x128xf32>
    %c3_102 = arith.constant 3 : index
    %c128_103 = arith.constant 128 : index
    %99 = vector.load %arg11[%c3_102, %c128_103] : memref<8x640xf32, #tpu.memory_space<vmem>>, vector<1x128xf32>
    tpu.vector_store %arg11[%c3_102, %c128_103], %98 {strides = array<i32>} : memref<8x640xf32, #tpu.memory_space<vmem>>, vector<1x128xf32>,
    %c104 = arith.constant 104 : index
    %c0_104 = arith.constant 0 : index
    %100 = vector.load %arg10[%c104, %c0_104] : memref<256x128xf32, #tpu.memory_space<vmem>>, vector<1x128xf32>
    %c3_105 = arith.constant 3 : index
    %c256_106 = arith.constant 256 : index
    %101 = vector.load %arg11[%c3_105, %c256_106] : memref<8x640xf32, #tpu.memory_space<vmem>>, vector<1x128xf32>
    tpu.vector_store %arg11[%c3_105, %c256_106], %100 {strides = array<i32>} : memref<8x640xf32, #tpu.memory_space<vmem>>, vector<1x128xf32>,
    %c108 = arith.constant 108 : index
    %c0_107 = arith.constant 0 : index
    %102 = vector.load %arg10[%c108, %c0_107] : memref<256x128xf32, #tpu.memory_space<vmem>>, vector<1x128xf32>
    %c3_108 = arith.constant 3 : index
    %c384_109 = arith.constant 384 : index
    %103 = vector.load %arg11[%c3_108, %c384_109] : memref<8x640xf32, #tpu.memory_space<vmem>>, vector<1x128xf32>
    tpu.vector_store %arg11[%c3_108, %c384_109], %102 {strides = array<i32>} : memref<8x640xf32, #tpu.memory_space<vmem>>, vector<1x128xf32>,
    %c112 = arith.constant 112 : index
    %c0_110 = arith.constant 0 : index
    %104 = vector.load %arg10[%c112, %c0_110] : memref<256x128xf32, #tpu.memory_space<vmem>>, vector<1x128xf32>
    %c3_111 = arith.constant 3 : index
    %c512_112 = arith.constant 512 : index
    %105 = vector.load %arg11[%c3_111, %c512_112] : memref<8x640xf32, #tpu.memory_space<vmem>>, vector<1x128xf32>
    tpu.vector_store %arg11[%c3_111, %c512_112], %104 {strides = array<i32>} : memref<8x640xf32, #tpu.memory_space<vmem>>, vector<1x128xf32>,
    %c128_113 = arith.constant 128 : index
    %c0_114 = arith.constant 0 : index
    %106 = vector.load %arg10[%c128_113, %c0_114] : memref<256x128xf32, #tpu.memory_space<vmem>>, vector<1x128xf32>
    %c4_115 = arith.constant 4 : index
    %c0_116 = arith.constant 0 : index
    %107 = vector.load %arg11[%c4_115, %c0_116] : memref<8x640xf32, #tpu.memory_space<vmem>>, vector<1x128xf32>
    tpu.vector_store %arg11[%c4_115, %c0_116], %106 {strides = array<i32>} : memref<8x640xf32, #tpu.memory_space<vmem>>, vector<1x128xf32>,
    %c132 = arith.constant 132 : index
    %c0_117 = arith.constant 0 : index
    %108 = vector.load %arg10[%c132, %c0_117] : memref<256x128xf32, #tpu.memory_space<vmem>>, vector<1x128xf32>
    %c4_118 = arith.constant 4 : index
    %c128_119 = arith.constant 128 : index
    %109 = vector.load %arg11[%c4_118, %c128_119] : memref<8x640xf32, #tpu.memory_space<vmem>>, vector<1x128xf32>
    tpu.vector_store %arg11[%c4_118, %c128_119], %108 {strides = array<i32>} : memref<8x640xf32, #tpu.memory_space<vmem>>, vector<1x128xf32>,
    %c136 = arith.constant 136 : index
    %c0_120 = arith.constant 0 : index
    %110 = vector.load %arg10[%c136, %c0_120] : memref<256x128xf32, #tpu.memory_space<vmem>>, vector<1x128xf32>
    %c4_121 = arith.constant 4 : index
    %c256_122 = arith.constant 256 : index
    %111 = vector.load %arg11[%c4_121, %c256_122] : memref<8x640xf32, #tpu.memory_space<vmem>>, vector<1x128xf32>
    tpu.vector_store %arg11[%c4_121, %c256_122], %110 {strides = array<i32>} : memref<8x640xf32, #tpu.memory_space<vmem>>, vector<1x128xf32>,
    %c140 = arith.constant 140 : index
    %c0_123 = arith.constant 0 : index
    %112 = vector.load %arg10[%c140, %c0_123] : memref<256x128xf32, #tpu.memory_space<vmem>>, vector<1x128xf32>
    %c4_124 = arith.constant 4 : index
    %c384_125 = arith.constant 384 : index
    %113 = vector.load %arg11[%c4_124, %c384_125] : memref<8x640xf32, #tpu.memory_space<vmem>>, vector<1x128xf32>
    tpu.vector_store %arg11[%c4_124, %c384_125], %112 {strides = array<i32>} : memref<8x640xf32, #tpu.memory_space<vmem>>, vector<1x128xf32>,
    %c144 = arith.constant 144 : index
    %c0_126 = arith.constant 0 : index
    %114 = vector.load %arg10[%c144, %c0_126] : memref<256x128xf32, #tpu.memory_space<vmem>>, vector<1x128xf32>
    %c4_127 = arith.constant 4 : index
    %c512_128 = arith.constant 512 : index
    %115 = vector.load %arg11[%c4_127, %c512_128] : memref<8x640xf32, #tpu.memory_space<vmem>>, vector<1x128xf32>
    tpu.vector_store %arg11[%c4_127, %c512_128], %114 {strides = array<i32>} : memref<8x640xf32, #tpu.memory_space<vmem>>, vector<1x128xf32>,
    %c160 = arith.constant 160 : index
    %c0_129 = arith.constant 0 : index
    %116 = vector.load %arg10[%c160, %c0_129] : memref<256x128xf32, #tpu.memory_space<vmem>>, vector<1x128xf32>
    %c5 = arith.constant 5 : index
    %c0_130 = arith.constant 0 : index
    %117 = vector.load %arg11[%c5, %c0_130] : memref<8x640xf32, #tpu.memory_space<vmem>>, vector<1x128xf32>
    tpu.vector_store %arg11[%c5, %c0_130], %116 {strides = array<i32>} : memref<8x640xf32, #tpu.memory_space<vmem>>, vector<1x128xf32>,
    %c164 = arith.constant 164 : index
    %c0_131 = arith.constant 0 : index
    %118 = vector.load %arg10[%c164, %c0_131] : memref<256x128xf32, #tpu.memory_space<vmem>>, vector<1x128xf32>
    %c5_132 = arith.constant 5 : index
    %c128_133 = arith.constant 128 : index
    %119 = vector.load %arg11[%c5_132, %c128_133] : memref<8x640xf32, #tpu.memory_space<vmem>>, vector<1x128xf32>
    tpu.vector_store %arg11[%c5_132, %c128_133], %118 {strides = array<i32>} : memref<8x640xf32, #tpu.memory_space<vmem>>, vector<1x128xf32>,
    %c168 = arith.constant 168 : index
    %c0_134 = arith.constant 0 : index
    %120 = vector.load %arg10[%c168, %c0_134] : memref<256x128xf32, #tpu.memory_space<vmem>>, vector<1x128xf32>
    %c5_135 = arith.constant 5 : index
    %c256_136 = arith.constant 256 : index
    %121 = vector.load %arg11[%c5_135, %c256_136] : memref<8x640xf32, #tpu.memory_space<vmem>>, vector<1x128xf32>
    tpu.vector_store %arg11[%c5_135, %c256_136], %120 {strides = array<i32>} : memref<8x640xf32, #tpu.memory_space<vmem>>, vector<1x128xf32>,
    %c172 = arith.constant 172 : index
    %c0_137 = arith.constant 0 : index
    %122 = vector.load %arg10[%c172, %c0_137] : memref<256x128xf32, #tpu.memory_space<vmem>>, vector<1x128xf32>
    %c5_138 = arith.constant 5 : index
    %c384_139 = arith.constant 384 : index
    %123 = vector.load %arg11[%c5_138, %c384_139] : memref<8x640xf32, #tpu.memory_space<vmem>>, vector<1x128xf32>
    tpu.vector_store %arg11[%c5_138, %c384_139], %122 {strides = array<i32>} : memref<8x640xf32, #tpu.memory_space<vmem>>, vector<1x128xf32>,
    %c176 = arith.constant 176 : index
    %c0_140 = arith.constant 0 : index
    %124 = vector.load %arg10[%c176, %c0_140] : memref<256x128xf32, #tpu.memory_space<vmem>>, vector<1x128xf32>
    %c5_141 = arith.constant 5 : index
    %c512_142 = arith.constant 512 : index
    %125 = vector.load %arg11[%c5_141, %c512_142] : memref<8x640xf32, #tpu.memory_space<vmem>>, vector<1x128xf32>
    tpu.vector_store %arg11[%c5_141, %c512_142], %124 {strides = array<i32>} : memref<8x640xf32, #tpu.memory_space<vmem>>, vector<1x128xf32>,
    %c192 = arith.constant 192 : index
    %c0_143 = arith.constant 0 : index
    %126 = vector.load %arg10[%c192, %c0_143] : memref<256x128xf32, #tpu.memory_space<vmem>>, vector<1x128xf32>
    %c6_144 = arith.constant 6 : index
    %c0_145 = arith.constant 0 : index
    %127 = vector.load %arg11[%c6_144, %c0_145] : memref<8x640xf32, #tpu.memory_space<vmem>>, vector<1x128xf32>
    tpu.vector_store %arg11[%c6_144, %c0_145], %126 {strides = array<i32>} : memref<8x640xf32, #tpu.memory_space<vmem>>, vector<1x128xf32>,
    %c196 = arith.constant 196 : index
    %c0_146 = arith.constant 0 : index
    %128 = vector.load %arg10[%c196, %c0_146] : memref<256x128xf32, #tpu.memory_space<vmem>>, vector<1x128xf32>
    %c6_147 = arith.constant 6 : index
    %c128_148 = arith.constant 128 : index
    %129 = vector.load %arg11[%c6_147, %c128_148] : memref<8x640xf32, #tpu.memory_space<vmem>>, vector<1x128xf32>
    tpu.vector_store %arg11[%c6_147, %c128_148], %128 {strides = array<i32>} : memref<8x640xf32, #tpu.memory_space<vmem>>, vector<1x128xf32>,
    %c200 = arith.constant 200 : index
    %c0_149 = arith.constant 0 : index
    %130 = vector.load %arg10[%c200, %c0_149] : memref<256x128xf32, #tpu.memory_space<vmem>>, vector<1x128xf32>
    %c6_150 = arith.constant 6 : index
    %c256_151 = arith.constant 256 : index
    %131 = vector.load %arg11[%c6_150, %c256_151] : memref<8x640xf32, #tpu.memory_space<vmem>>, vector<1x128xf32>
    tpu.vector_store %arg11[%c6_150, %c256_151], %130 {strides = array<i32>} : memref<8x640xf32, #tpu.memory_space<vmem>>, vector<1x128xf32>,
    %c204 = arith.constant 204 : index
    %c0_152 = arith.constant 0 : index
    %132 = vector.load %arg10[%c204, %c0_152] : memref<256x128xf32, #tpu.memory_space<vmem>>, vector<1x128xf32>
    %c6_153 = arith.constant 6 : index
    %c384_154 = arith.constant 384 : index
    %133 = vector.load %arg11[%c6_153, %c384_154] : memref<8x640xf32, #tpu.memory_space<vmem>>, vector<1x128xf32>
    tpu.vector_store %arg11[%c6_153, %c384_154], %132 {strides = array<i32>} : memref<8x640xf32, #tpu.memory_space<vmem>>, vector<1x128xf32>,
    %c208 = arith.constant 208 : index
    %c0_155 = arith.constant 0 : index
    %134 = vector.load %arg10[%c208, %c0_155] : memref<256x128xf32, #tpu.memory_space<vmem>>, vector<1x128xf32>
    %c6_156 = arith.constant 6 : index
    %c512_157 = arith.constant 512 : index
    %135 = vector.load %arg11[%c6_156, %c512_157] : memref<8x640xf32, #tpu.memory_space<vmem>>, vector<1x128xf32>
    tpu.vector_store %arg11[%c6_156, %c512_157], %134 {strides = array<i32>} : memref<8x640xf32, #tpu.memory_space<vmem>>, vector<1x128xf32>,
    %c224 = arith.constant 224 : index
    %c0_158 = arith.constant 0 : index
    %136 = vector.load %arg10[%c224, %c0_158] : memref<256x128xf32, #tpu.memory_space<vmem>>, vector<1x128xf32>
    %c7 = arith.constant 7 : index
    %c0_159 = arith.constant 0 : index
    %137 = vector.load %arg11[%c7, %c0_159] : memref<8x640xf32, #tpu.memory_space<vmem>>, vector<1x128xf32>
    tpu.vector_store %arg11[%c7, %c0_159], %136 {strides = array<i32>} : memref<8x640xf32, #tpu.memory_space<vmem>>, vector<1x128xf32>,
    %c228 = arith.constant 228 : index
    %c0_160 = arith.constant 0 : index
    %138 = vector.load %arg10[%c228, %c0_160] : memref<256x128xf32, #tpu.memory_space<vmem>>, vector<1x128xf32>
    %c7_161 = arith.constant 7 : index
    %c128_162 = arith.constant 128 : index
    %139 = vector.load %arg11[%c7_161, %c128_162] : memref<8x640xf32, #tpu.memory_space<vmem>>, vector<1x128xf32>
    tpu.vector_store %arg11[%c7_161, %c128_162], %138 {strides = array<i32>} : memref<8x640xf32, #tpu.memory_space<vmem>>, vector<1x128xf32>,
    %c232 = arith.constant 232 : index
    %c0_163 = arith.constant 0 : index
    %140 = vector.load %arg10[%c232, %c0_163] : memref<256x128xf32, #tpu.memory_space<vmem>>, vector<1x128xf32>
    %c7_164 = arith.constant 7 : index
    %c256_165 = arith.constant 256 : index
    %141 = vector.load %arg11[%c7_164, %c256_165] : memref<8x640xf32, #tpu.memory_space<vmem>>, vector<1x128xf32>
    tpu.vector_store %arg11[%c7_164, %c256_165], %140 {strides = array<i32>} : memref<8x640xf32, #tpu.memory_space<vmem>>, vector<1x128xf32>,
    %c236 = arith.constant 236 : index
    %c0_166 = arith.constant 0 : index
    %142 = vector.load %arg10[%c236, %c0_166] : memref<256x128xf32, #tpu.memory_space<vmem>>, vector<1x128xf32>
    %c7_167 = arith.constant 7 : index
    %c384_168 = arith.constant 384 : index
    %143 = vector.load %arg11[%c7_167, %c384_168] : memref<8x640xf32, #tpu.memory_space<vmem>>, vector<1x128xf32>
    tpu.vector_store %arg11[%c7_167, %c384_168], %142 {strides = array<i32>} : memref<8x640xf32, #tpu.memory_space<vmem>>, vector<1x128xf32>,
    %c240 = arith.constant 240 : index
    %c0_169 = arith.constant 0 : index
    %144 = vector.load %arg10[%c240, %c0_169] : memref<256x128xf32, #tpu.memory_space<vmem>>, vector<1x128xf32>
    %c7_170 = arith.constant 7 : index
    %c512_171 = arith.constant 512 : index
    %145 = vector.load %arg11[%c7_170, %c512_171] : memref<8x640xf32, #tpu.memory_space<vmem>>, vector<1x128xf32>
    tpu.vector_store %arg11[%c7_170, %c512_171], %144 {strides = array<i32>} : memref<8x640xf32, #tpu.memory_space<vmem>>, vector<1x128xf32>,
    %c0_172 = arith.constant 0 : index
    %c0_173 = arith.constant 0 : index
    %146 = vector.load %arg11[%c0_172, %c0_173] : memref<8x640xf32, #tpu.memory_space<vmem>>, vector<8x640xf32>
    %c0_174 = arith.constant 0 : index
    %c0_175 = arith.constant 0 : index
    %147 = vector.load %arg4[%c0_174, %c0_175] : memref<640x128xf32, #tpu.memory_space<vmem>>, vector<640x128xf32>
    %cst_176 = arith.constant dense<0.000000e+00> : vector<8x128xf32>
    %148 = tpu.matmul %146, %147, %cst_176 {dimension_numbers = #tpu.dot_dimension_numbers<[1], [0], [0], [1], [0, 0, 1, 1], [], []>} : vector<8x640xf32>, vector<640x128xf32>, vector<8x128xf32> -> vector<8x128xf32>
    %c2_177 = arith.constant 2 : index
    %c0_178 = arith.constant 0 : index
    %149 = vector.load %arg7[%c2_177, %c0_178] : memref<5x128xf32, #tpu.memory_space<vmem>>, vector<1x128xf32>
    %150 = vector.broadcast %149 : vector<1x128xf32> to vector<8x128xf32>
    %151 = arith.addf %148, %150 : vector<8x128xf32>
    %cst_179 = arith.constant 0.000000e+00 : f32
    %152 = vector.broadcast %cst_179 : f32 to vector<8x128xf32>
    %153 = arith.maximumf %151, %152 : vector<8x128xf32>
    %c0_180 = arith.constant 0 : index
    %c0_181 = arith.constant 0 : index
    %154 = vector.load %arg5[%c0_180, %c0_181] : memref<128x128xf32, #tpu.memory_space<vmem>>, vector<128x128xf32>
    %cst_182 = arith.constant dense<0.000000e+00> : vector<8x128xf32>
    %155 = tpu.matmul %153, %154, %cst_182 {dimension_numbers = #tpu.dot_dimension_numbers<[1], [0], [0], [1], [0, 0, 1, 1], [], []>} : vector<8x128xf32>, vector<128x128xf32>, vector<8x128xf32> -> vector<8x128xf32>
    %c3_183 = arith.constant 3 : index
    %c0_184 = arith.constant 0 : index
    %156 = vector.load %arg7[%c3_183, %c0_184] : memref<5x128xf32, #tpu.memory_space<vmem>>, vector<1x128xf32>
    %157 = vector.broadcast %156 : vector<1x128xf32> to vector<8x128xf32>
    %158 = arith.addf %155, %157 : vector<8x128xf32>
    %cst_185 = arith.constant 0.000000e+00 : f32
    %159 = vector.broadcast %cst_185 : f32 to vector<8x128xf32>
    %160 = arith.maximumf %158, %159 : vector<8x128xf32>
    %c0_186 = arith.constant 0 : index
    %c0_187 = arith.constant 0 : index
    %161 = vector.load %arg6[%c0_186, %c0_187] : memref<128x128xf32, #tpu.memory_space<vmem>>, vector<128x128xf32>
    %cst_188 = arith.constant dense<0.000000e+00> : vector<8x128xf32>
    %162 = tpu.matmul %160, %161, %cst_188 {dimension_numbers = #tpu.dot_dimension_numbers<[1], [0], [0], [1], [0, 0, 1, 1], [], []>} : vector<8x128xf32>, vector<128x128xf32>, vector<8x128xf32> -> vector<8x128xf32>
    %c4_189 = arith.constant 4 : index
    %c0_190 = arith.constant 0 : index
    %163 = vector.load %arg7[%c4_189, %c0_190] : memref<5x128xf32, #tpu.memory_space<vmem>>, vector<1x128xf32>
    %164 = vector.broadcast %163 : vector<1x128xf32> to vector<8x128xf32>
    %165 = arith.addf %162, %164 : vector<8x128xf32>
    %c0_191 = arith.constant 0 : index
    %c0_192 = arith.constant 0 : index
    %166 = vector.load %arg8[%c0_191, %c0_192] : memref<8x128xf32, #tpu.memory_space<vmem>>, vector<8x128xf32>
    tpu.vector_store %arg8[%c0_191, %c0_192], %165 {strides = array<i32>} : memref<8x128xf32, #tpu.memory_space<vmem>>, vector<8x128xf32>,
    return
  }
  func.func @transform_0(%arg0: i32) -> (i32, i32) {
    %c0_i32 = arith.constant 0 : i32
    %c0_i32_0 = arith.constant 0 : i32
    return %arg0, %c0_i32 : i32, i32
  }
  func.func @transform_1(%arg0: i32) -> (i32, i32) {
    %c0_i32 = arith.constant 0 : i32
    %c0_i32_0 = arith.constant 0 : i32
    %c0_i32_1 = arith.constant 0 : i32
    return %c0_i32, %c0_i32_0 : i32, i32
  }
  func.func @transform_2(%arg0: i32) -> (i32, i32) {
    %c0_i32 = arith.constant 0 : i32
    %c0_i32_0 = arith.constant 0 : i32
    %c0_i32_1 = arith.constant 0 : i32
    return %c0_i32, %c0_i32_0 : i32, i32
  }
  func.func @transform_3(%arg0: i32) -> (i32, i32) {
    %c0_i32 = arith.constant 0 : i32
    %c0_i32_0 = arith.constant 0 : i32
    %c0_i32_1 = arith.constant 0 : i32
    return %c0_i32, %c0_i32_0 : i32, i32
  }
  func.func @transform_4(%arg0: i32) -> (i32, i32) {
    %c0_i32 = arith.constant 0 : i32
    %c0_i32_0 = arith.constant 0 : i32
    %c0_i32_1 = arith.constant 0 : i32
    return %c0_i32, %c0_i32_0 : i32, i32
  }
  func.func @transform_5(%arg0: i32) -> (i32, i32) {
    %c0_i32 = arith.constant 0 : i32
    %c0_i32_0 = arith.constant 0 : i32
    %c0_i32_1 = arith.constant 0 : i32
    return %c0_i32, %c0_i32_0 : i32, i32
  }
  func.func @transform_6(%arg0: i32) -> (i32, i32) {
    %c0_i32 = arith.constant 0 : i32
    %c0_i32_0 = arith.constant 0 : i32
    %c0_i32_1 = arith.constant 0 : i32
    return %c0_i32, %c0_i32_0 : i32, i32
  }
  func.func @transform_7(%arg0: i32) -> (i32, i32) {
    %c0_i32 = arith.constant 0 : i32
    %c0_i32_0 = arith.constant 0 : i32
    return %arg0, %c0_i32 : i32, i32
  }
}

</mosaic_0001>

<bundles_post_ra>
// kernel: net_forward.1
= control target key start
LH: loop header
LB: loop body
LE: loop exit
PB: predicated region body
PF: predicated region fallthrough
CT: control target
= control target key end

     0   :  { %12 = vsyncpa [#allocation6], 0  ;;  %s7959_s0 = inlined_call_operand.vmem [shape: f32[256,32], index: 0, kind: input, shape index: {}]   ;;  %s7960_s1 = inlined_call_operand.vmem [shape: f32[160,256], index: 1, kind: input, shape index: {}]   ;;  %s7961_s2 = inlined_call_operand.hbm [shape: f32[640,256], index: 2, kind: input, shape index: {}]   ;;  %s7962_s3 = inlined_call_operand.hbm [shape: f32[640,128], index: 3, kind: input, shape index: {}]   ;;  %s7963_s4 = inlined_call_operand.hbm [shape: f32[128,128], index: 4, kind: input, shape index: {}]   ;;  %s7964_s5 = inlined_call_operand.hbm [shape: f32[128,128], index: 5, kind: input, shape index: {}]   ;;  %s7965_s6 = inlined_call_operand.vmem [shape: f32[5,128], index: 6, kind: input, shape index: {}]   ;;  %s7966_s7 = inlined_call_operand.vmem [shape: f32[8,128], index: 7, kind: output, shape index: {}]  }
   0x1   :  { %13 = vsyncpa [#allocation8], 0 }
   0x2   :  { %14 = vsyncpa [#allocation11], 0  ;;  %s6480_s24 = smov [#allocation7]   ;;  %s6386_s28 = scalar_lea.hbm %s7962_s3, 10240 }
   0x3   :  { %s36_s25 = sshll.u32 %s6480_s24, 4  ;;  %p6387_p0 = scmp.ne.s32.totalorder %s7962_s3, %s6386_s28  ;;  %s37_s25 = int_to_ptr.vmem [resolvable:$true] %s36_s25 }
   0x4   :  { %p6390_p1 = scmp.lt.u32.totalorder %s6386_s28, %s7962_s3 }
   0x6   :  { %p6392_p2 = pnand %p6390_p1, %p6387_p0 }
   0x8   :  { %6395 = shalt.err (!%p6392_p2)
}
   0x9   :  { %s6396_s10 = scalar_lea.vmem %s37_s25, 10240  ;;  %p6401_p4 = scmp.lt.s32.totalorder %s37_s25, %s37_s25 }
   0xa   :  { %p6397_p3 = scmp.ne.s32.totalorder %s37_s25, %s6396_s10  ;;  %p6402_p5 = scmp.lt.s32.totalorder %s6396_s10, %s6396_s10 }
   0xc   :  { %p6403_p6 = por %p6402_p5, %p6401_p4 }
   0xe   :  { %p6404_p7 = pnand %p6403_p6, %p6397_p3 }
  0x10   :  { %6407 = shalt.err (!%p6404_p7)
}
  0x11   :  { %s6481_s11 = smov 128   ;;  %s6482_s12 = smov 8  }
  0x12   :  { %42 = dma.hbm_to_vmem [thread:$0]  %s7962_s3, 10240, %s37_s25, [#allocation8], %s6481_s11, %s6481_s11, %s6482_s12  }
  0x13   :  { %s6483_s15 = smov [#allocation5]   ;;  %s6408_s19 = scalar_lea.hbm %s7961_s2, 20480 }
  0x14   :  { %s24_s16 = sshll.u32 %s6483_s15, 4  ;;  %p6409_p8 = scmp.ne.s32.totalorder %s7961_s2, %s6408_s19  ;;  %s25_s16 = int_to_ptr.vmem [resolvable:$true] %s24_s16 }
  0x15   :  { %p6412_p9 = scmp.lt.u32.totalorder %s6408_s19, %s7961_s2 }
  0x17   :  { %p6414_p10 = pnand %p6412_p9, %p6409_p8 }
  0x19   :  { %6417 = shalt.err (!%p6414_p10)
}
  0x1a   :  { %s6418_s24 = scalar_lea.vmem %s25_s16, 20480  ;;  %p6423_p12 = scmp.lt.s32.totalorder %s25_s16, %s25_s16 }
  0x1b   :  { %p6419_p11 = scmp.ne.s32.totalorder %s25_s16, %s6418_s24  ;;  %p6424_p13 = scmp.lt.s32.totalorder %s6418_s24, %s6418_s24 }
  0x1d   :  { %p6425_p0 = por %p6424_p13, %p6423_p12 }
  0x1f   :  { %p6426_p1 = pnand %p6425_p0, %p6419_p11 }
  0x21   :  { %6429 = shalt.err (!%p6426_p1)
}
  0x22   :  { %s6484_s3 = smov 256   ;;  %s6485_s25 = smov 16  }
  0x23   :  { %30 = dma.hbm_to_vmem [thread:$0]  %s7961_s2, 20480, %s25_s16, [#allocation6], %s6484_s3, %s6484_s3, %s6485_s25  }
  0x24   :  { %s6486_s28 = smov [#allocation9]   ;;  %s6487_s30 = smov [#allocation10]  }
  0x25   :  { %s48_s29 = sshll.u32 %s6486_s28, 4  ;;  %s60_s8 = sshll.u32 %s6487_s30, 4  ;;  %s49_s29 = int_to_ptr.vmem [resolvable:$true] %s48_s29  ;;  %s6558_s8 = int_to_ptr.vmem [resolvable:$true] %s60_s8 }
  0x26   :  { %s6430_s13 = scalar_lea.hbm %s7963_s4, 2048 }
  0x27   :  { %p6431_p2 = scmp.ne.s32.totalorder %s7963_s4, %s6430_s13  ;;  %p6434_p3 = scmp.lt.u32.totalorder %s6430_s13, %s7963_s4 }
  0x29   :  { %p6436_p4 = pnand %p6434_p3, %p6431_p2 }
  0x2b   :  { %6439 = shalt.err (!%p6436_p4)
}
  0x2c   :  { %s6440_s2 = scalar_lea.vmem %s49_s29, 2048  ;;  %p6445_p6 = scmp.lt.s32.totalorder %s49_s29, %s49_s29 }
  0x2d   :  { %p6441_p5 = scmp.ne.s32.totalorder %s49_s29, %s6440_s2  ;;  %p6446_p7 = scmp.lt.s32.totalorder %s6440_s2, %s6440_s2 }
  0x2f   :  { %p6447_p8 = por %p6446_p7, %p6445_p6 }
  0x31   :  { %p6448_p9 = pnand %p6447_p8, %p6441_p5 }
  0x33   :  { %6451 = shalt.err (!%p6448_p9)
}
  0x34   :  { %54 = dma.hbm_to_vmem [thread:$0]  %s7963_s4, 2048, %s49_s29, [#allocation8], %s6481_s11, %s6481_s11, %s6482_s12  }
  0x35   :  { %s6452_s22 = scalar_lea.hbm %s7964_s5, 2048 }
  0x36   :  { %p6453_p10 = scmp.ne.s32.totalorder %s7964_s5, %s6452_s22  ;;  %p6456_p11 = scmp.lt.u32.totalorder %s6452_s22, %s7964_s5 }
  0x38   :  { %p6458_p12 = pnand %p6456_p11, %p6453_p10 }
  0x3a   :  { %6461 = shalt.err (!%p6458_p12)
}
  0x3b   :  { %s6462_s26 = scalar_lea.vmem %s6558_s8, 2048  ;;  %p6467_p0 = scmp.lt.s32.totalorder %s6558_s8, %s6558_s8 }
  0x3c   :  { %p6463_p13 = scmp.ne.s32.totalorder %s6558_s8, %s6462_s26  ;;  %p6468_p1 = scmp.lt.s32.totalorder %s6462_s26, %s6462_s26 }
  0x3e   :  { %p6469_p2 = por %p6468_p1, %p6467_p0 }
  0x40   :  { %p6470_p3 = pnand %p6469_p2, %p6463_p13 }
  0x42   :  { %6473 = shalt.err (!%p6470_p3)
}
  0x43   :  { %66 = dma.hbm_to_vmem [thread:$0]  %s7964_s5, 2048, %s6558_s8, [#allocation11], %s6481_s11, %s6481_s11, %s6482_s12  }
  0x44   :  { %6474 = dma.done.wait [#allocation6], 20480  }
  0x45   :  { %6475 = vsyncadd [#allocation6], 4294946816 }
  0x46   :  { %6476 = dma.done.wait [#allocation8], 12288  }
  0x47   :  { %6477 = vsyncadd [#allocation8], 4294955008 }
  0x48   :  { %6478 = dma.done.wait [#allocation11], 2048  }
  0x49   :  { %6479 = vsyncadd [#allocation11], 4294965248  ;;  %v6488_v0 = vmov 0.0   ;;  %v154_v1 = vld [vmem:[%s7960_s1 + $0x48] sm:$0xff]  ;;  %v156_v2 = vld [vmem:[%s7960_s1 + $0x58] sm:$0xff]  ;;  %vm161_vm0 = vcmask 261120  }
  0x4a   :  { %322 = vmatprep.mubr.f32.mxu0 %v6488_v0  ;;  %2722 = vmatprep.mubr.f32.mxu1 %v6488_v0  ;;  %v153_v3 = vld [vmem:[%s7960_s1 + $0x40] sm:$0xff]  ;;  %v5535_v4 = vpack.c.bf16 %v156_v2, %v154_v1  ;;  %v155_v5 = vld [vmem:[%s7960_s1 + $0x50] sm:$0xff]  ;;  %v158_v6 = vld [vmem:[%s7960_s1 + $0x68] sm:$0xff]  ;;  %vm2372_vm1 = vcmask 1046528   ;;  %vm4417_vm2 = vcmask 1045504   ;;  %vm6490_vm3 = vmmov 0  }
  0x4b   :  { %v160_v7 = vld [vmem:[%s7960_s1 + $0x78] sm:$0xff]  ;;  %v5537_v8 = vpack.c.bf16 %v155_v5, %v153_v3  ;;  %v157_v10 = vld [vmem:[%s7960_s1 + $0x60] sm:$0xff]  ;;  %v159_v11 = vld [vmem:[%s7960_s1 + $0x70] sm:$0xff] }
  0x4c   :  { %v5539_v9 = vpack.c.bf16 %v160_v7, %v158_v6  ;;  %5536 = vmatprep.subr.bf16.mxu0 %v5535_v4  ;;  %v114_v12 = vld [vmem:[%s7960_s1 + $0x8] sm:$0xff]  ;;  %v116_v13 = vld [vmem:[%s7960_s1 + $0x18] sm:$0xff]  ;;  %v5541_v14 = vpack.c.bf16 %v159_v11, %v157_v10  ;;  %v113_v16 = vld [vmem:[%s7960_s1] sm:$0xff] }
  0x4d   :  { %5538 = vmatpush1.bf16.msra.mxu0 %v5537_v8  ;;  %v5543_v15 = vpack.c.bf16 %v116_v13, %v114_v12  ;;  %v115_v17 = vld [vmem:[%s7960_s1 + $0x10] sm:$0xff]  ;;  %v121_v18 = vld [vmem:[%s7959_s0 + $0x1] sm:$0xff]  ;;  %v120_v21 = vld [vmem:[%s7960_s1 + $0x38] sm:$0xff] }
  0x4e   :  { %5540 = vmatprep.subr.bf16.mxu0 %v5539_v9  ;;  %v5545_v19 = vpack.c.bf16 %v115_v17, %v113_v16  ;;  %v118_v20 = vld [vmem:[%s7960_s1 + $0x28] sm:$0xff]  ;;  %v117_v22 = vld [vmem:[%s7960_s1 + $0x20] sm:$0xff]  ;;  %v119_v23 = vld [vmem:[%s7960_s1 + $0x30] sm:$0xff] }
  0x4f   :  { %v5547_v24 = vpack.c.bf16 %v120_v21, %v118_v20  ;;  %v122_v25 = vld [vmem:[%s7959_s0 + $0x9] sm:$0xff]  ;;  %v5549_v26 = vpack.c.bf16 %v119_v23, %v117_v22  ;;  %v123_v27 = vld [vmem:[%s7959_s0 + $0x11] sm:$0xff]  ;;  %v124_v31 = vld [vmem:[%s7959_s0 + $0x19] sm:$0xff] }
  0x50   :  { %v901_v28 = vld [vmem:[%s7960_s1 + $0x88] sm:$0xff]  ;;  %v903_v29 = vld [vmem:[%s7960_s1 + $0x98] sm:$0xff]  ;;  %v900_v60 = vld [vmem:[%s7960_s1 + $0x80] sm:$0xff] }
  0x51   :  { %5542 = vmatpush1.bf16.msra.mxu0 %v5541_v14  ;;  %v5551_v30 = vpack.c.bf16 %v903_v29, %v901_v28  ;;  %v125_v32 = vld [vmem:[%s7959_s0 + $0x21] sm:$0xff]  ;;  %v126_v33 = vld [vmem:[%s7959_s0 + $0x29] sm:$0xff]  ;;  %v127_v34 = vld [vmem:[%s7959_s0 + $0x31] sm:$0xff] }
  0x52   :  { %5544 = vmatprep.subr.bf16.mxu0 %v5543_v15  ;;  %v128_v35 = vld [vmem:[%s7959_s0 + $0x39] sm:$0xff]  ;;  %v129_v36 = vld [vmem:[%s7959_s0 + $0x41] sm:$0xff]  ;;  %v130_v37 = vld [vmem:[%s7959_s0 + $0x49] sm:$0xff] }
  0x53   :  { %v131_v38 = vld [vmem:[%s7959_s0 + $0x51] sm:$0xff]  ;;  %v132_v39 = vld [vmem:[%s7959_s0 + $0x59] sm:$0xff]  ;;  %v133_v40 = vld [vmem:[%s7959_s0 + $0x61] sm:$0xff] }
  0x54   :  { %5144 = vmatmul.mubr.msk.f32.vlgmr.msra.gmra.mrb[0].mxu0 %vm161_vm0, %v121_v18  ;;  %v134_v41 = vld [vmem:[%s7959_s0 + $0x69] sm:$0xff]  ;;  %v135_v42 = vld [vmem:[%s7959_s0 + $0x71] sm:$0xff]  ;;  %v136_v43 = vld [vmem:[%s7959_s0 + $0x79] sm:$0xff] }
  0x55   :  { %5546 = vmatpush1.bf16.msra.mxu0 %v5545_v19  ;;  %328 = vmatprep.mubr.f32.mxu0 %v6488_v0  ;;  %v137_v44 = vld [vmem:[%s7959_s0 + $0x81] sm:$0xff]  ;;  %v138_v45 = vld [vmem:[%s7959_s0 + $0x89] sm:$0xff]  ;;  %v139_v46 = vld [vmem:[%s7959_s0 + $0x91] sm:$0xff] }
  0x56   :  { %5548 = vmatprep.subr.bf16.mxu0 %v5547_v24  ;;  %v140_v47 = vld [vmem:[%s7959_s0 + $0x99] sm:$0xff]  ;;  %v141_v48 = vld [vmem:[%s7959_s0 + $0xa1] sm:$0xff]  ;;  %v142_v49 = vld [vmem:[%s7959_s0 + $0xa9] sm:$0xff] }
  0x57   :  { %v143_v50 = vld [vmem:[%s7959_s0 + $0xb1] sm:$0xff]  ;;  %v144_v51 = vld [vmem:[%s7959_s0 + $0xb9] sm:$0xff]  ;;  %v145_v52 = vld [vmem:[%s7959_s0 + $0xc1] sm:$0xff] }
  0x58   :  { %5145 = vmatmul.mubr.msk.f32.gmra.mrb[2].mxu0 %vm161_vm0, %v122_v25  ;;  %v146_v53 = vld [vmem:[%s7959_s0 + $0xc9] sm:$0xff]  ;;  %v147_v54 = vld [vmem:[%s7959_s0 + $0xd1] sm:$0xff]  ;;  %v148_v55 = vld [vmem:[%s7959_s0 + $0xd9] sm:$0xff] }
  0x59   :  { %334 = vmatprep.mubr.f32.mxu0 %v6488_v0  ;;  %5550 = vmatpush1.bf16.msra.mxu0 %v5549_v26  ;;  %v149_v56 = vld [vmem:[%s7959_s0 + $0xe1] sm:$0xff]  ;;  %v150_v57 = vld [vmem:[%s7959_s0 + $0xe9] sm:$0xff]  ;;  %v151_v58 = vld [vmem:[%s7959_s0 + $0xf1] sm:$0xff] }
  0x5a   :  { %5552 = vmatprep.subr.bf16.mxu0 %v5551_v30  ;;  %v152_v59 = vld [vmem:[%s7959_s0 + $0xf9] sm:$0xf]  ;;  %v902_v61 = vld [vmem:[%s7960_s1 + $0x90] sm:$0xff]  ;;  %v905_v62 = vld [vmem:[%s7960_s1 + $0xa8] sm:$0xff] }
  0x5b   :  { %v907_v63 = vld [vmem:[%s7960_s1 + $0xb8] sm:$0xff]  ;;  %v81_v1 = vld [vmem:[%s7959_s0] sm:$0xff]  ;;  %v5553_v2 = vpack.c.bf16 %v902_v61, %v900_v60  ;;  %v906_v5 = vld [vmem:[%s7960_s1 + $0xb0] sm:$0xff] }
  0x5c   :  { %5146 = vmatmul.mubr.msk.f32.gmra.mrb[4].mxu0 %vm161_vm0, %v123_v27  ;;  %v5555_v3 = vpack.c.bf16 %v907_v63, %v905_v62  ;;  %v904_v4 = vld [vmem:[%s7960_s1 + $0xa0] sm:$0xff]  ;;  %v1358_v6 = vld [vmem:[%s7960_s1 + $0xc8] sm:$0xff]  ;;  %v1360_v7 = vld [vmem:[%s7960_s1 + $0xd8] sm:$0xff] }
  0x5d   :  { %340 = vmatprep.mubr.f32.mxu0 %v6488_v0  ;;  %v82_v8 = vld [vmem:[%s7959_s0 + $0x8] sm:$0xff]  ;;  %v5557_v9 = vpack.c.bf16 %v906_v5, %v904_v4  ;;  %v5559_v10 = vpack.c.bf16 %v1360_v7, %v1358_v6  ;;  %v83_v11 = vld [vmem:[%s7959_s0 + $0x10] sm:$0xff]  ;;  %v84_v12 = vld [vmem:[%s7959_s0 + $0x18] sm:$0xff] }
  0x5e   :  { %v85_v13 = vld [vmem:[%s7959_s0 + $0x20] sm:$0xff]  ;;  %v86_v14 = vld [vmem:[%s7959_s0 + $0x28] sm:$0xff]  ;;  %v87_v15 = vld [vmem:[%s7959_s0 + $0x30] sm:$0xff] }
  0x5f   :  { %v88_v16 = vld [vmem:[%s7959_s0 + $0x38] sm:$0xff]  ;;  %v89_v17 = vld [vmem:[%s7959_s0 + $0x40] sm:$0xff]  ;;  %v90_v18 = vld [vmem:[%s7959_s0 + $0x48] sm:$0xff] }
  0x60   :  { %5147 = vmatmul.mubr.msk.f32.gmra.mrb[6].mxu0 %vm161_vm0, %v124_v31  ;;  %v91_v19 = vld [vmem:[%s7959_s0 + $0x50] sm:$0xff]  ;;  %v92_v20 = vld [vmem:[%s7959_s0 + $0x58] sm:$0xff]  ;;  %v93_v21 = vld [vmem:[%s7959_s0 + $0x60] sm:$0xff] }
  0x61   :  { %346 = vmatprep.mubr.f32.mxu0 %v6488_v0  ;;  %v94_v22 = vld [vmem:[%s7959_s0 + $0x68] sm:$0xff]  ;;  %v95_v23 = vld [vmem:[%s7959_s0 + $0x70] sm:$0xff]  ;;  %v96_v24 = vld [vmem:[%s7959_s0 + $0x78] sm:$0xff] }
  0x62   :  { %v97_v25 = vld [vmem:[%s7959_s0 + $0x80] sm:$0xff]  ;;  %v98_v26 = vld [vmem:[%s7959_s0 + $0x88] sm:$0xff]  ;;  %v99_v27 = vld [vmem:[%s7959_s0 + $0x90] sm:$0xff] }
  0x63   :  { %v100_v28 = vld [vmem:[%s7959_s0 + $0x98] sm:$0xff]  ;;  %v101_v29 = vld [vmem:[%s7959_s0 + $0xa0] sm:$0xff]  ;;  %v102_v30 = vld [vmem:[%s7959_s0 + $0xa8] sm:$0xff] }
  0x64   :  { %5148 = vmatmul.mubr.msk.f32.gmra.mrb[8].mxu0 %vm161_vm0, %v125_v32  ;;  %v103_v31 = vld [vmem:[%s7959_s0 + $0xb0] sm:$0xff]  ;;  %v104_v32 = vld [vmem:[%s7959_s0 + $0xb8] sm:$0xff]  ;;  %v876_v61 = vld [vmem:[%s7959_s0 + $0x42] sm:$0xff] }
  0x65   :  { %352 = vmatprep.mubr.f32.mxu0 %v6488_v0  ;;  %v875_v60 = vld [vmem:[%s7959_s0 + $0x3a] sm:$0xff]  ;;  %v877_v62 = vld [vmem:[%s7959_s0 + $0x4a] sm:$0xff]  ;;  %v878_v63 = vld [vmem:[%s7959_s0 + $0x52] sm:$0xff] }
  0x66   :  { %v882_v4 = vld [vmem:[%s7959_s0 + $0x72] sm:$0xff]  ;;  %v883_v5 = vld [vmem:[%s7959_s0 + $0x7a] sm:$0xff]  ;;  %v884_v6 = vld [vmem:[%s7959_s0 + $0x82] sm:$0xff] }
  0x67   :  { %v885_v7 = vld [vmem:[%s7959_s0 + $0x8a] sm:$0xff] }
  0x68   :  { %5149 = vmatmul.mubr.msk.f32.gmra.mrb[10].mxu0 %vm161_vm0, %v126_v33  ;;  %v105_v33 = vld [vmem:[%s7959_s0 + $0xc0] sm:$0xff] }
  0x69   :  { %358 = vmatprep.mubr.f32.mxu0 %v6488_v0 }
  0x6c   :  { %5150 = vmatmul.mubr.msk.f32.gmra.mrb[12].mxu0 %vm161_vm0, %v127_v34  ;;  %v106_v34 = vld [vmem:[%s7959_s0 + $0xc8] sm:$0xff] }
  0x6d   :  { %364 = vmatprep.mubr.f32.mxu0 %v6488_v0 }
  0x70   :  { %5151 = vmatmul.mubr.msk.f32.gmra.mrb[14].mxu0 %vm161_vm0, %v128_v35  ;;  %v107_v35 = vld [vmem:[%s7959_s0 + $0xd0] sm:$0xff] }
  0x71   :  { %370 = vmatprep.mubr.f32.mxu0 %v6488_v0 }
  0x74   :  { %5152 = vmatmul.mubr.msk.f32.gmra.mrb[16].mxu0 %vm161_vm0, %v129_v36  ;;  %v108_v36 = vld [vmem:[%s7959_s0 + $0xd8] sm:$0xff] }
  0x75   :  { %376 = vmatprep.mubr.f32.mxu0 %v6488_v0 }
  0x78   :  { %5153 = vmatmul.mubr.msk.f32.gmra.mrb[18].mxu0 %vm161_vm0, %v130_v37  ;;  %v109_v37 = vld [vmem:[%s7959_s0 + $0xe0] sm:$0xff] }
  0x79   :  { %382 = vmatprep.mubr.f32.mxu0 %v6488_v0 }
  0x7c   :  { %5154 = vmatmul.mubr.msk.f32.gmra.mrb[20].mxu0 %vm161_vm0, %v131_v38  ;;  %v110_v38 = vld [vmem:[%s7959_s0 + $0xe8] sm:$0xff] }
  0x7d   :  { %388 = vmatprep.mubr.f32.mxu0 %v6488_v0 }
  0x80   :  { %5155 = vmatmul.mubr.msk.f32.gmra.mrb[22].mxu0 %vm161_vm0, %v132_v39  ;;  %v111_v39 = vld [vmem:[%s7959_s0 + $0xf0] sm:$0xff] }
  0x81   :  { %394 = vmatprep.mubr.f32.mxu0 %v6488_v0 }
  0x84   :  { %5156 = vmatmul.mubr.msk.f32.gmra.mrb[24].mxu0 %vm161_vm0, %v133_v40  ;;  %v112_v40 = vld [vmem:[%s7959_s0 + $0xf8] sm:$0xf] }
  0x85   :  { %400 = vmatprep.mubr.f32.mxu0 %v6488_v0 }
  0x88   :  { %5157 = vmatmul.mubr.msk.f32.gmra.mrb[26].mxu0 %vm161_vm0, %v134_v41  ;;  %v1357_v41 = vld [vmem:[%s7960_s1 + $0xc0] sm:$0xff] }
  0x89   :  { %406 = vmatprep.mubr.f32.mxu0 %v6488_v0 }
  0x8c   :  { %5158 = vmatmul.mubr.msk.f32.gmra.mrb[28].mxu0 %vm161_vm0, %v135_v42  ;;  %v1359_v42 = vld [vmem:[%s7960_s1 + $0xd0] sm:$0xff] }
  0x8d   :  { %412 = vmatprep.mubr.f32.mxu0 %v6488_v0 }
  0x90   :  { %5159 = vmatmul.mubr.msk.f32.gmra.mrb[30].mxu0 %vm161_vm0, %v136_v43  ;;  %v1362_v43 = vld [vmem:[%s7960_s1 + $0xe8] sm:$0xff] }
  0x91   :  { %418 = vmatprep.mubr.f32.mxu0 %v6488_v0 }
  0x94   :  { %5160 = vmatmul.mubr.msk.f32.gmra.mrb[32].mxu0 %vm161_vm0, %v137_v44  ;;  %v1364_v44 = vld [vmem:[%s7960_s1 + $0xf8] sm:$0xff] }
  0x95   :  { %424 = vmatprep.mubr.f32.mxu0 %v6488_v0 }
  0x98   :  { %5161 = vmatmul.mubr.msk.f32.gmra.mrb[34].mxu0 %vm161_vm0, %v138_v45  ;;  %v868_v45 = vld [vmem:[%s7959_s0 + $0x2] sm:$0xff] }
  0x99   :  { %430 = vmatprep.mubr.f32.mxu0 %v6488_v0 }
  0x9c   :  { %5162 = vmatmul.mubr.msk.f32.gmra.mrb[36].mxu0 %vm161_vm0, %v139_v46  ;;  %v5561_v46 = vpack.c.bf16 %v1359_v42, %v1357_v41  ;;  %v1335_v41 = vld [vmem:[%s7959_s0 + $0x53] sm:$0xff]  ;;  %v1336_v42 = vld [vmem:[%s7959_s0 + $0x5b] sm:$0xff] }
  0x9d   :  { %436 = vmatprep.mubr.f32.mxu0 %v6488_v0 }
  0xa0   :  { %5163 = vmatmul.mubr.msk.f32.gmra.mrb[38].mxu0 %vm161_vm0, %v140_v47  ;;  %v5563_v47 = vpack.c.bf16 %v1364_v44, %v1362_v43  ;;  %v1337_v43 = vld [vmem:[%s7959_s0 + $0x63] sm:$0xff]  ;;  %v1338_v44 = vld [vmem:[%s7959_s0 + $0x6b] sm:$0xff] }
  0xa1   :  { %442 = vmatprep.mubr.f32.mxu0 %v6488_v0 }
  0xa4   :  { %5164 = vmatmul.mubr.msk.f32.gmra.mrb[40].mxu0 %vm161_vm0, %v141_v48  ;;  %v1361_v48 = vld [vmem:[%s7960_s1 + $0xe0] sm:$0xff] }
  0xa5   :  { %448 = vmatprep.mubr.f32.mxu0 %v6488_v0 }
  0xa8   :  { %5165 = vmatmul.mubr.msk.f32.gmra.mrb[42].mxu0 %vm161_vm0, %v142_v49  ;;  %v1363_v49 = vld [vmem:[%s7960_s1 + $0xf0] sm:$0xff] }
  0xa9   :  { %454 = vmatprep.mubr.f32.mxu0 %v6488_v0 }
  0xac   :  { %5166 = vmatmul.mubr.msk.f32.gmra.mrb[44].mxu0 %vm161_vm0, %v143_v50  ;;  %v1815_v50 = vld [vmem:[%s7960_s1 + $0x108] sm:$0xff] }
  0xad   :  { %460 = vmatprep.mubr.f32.mxu0 %v6488_v0 }
  0xb0   :  { %5167 = vmatmul.mubr.msk.f32.gmra.mrb[46].mxu0 %vm161_vm0, %v144_v51  ;;  %v1817_v51 = vld [vmem:[%s7960_s1 + $0x118] sm:$0xff] }
  0xb1   :  { %466 = vmatprep.mubr.f32.mxu0 %v6488_v0 }
  0xb4   :  { %5168 = vmatmul.mubr.msk.f32.gmra.mrb[48].mxu0 %vm161_vm0, %v145_v52  ;;  %v869_v52 = vld [vmem:[%s7959_s0 + $0xa] sm:$0xff] }
  0xb5   :  { %472 = vmatprep.mubr.f32.mxu0 %v6488_v0 }
  0xb8   :  { %5169 = vmatmul.mubr.msk.f32.gmra.mrb[50].mxu0 %vm161_vm0, %v146_v53  ;;  %v5565_v53 = vpack.c.bf16 %v1363_v49, %v1361_v48  ;;  %v1342_v48 = vld [vmem:[%s7959_s0 + $0x8b] sm:$0xff]  ;;  %v1343_v49 = vld [vmem:[%s7959_s0 + $0x93] sm:$0xff] }
  0xb9   :  { %478 = vmatprep.mubr.f32.mxu0 %v6488_v0 }
  0xbc   :  { %5170 = vmatmul.mubr.msk.f32.gmra.mrb[52].mxu0 %vm161_vm0, %v147_v54  ;;  %v5567_v54 = vpack.c.bf16 %v1817_v51, %v1815_v50  ;;  %v1344_v50 = vld [vmem:[%s7959_s0 + $0x9b] sm:$0xff]  ;;  %v1345_v51 = vld [vmem:[%s7959_s0 + $0xa3] sm:$0xff] }
  0xbd   :  { %484 = vmatprep.mubr.f32.mxu0 %v6488_v0 }
  0xc0   :  { %5171 = vmatmul.mubr.msk.f32.gmra.mrb[54].mxu0 %vm161_vm0, %v148_v55  ;;  %v870_v55 = vld [vmem:[%s7959_s0 + $0x12] sm:$0xff] }
  0xc1   :  { %490 = vmatprep.mubr.f32.mxu0 %v6488_v0 }
  0xc4   :  { %5172 = vmatmul.mubr.msk.f32.gmra.mrb[56].mxu0 %vm161_vm0, %v149_v56  ;;  %v871_v56 = vld [vmem:[%s7959_s0 + $0x1a] sm:$0xff] }
  0xc5   :  { %496 = vmatprep.mubr.f32.mxu0 %v6488_v0 }
  0xc8   :  { %5173 = vmatmul.mubr.msk.f32.gmra.mrb[58].mxu0 %vm161_vm0, %v150_v57  ;;  %v872_v57 = vld [vmem:[%s7959_s0 + $0x22] sm:$0xff] }
  0xc9   :  { %502 = vmatprep.mubr.f32.mxu0 %v6488_v0 }
  0xcc   :  { %5174 = vmatmul.mubr.msk.f32.gmra.mrb[60].mxu0 %vm161_vm0, %v151_v58  ;;  %v873_v58 = vld [vmem:[%s7959_s0 + $0x2a] sm:$0xff] }
  0xcd   :  { %508 = vmatprep.mubr.f32.mxu0 %v6488_v0 }
  0xd0   :  { %5175 = vmatmul.mubr.msk.f32.gmra.mrb[62].mxu0 %vm161_vm0, %v152_v59  ;;  %v874_v59 = vld [vmem:[%s7959_s0 + $0x32] sm:$0xff] }
  0xd1   :  { %675 = vmatprep.mubr.f32.mxu0 %v6488_v0 }
  0xd4   :  { %5176 = vmatmul.mubr.msk.f32.vlgmr.msra.gmra.mrb[0].mxu0 %vm161_vm0, %v81_v1  ;;  %v879_v1 = vld [vmem:[%s7959_s0 + $0x5a] sm:$0xff] }
  0xd5   :  { %5554 = vmatpush1.bf16.msra.mxu0 %v5553_v2  ;;  %681 = vmatprep.mubr.f32.mxu0 %v6488_v0  ;;  %v880_v2 = vld [vmem:[%s7959_s0 + $0x62] sm:$0xff] }
  0xd6   :  { %5556 = vmatprep.subr.bf16.mxu0 %v5555_v3  ;;  %v881_v3 = vld [vmem:[%s7959_s0 + $0x6a] sm:$0xff] }
  0xd8   :  { %5177 = vmatmul.mubr.msk.f32.gmra.mrb[2].mxu0 %vm161_vm0, %v82_v8  ;;  %v886_v8 = vld [vmem:[%s7959_s0 + $0x92] sm:$0xff] }
  0xd9   :  { %687 = vmatprep.mubr.f32.mxu0 %v6488_v0  ;;  %5558 = vmatpush1.bf16.msra.mxu0 %v5557_v9  ;;  %v887_v9 = vld [vmem:[%s7959_s0 + $0x9a] sm:$0xff] }
  0xda   :  { %5560 = vmatprep.subr.bf16.mxu0 %v5559_v10  ;;  %v888_v10 = vld [vmem:[%s7959_s0 + $0xa2] sm:$0xff] }
  0xdc   :  { %5178 = vmatmul.mubr.msk.f32.gmra.mrb[4].mxu0 %vm161_vm0, %v83_v11  ;;  %v889_v11 = vld [vmem:[%s7959_s0 + $0xaa] sm:$0xff] }
  0xdd   :  { %693 = vmatprep.mubr.f32.mxu0 %v6488_v0 }
  0xe0   :  { %5179 = vmatmul.mubr.msk.f32.gmra.mrb[6].mxu0 %vm161_vm0, %v84_v12  ;;  %v890_v12 = vld [vmem:[%s7959_s0 + $0xb2] sm:$0xff] }
  0xe1   :  { %699 = vmatprep.mubr.f32.mxu0 %v6488_v0 }
  0xe4   :  { %5180 = vmatmul.mubr.msk.f32.gmra.mrb[8].mxu0 %vm161_vm0, %v85_v13  ;;  %v891_v13 = vld [vmem:[%s7959_s0 + $0xba] sm:$0xff] }
  0xe5   :  { %705 = vmatprep.mubr.f32.mxu0 %v6488_v0 }
  0xe8   :  { %5181 = vmatmul.mubr.msk.f32.gmra.mrb[10].mxu0 %vm161_vm0, %v86_v14  ;;  %v892_v14 = vld [vmem:[%s7959_s0 + $0xc2] sm:$0xff] }
  0xe9   :  { %711 = vmatprep.mubr.f32.mxu0 %v6488_v0 }
  0xec   :  { %5182 = vmatmul.mubr.msk.f32.gmra.mrb[12].mxu0 %vm161_vm0, %v87_v15  ;;  %v893_v15 = vld [vmem:[%s7959_s0 + $0xca] sm:$0xff] }
  0xed   :  { %717 = vmatprep.mubr.f32.mxu0 %v6488_v0 }
  0xf0   :  { %5183 = vmatmul.mubr.msk.f32.gmra.mrb[14].mxu0 %vm161_vm0, %v88_v16  ;;  %v894_v16 = vld [vmem:[%s7959_s0 + $0xd2] sm:$0xff] }
  0xf1   :  { %723 = vmatprep.mubr.f32.mxu0 %v6488_v0 }
  0xf4   :  { %5184 = vmatmul.mubr.msk.f32.gmra.mrb[16].mxu0 %vm161_vm0, %v89_v17  ;;  %v895_v17 = vld [vmem:[%s7959_s0 + $0xda] sm:$0xff] }
  0xf5   :  { %729 = vmatprep.mubr.f32.mxu0 %v6488_v0 }
  0xf8   :  { %5185 = vmatmul.mubr.msk.f32.gmra.mrb[18].mxu0 %vm161_vm0, %v90_v18  ;;  %v896_v18 = vld [vmem:[%s7959_s0 + $0xe2] sm:$0xff] }
  0xf9   :  { %735 = vmatprep.mubr.f32.mxu0 %v6488_v0 }
  0xfc   :  { %5186 = vmatmul.mubr.msk.f32.gmra.mrb[20].mxu0 %vm161_vm0, %v91_v19  ;;  %v897_v19 = vld [vmem:[%s7959_s0 + $0xea] sm:$0xff] }
  0xfd   :  { %741 = vmatprep.mubr.f32.mxu0 %v6488_v0 }
 0x100   :  { %5187 = vmatmul.mubr.msk.f32.gmra.mrb[22].mxu0 %vm161_vm0, %v92_v20  ;;  %v898_v20 = vld [vmem:[%s7959_s0 + $0xf2] sm:$0xff] }
 0x101   :  { %747 = vmatprep.mubr.f32.mxu0 %v6488_v0 }
 0x104   :  { %5188 = vmatmul.mubr.msk.f32.gmra.mrb[24].mxu0 %vm161_vm0, %v93_v21  ;;  %v899_v21 = vld [vmem:[%s7959_s0 + $0xfa] sm:$0xf] }
 0x105   :  { %753 = vmatprep.mubr.f32.mxu0 %v6488_v0 }
 0x108   :  { %5189 = vmatmul.mubr.msk.f32.gmra.mrb[26].mxu0 %vm161_vm0, %v94_v22  ;;  %v1814_v22 = vld [vmem:[%s7960_s1 + $0x100] sm:$0xff] }
 0x109   :  { %759 = vmatprep.mubr.f32.mxu0 %v6488_v0 }
 0x10c   :  { %5190 = vmatmul.mubr.msk.f32.gmra.mrb[28].mxu0 %vm161_vm0, %v95_v23  ;;  %v1816_v23 = vld [vmem:[%s7960_s1 + $0x110] sm:$0xff] }
 0x10d   :  { %765 = vmatprep.mubr.f32.mxu0 %v6488_v0 }
 0x110   :  { %5191 = vmatmul.mubr.msk.f32.gmra.mrb[30].mxu0 %vm161_vm0, %v96_v24  ;;  %v1819_v24 = vld [vmem:[%s7960_s1 + $0x128] sm:$0xff] }
 0x111   :  { %771 = vmatprep.mubr.f32.mxu0 %v6488_v0 }
 0x114   :  { %5192 = vmatmul.mubr.msk.f32.gmra.mrb[32].mxu0 %vm161_vm0, %v97_v25  ;;  %v1821_v25 = vld [vmem:[%s7960_s1 + $0x138] sm:$0xff] }
 0x115   :  { %777 = vmatprep.mubr.f32.mxu0 %v6488_v0 }
 0x118   :  { %5193 = vmatmul.mubr.msk.f32.gmra.mrb[34].mxu0 %vm161_vm0, %v98_v26  ;;  %v1325_v26 = vld [vmem:[%s7959_s0 + $0x3] sm:$0xff] }
 0x119   :  { %783 = vmatprep.mubr.f32.mxu0 %v6488_v0 }
 0x11c   :  { %5194 = vmatmul.mubr.msk.f32.gmra.mrb[36].mxu0 %vm161_vm0, %v99_v27  ;;  %v5569_v27 = vpack.c.bf16 %v1816_v23, %v1814_v22  ;;  %v1798_v22 = vld [vmem:[%s7959_s0 + $0x84] sm:$0xff]  ;;  %v1799_v23 = vld [vmem:[%s7959_s0 + $0x8c] sm:$0xff] }
 0x11d   :  { %789 = vmatprep.mubr.f32.mxu0 %v6488_v0 }
 0x120   :  { %5195 = vmatmul.mubr.msk.f32.gmra.mrb[38].mxu0 %vm161_vm0, %v100_v28  ;;  %v5571_v28 = vpack.c.bf16 %v1821_v25, %v1819_v24  ;;  %v1800_v24 = vld [vmem:[%s7959_s0 + $0x94] sm:$0xff]  ;;  %v1801_v25 = vld [vmem:[%s7959_s0 + $0x9c] sm:$0xff] }
 0x121   :  { %795 = vmatprep.mubr.f32.mxu0 %v6488_v0 }
 0x124   :  { %5196 = vmatmul.mubr.msk.f32.gmra.mrb[40].mxu0 %vm161_vm0, %v101_v29  ;;  %v1818_v29 = vld [vmem:[%s7960_s1 + $0x120] sm:$0xff] }
 0x125   :  { %801 = vmatprep.mubr.f32.mxu0 %v6488_v0 }
 0x128   :  { %5197 = vmatmul.mubr.msk.f32.gmra.mrb[42].mxu0 %vm161_vm0, %v102_v30  ;;  %v1820_v30 = vld [vmem:[%s7960_s1 + $0x130] sm:$0xff] }
 0x129   :  { %807 = vmatprep.mubr.f32.mxu0 %v6488_v0 }
 0x12c   :  { %5198 = vmatmul.mubr.msk.f32.gmra.mrb[44].mxu0 %vm161_vm0, %v103_v31  ;;  %v1326_v31 = vld [vmem:[%s7959_s0 + $0xb] sm:$0xff] }
 0x12d   :  { %813 = vmatprep.mubr.f32.mxu0 %v6488_v0 }
 0x130   :  { %5199 = vmatmul.mubr.msk.f32.gmra.mrb[46].mxu0 %vm161_vm0, %v104_v32  ;;  %v5573_v32 = vpack.c.bf16 %v1820_v30, %v1818_v29  ;;  %v2633_v29 = vld [vmem:[#allocation5 + $0x138] sm:$0xff] }
 0x131   :  { %819 = vmatprep.mubr.f32.mxu0 %v6488_v0 }
 0x134   :  { %5200 = vmatmul.mubr.msk.f32.gmra.mrb[48].mxu0 %vm161_vm0, %v105_v33  ;;  %v1327_v33 = vld [vmem:[%s7959_s0 + $0x13] sm:$0xff] }
 0x135   :  { %825 = vmatprep.mubr.f32.mxu0 %v6488_v0 }
 0x138   :  { %5201 = vmatmul.mubr.msk.f32.gmra.mrb[50].mxu0 %vm161_vm0, %v106_v34  ;;  %v1328_v34 = vld [vmem:[%s7959_s0 + $0x1b] sm:$0xff] }
 0x139   :  { %831 = vmatprep.mubr.f32.mxu0 %v6488_v0 }
 0x13c   :  { %5202 = vmatmul.mubr.msk.f32.gmra.mrb[52].mxu0 %vm161_vm0, %v107_v35  ;;  %v1329_v35 = vld [vmem:[%s7959_s0 + $0x23] sm:$0xff] }
 0x13d   :  { %837 = vmatprep.mubr.f32.mxu0 %v6488_v0 }
 0x140   :  { %5203 = vmatmul.mubr.msk.f32.gmra.mrb[54].mxu0 %vm161_vm0, %v108_v36  ;;  %v1330_v36 = vld [vmem:[%s7959_s0 + $0x2b] sm:$0xff] }
 0x141   :  { %843 = vmatprep.mubr.f32.mxu0 %v6488_v0 }
 0x144   :  { %5204 = vmatmul.mubr.msk.f32.gmra.mrb[56].mxu0 %vm161_vm0, %v109_v37  ;;  %v1331_v37 = vld [vmem:[%s7959_s0 + $0x33] sm:$0xff] }
 0x145   :  { %849 = vmatprep.mubr.f32.mxu0 %v6488_v0 }
 0x148   :  { %5205 = vmatmul.mubr.msk.f32.gmra.mrb[58].mxu0 %vm161_vm0, %v110_v38  ;;  %v1332_v38 = vld [vmem:[%s7959_s0 + $0x3b] sm:$0xff] }
 0x149   :  { %855 = vmatprep.mubr.f32.mxu0 %v6488_v0 }
 0x14c   :  { %5206 = vmatmul.mubr.msk.f32.gmra.mrb[60].mxu0 %vm161_vm0, %v111_v39  ;;  %v1333_v39 = vld [vmem:[%s7959_s0 + $0x43] sm:$0xff] }
 0x14d   :  { %861 = vmatprep.mubr.f32.mxu0 %v6488_v0 }
 0x150   :  { %5207 = vmatmul.mubr.msk.f32.gmra.mrb[62].mxu0 %vm161_vm0, %v112_v40  ;;  %v1334_v40 = vld [vmem:[%s7959_s0 + $0x4b] sm:$0xff] }
 0x151   :  { %1068 = vmatprep.mubr.f32.mxu0 %v6488_v0 }
 0x154   :  { %5208 = vmatmul.mubr.msk.f32.vlgmr.msra.gmra.mrb[0].mxu0 %vm161_vm0, %v868_v45  ;;  %v1339_v45 = vld [vmem:[%s7959_s0 + $0x73] sm:$0xff] }
 0x155   :  { %5562 = vmatpush1.bf16.msra.mxu0 %v5561_v46  ;;  %1074 = vmatprep.mubr.f32.mxu0 %v6488_v0  ;;  %v1340_v46 = vld [vmem:[%s7959_s0 + $0x7b] sm:$0xff] }
 0x156   :  { %5564 = vmatprep.subr.bf16.mxu0 %v5563_v47  ;;  %v1341_v47 = vld [vmem:[%s7959_s0 + $0x83] sm:$0xff] }
 0x158   :  { %5209 = vmatmul.mubr.msk.f32.gmra.mrb[2].mxu0 %vm161_vm0, %v869_v52  ;;  %v1346_v52 = vld [vmem:[%s7959_s0 + $0xab] sm:$0xff] }
 0x159   :  { %1080 = vmatprep.mubr.f32.mxu0 %v6488_v0  ;;  %5566 = vmatpush1.bf16.msra.mxu0 %v5565_v53  ;;  %v1347_v53 = vld [vmem:[%s7959_s0 + $0xb3] sm:$0xff] }
 0x15a   :  { %5568 = vmatprep.subr.bf16.mxu0 %v5567_v54  ;;  %v1348_v54 = vld [vmem:[%s7959_s0 + $0xbb] sm:$0xff] }
 0x15c   :  { %5210 = vmatmul.mubr.msk.f32.gmra.mrb[4].mxu0 %vm161_vm0, %v870_v55  ;;  %v1349_v55 = vld [vmem:[%s7959_s0 + $0xc3] sm:$0xff] }
 0x15d   :  { %1086 = vmatprep.mubr.f32.mxu0 %v6488_v0 }
 0x160   :  { %5211 = vmatmul.mubr.msk.f32.gmra.mrb[6].mxu0 %vm161_vm0, %v871_v56  ;;  %v1350_v56 = vld [vmem:[%s7959_s0 + $0xcb] sm:$0xff] }
 0x161   :  { %1092 = vmatprep.mubr.f32.mxu0 %v6488_v0 }
 0x164   :  { %5212 = vmatmul.mubr.msk.f32.gmra.mrb[8].mxu0 %vm161_vm0, %v872_v57  ;;  %v1351_v57 = vld [vmem:[%s7959_s0 + $0xd3] sm:$0xff] }
 0x165   :  { %1098 = vmatprep.mubr.f32.mxu0 %v6488_v0 }
 0x168   :  { %5213 = vmatmul.mubr.msk.f32.gmra.mrb[10].mxu0 %vm161_vm0, %v873_v58  ;;  %v1352_v58 = vld [vmem:[%s7959_s0 + $0xdb] sm:$0xff] }
 0x169   :  { %1104 = vmatprep.mubr.f32.mxu0 %v6488_v0 }
 0x16c   :  { %5214 = vmatmul.mubr.msk.f32.gmra.mrb[12].mxu0 %vm161_vm0, %v874_v59  ;;  %v1353_v59 = vld [vmem:[%s7959_s0 + $0xe3] sm:$0xff] }
 0x16d   :  { %1110 = vmatprep.mubr.f32.mxu0 %v6488_v0 }
 0x170   :  { %5215 = vmatmul.mubr.msk.f32.gmra.mrb[14].mxu0 %vm161_vm0, %v875_v60  ;;  %v1354_v60 = vld [vmem:[%s7959_s0 + $0xeb] sm:$0xff] }
 0x171   :  { %1116 = vmatprep.mubr.f32.mxu0 %v6488_v0 }
 0x174   :  { %5216 = vmatmul.mubr.msk.f32.gmra.mrb[16].mxu0 %vm161_vm0, %v876_v61  ;;  %v1355_v61 = vld [vmem:[%s7959_s0 + $0xf3] sm:$0xff] }
 0x175   :  { %1122 = vmatprep.mubr.f32.mxu0 %v6488_v0 }
 0x178   :  { %5217 = vmatmul.mubr.msk.f32.gmra.mrb[18].mxu0 %vm161_vm0, %v877_v62  ;;  %v1356_v62 = vld [vmem:[%s7959_s0 + $0xfb] sm:$0xf] }
 0x179   :  { %1128 = vmatprep.mubr.f32.mxu0 %v6488_v0 }
 0x17c   :  { %5218 = vmatmul.mubr.msk.f32.gmra.mrb[20].mxu0 %vm161_vm0, %v878_v63  ;;  %v2627_v63 = vld [vmem:[#allocation5 + $0x108] sm:$0xff] }
 0x17d   :  { %1134 = vmatprep.mubr.f32.mxu0 %v6488_v0 }
 0x180   :  { %5219 = vmatmul.mubr.msk.f32.gmra.mrb[22].mxu0 %vm161_vm0, %v879_v1  ;;  %v2629_v1 = vld [vmem:[#allocation5 + $0x118] sm:$0xff] }
 0x181   :  { %1140 = vmatprep.mubr.f32.mxu0 %v6488_v0 }
 0x184   :  { %5220 = vmatmul.mubr.msk.f32.gmra.mrb[24].mxu0 %vm161_vm0, %v880_v2  ;;  %v2626_v2 = vld [vmem:[#allocation5 + $0x100] sm:$0xff] }
 0x185   :  { %1146 = vmatprep.mubr.f32.mxu0 %v6488_v0 }
 0x188   :  { %5221 = vmatmul.mubr.msk.f32.gmra.mrb[26].mxu0 %vm161_vm0, %v881_v3  ;;  %v1782_v3 = vld [vmem:[%s7959_s0 + $0x4] sm:$0xff] }
 0x189   :  { %1152 = vmatprep.mubr.f32.mxu0 %v6488_v0 }
 0x18c   :  { %5222 = vmatmul.mubr.msk.f32.gmra.mrb[28].mxu0 %vm161_vm0, %v882_v4  ;;  %v5575_v4 = vpack.c.bf16 %v2629_v1, %v2627_v63  ;;  %v2651_v63 = vld [vmem:[#allocation5 + $0x1c8] sm:$0xff]  ;;  %v2653_v1 = vld [vmem:[#allocation5 + $0x1d8] sm:$0xff] }
 0x18d   :  { %1158 = vmatprep.mubr.f32.mxu0 %v6488_v0 }
 0x18e   :  { %5576 = vmatprep.subr.bf16.mxu1 %v5575_v4  ;;  %v2652_v4 = vld [vmem:[#allocation5 + $0x1d0] sm:$0xff] }
 0x190   :  { %5223 = vmatmul.mubr.msk.f32.gmra.mrb[30].mxu0 %vm161_vm0, %v883_v5  ;;  %v2628_v5 = vld [vmem:[#allocation5 + $0x110] sm:$0xff] }
 0x191   :  { %1164 = vmatprep.mubr.f32.mxu0 %v6488_v0 }
 0x194   :  { %5224 = vmatmul.mubr.msk.f32.gmra.mrb[32].mxu0 %vm161_vm0, %v884_v6  ;;  %v5577_v6 = vpack.c.bf16 %v2628_v5, %v2626_v2  ;;  %v5599_v2 = vpack.c.bf16 %v2653_v1, %v2651_v63  ;;  %v2568_v1 = vld [vmem:[#allocation5 + $0x28] sm:$0xff] }
 0x195   :  { %1170 = vmatprep.mubr.f32.mxu0 %v6488_v0 }
 0x196   :  { %5578 = vmatpush1.bf16.msra.mxu1 %v5577_v6  ;;  %v1809_v6 = vld [vmem:[%s7959_s0 + $0xdc] sm:$0xff] }
 0x198   :  { %5225 = vmatmul.mubr.msk.f32.gmra.mrb[34].mxu0 %vm161_vm0, %v885_v7  ;;  %v1783_v7 = vld [vmem:[%s7959_s0 + $0xc] sm:$0xff] }
 0x199   :  { %1176 = vmatprep.mubr.f32.mxu0 %v6488_v0 }
 0x19c   :  { %5226 = vmatmul.mubr.msk.f32.gmra.mrb[36].mxu0 %vm161_vm0, %v886_v8  ;;  %v1784_v8 = vld [vmem:[%s7959_s0 + $0x14] sm:$0xff] }
 0x19d   :  { %1182 = vmatprep.mubr.f32.mxu0 %v6488_v0 }
 0x1a0   :  { %5227 = vmatmul.mubr.msk.f32.gmra.mrb[38].mxu0 %vm161_vm0, %v887_v9  ;;  %v1785_v9 = vld [vmem:[%s7959_s0 + $0x1c] sm:$0xff] }
 0x1a1   :  { %1188 = vmatprep.mubr.f32.mxu0 %v6488_v0 }
 0x1a4   :  { %5228 = vmatmul.mubr.msk.f32.gmra.mrb[40].mxu0 %vm161_vm0, %v888_v10  ;;  %v1786_v10 = vld [vmem:[%s7959_s0 + $0x24] sm:$0xff] }
 0x1a5   :  { %1194 = vmatprep.mubr.f32.mxu0 %v6488_v0 }
 0x1a8   :  { %5229 = vmatmul.mubr.msk.f32.gmra.mrb[42].mxu0 %vm161_vm0, %v889_v11  ;;  %v1787_v11 = vld [vmem:[%s7959_s0 + $0x2c] sm:$0xff] }
 0x1a9   :  { %1200 = vmatprep.mubr.f32.mxu0 %v6488_v0 }
 0x1ac   :  { %5230 = vmatmul.mubr.msk.f32.gmra.mrb[44].mxu0 %vm161_vm0, %v890_v12  ;;  %v1788_v12 = vld [vmem:[%s7959_s0 + $0x34] sm:$0xff] }
 0x1ad   :  { %1206 = vmatprep.mubr.f32.mxu0 %v6488_v0 }
 0x1b0   :  { %5231 = vmatmul.mubr.msk.f32.gmra.mrb[46].mxu0 %vm161_vm0, %v891_v13  ;;  %v1789_v13 = vld [vmem:[%s7959_s0 + $0x3c] sm:$0xff] }
 0x1b1   :  { %1212 = vmatprep.mubr.f32.mxu0 %v6488_v0 }
 0x1b4   :  { %5232 = vmatmul.mubr.msk.f32.gmra.mrb[48].mxu0 %vm161_vm0, %v892_v14  ;;  %v1790_v14 = vld [vmem:[%s7959_s0 + $0x44] sm:$0xff] }
 0x1b5   :  { %1218 = vmatprep.mubr.f32.mxu0 %v6488_v0 }
 0x1b8   :  { %5233 = vmatmul.mubr.msk.f32.gmra.mrb[50].mxu0 %vm161_vm0, %v893_v15  ;;  %v1791_v15 = vld [vmem:[%s7959_s0 + $0x4c] sm:$0xff] }
 0x1b9   :  { %1224 = vmatprep.mubr.f32.mxu0 %v6488_v0 }
 0x1bc   :  { %5234 = vmatmul.mubr.msk.f32.gmra.mrb[52].mxu0 %vm161_vm0, %v894_v16  ;;  %v1792_v16 = vld [vmem:[%s7959_s0 + $0x54] sm:$0xff] }
 0x1bd   :  { %1230 = vmatprep.mubr.f32.mxu0 %v6488_v0 }
 0x1c0   :  { %5235 = vmatmul.mubr.msk.f32.gmra.mrb[54].mxu0 %vm161_vm0, %v895_v17  ;;  %v1793_v17 = vld [vmem:[%s7959_s0 + $0x5c] sm:$0xff] }
 0x1c1   :  { %1236 = vmatprep.mubr.f32.mxu0 %v6488_v0 }
 0x1c4   :  { %5236 = vmatmul.mubr.msk.f32.gmra.mrb[56].mxu0 %vm161_vm0, %v896_v18  ;;  %v1794_v18 = vld [vmem:[%s7959_s0 + $0x64] sm:$0xff] }
 0x1c5   :  { %1242 = vmatprep.mubr.f32.mxu0 %v6488_v0 }
 0x1c8   :  { %5237 = vmatmul.mubr.msk.f32.gmra.mrb[58].mxu0 %vm161_vm0, %v897_v19  ;;  %v1795_v19 = vld [vmem:[%s7959_s0 + $0x6c] sm:$0xff] }
 0x1c9   :  { %1248 = vmatprep.mubr.f32.mxu0 %v6488_v0 }
 0x1cc   :  { %5238 = vmatmul.mubr.msk.f32.gmra.mrb[60].mxu0 %vm161_vm0, %v898_v20  ;;  %v1796_v20 = vld [vmem:[%s7959_s0 + $0x74] sm:$0xff] }
 0x1cd   :  { %1254 = vmatprep.mubr.f32.mxu0 %v6488_v0 }
 0x1d0   :  { %5239 = vmatmul.mubr.msk.f32.gmra.mrb[62].mxu0 %vm161_vm0, %v899_v21  ;;  %v1797_v21 = vld [vmem:[%s7959_s0 + $0x7c] sm:$0xff] }
 0x1d1   :  { %1525 = vmatprep.mubr.f32.mxu0 %v6488_v0 }
 0x1d4   :  { %5240 = vmatmul.mubr.msk.f32.vlgmr.msra.gmra.mrb[0].mxu0 %vm161_vm0, %v1325_v26  ;;  %v1802_v26 = vld [vmem:[%s7959_s0 + $0xa4] sm:$0xff] }
 0x1d5   :  { %5570 = vmatpush1.bf16.msra.mxu0 %v5569_v27  ;;  %1531 = vmatprep.mubr.f32.mxu0 %v6488_v0  ;;  %v1803_v27 = vld [vmem:[%s7959_s0 + $0xac] sm:$0xff] }
 0x1d6   :  { %5572 = vmatprep.subr.bf16.mxu0 %v5571_v28  ;;  %v2631_v28 = vld [vmem:[#allocation5 + $0x128] sm:$0xff] }
 0x1d7   :  { %v5579_v30 = vpack.c.bf16 %v2633_v29, %v2631_v28 }
 0x1d8   :  { %5241 = vmatmul.mubr.msk.f32.gmra.mrb[2].mxu0 %vm161_vm0, %v1326_v31  ;;  %v2630_v31 = vld [vmem:[#allocation5 + $0x120] sm:$0xff] }
 0x1d9   :  { %1537 = vmatprep.mubr.f32.mxu0 %v6488_v0  ;;  %5574 = vmatpush1.bf16.msra.mxu0 %v5573_v32  ;;  %v2632_v32 = vld [vmem:[#allocation5 + $0x130] sm:$0xff] }
 0x1da   :  { %5580 = vmatprep.subr.bf16.mxu1 %v5579_v30 }
 0x1dc   :  { %5242 = vmatmul.mubr.msk.f32.gmra.mrb[4].mxu0 %vm161_vm0, %v1327_v33  ;;  %v5581_v33 = vpack.c.bf16 %v2632_v32, %v2630_v31 }
 0x1dd   :  { %1543 = vmatprep.mubr.f32.mxu0 %v6488_v0 }
 0x1de   :  { %5582 = vmatpush1.bf16.msra.mxu1 %v5581_v33 }
 0x1e0   :  { %5243 = vmatmul.mubr.msk.f32.gmra.mrb[6].mxu0 %vm161_vm0, %v1328_v34  ;;  %v1804_v34 = vld [vmem:[%s7959_s0 + $0xb4] sm:$0xff] }
 0x1e1   :  { %1549 = vmatprep.mubr.f32.mxu0 %v6488_v0 }
 0x1e4   :  { %5244 = vmatmul.mubr.msk.f32.gmra.mrb[8].mxu0 %vm161_vm0, %v1329_v35  ;;  %v2635_v35 = vld [vmem:[#allocation5 + $0x148] sm:$0xff] }
 0x1e5   :  { %1555 = vmatprep.mubr.f32.mxu0 %v6488_v0 }
 0x1e8   :  { %5245 = vmatmul.mubr.msk.f32.gmra.mrb[10].mxu0 %vm161_vm0, %v1330_v36  ;;  %v2637_v36 = vld [vmem:[#allocation5 + $0x158] sm:$0xff] }
 0x1e9   :  { %1561 = vmatprep.mubr.f32.mxu0 %v6488_v0 }
 0x1ec   :  { %5246 = vmatmul.mubr.msk.f32.gmra.mrb[12].mxu0 %vm161_vm0, %v1331_v37  ;;  %v5583_v37 = vpack.c.bf16 %v2637_v36, %v2635_v35 }
 0x1ed   :  { %1567 = vmatprep.mubr.f32.mxu0 %v6488_v0 }
 0x1ee   :  { %5584 = vmatprep.subr.bf16.mxu1 %v5583_v37 }
 0x1f0   :  { %5247 = vmatmul.mubr.msk.f32.gmra.mrb[14].mxu0 %vm161_vm0, %v1332_v38  ;;  %v2634_v38 = vld [vmem:[#allocation5 + $0x140] sm:$0xff] }
 0x1f1   :  { %1573 = vmatprep.mubr.f32.mxu0 %v6488_v0 }
 0x1f4   :  { %5248 = vmatmul.mubr.msk.f32.gmra.mrb[16].mxu0 %vm161_vm0, %v1333_v39  ;;  %v2636_v39 = vld [vmem:[#allocation5 + $0x150] sm:$0xff] }
 0x1f5   :  { %1579 = vmatprep.mubr.f32.mxu0 %v6488_v0 }
 0x1f8   :  { %5249 = vmatmul.mubr.msk.f32.gmra.mrb[18].mxu0 %vm161_vm0, %v1334_v40  ;;  %v5585_v40 = vpack.c.bf16 %v2636_v39, %v2634_v38 }
 0x1f9   :  { %1585 = vmatprep.mubr.f32.mxu0 %v6488_v0 }
 0x1fa   :  { %5586 = vmatpush1.bf16.msra.mxu1 %v5585_v40 }
 0x1fc   :  { %5250 = vmatmul.mubr.msk.f32.gmra.mrb[20].mxu0 %vm161_vm0, %v1335_v41  ;;  %v1805_v41 = vld [vmem:[%s7959_s0 + $0xbc] sm:$0xff] }
 0x1fd   :  { %1591 = vmatprep.mubr.f32.mxu0 %v6488_v0 }
 0x200   :  { %5251 = vmatmul.mubr.msk.f32.gmra.mrb[22].mxu0 %vm161_vm0, %v1336_v42  ;;  %v2639_v42 = vld [vmem:[#allocation5 + $0x168] sm:$0xff] }
 0x201   :  { %1597 = vmatprep.mubr.f32.mxu0 %v6488_v0 }
 0x204   :  { %5252 = vmatmul.mubr.msk.f32.gmra.mrb[24].mxu0 %vm161_vm0, %v1337_v43  ;;  %v2641_v43 = vld [vmem:[#allocation5 + $0x178] sm:$0xff] }
 0x205   :  { %1603 = vmatprep.mubr.f32.mxu0 %v6488_v0 }
 0x208   :  { %5253 = vmatmul.mubr.msk.f32.gmra.mrb[26].mxu0 %vm161_vm0, %v1338_v44  ;;  %v5587_v44 = vpack.c.bf16 %v2641_v43, %v2639_v42 }
 0x209   :  { %1609 = vmatprep.mubr.f32.mxu0 %v6488_v0 }
 0x20a   :  { %5588 = vmatprep.subr.bf16.mxu1 %v5587_v44 }
 0x20c   :  { %5254 = vmatmul.mubr.msk.f32.gmra.mrb[28].mxu0 %vm161_vm0, %v1339_v45  ;;  %v2638_v45 = vld [vmem:[#allocation5 + $0x160] sm:$0xff] }
 0x20d   :  { %1615 = vmatprep.mubr.f32.mxu0 %v6488_v0 }
 0x210   :  { %5255 = vmatmul.mubr.msk.f32.gmra.mrb[30].mxu0 %vm161_vm0, %v1340_v46  ;;  %v2640_v46 = vld [vmem:[#allocation5 + $0x170] sm:$0xff] }
 0x211   :  { %1621 = vmatprep.mubr.f32.mxu0 %v6488_v0 }
 0x214   :  { %5256 = vmatmul.mubr.msk.f32.gmra.mrb[32].mxu0 %vm161_vm0, %v1341_v47  ;;  %v5589_v47 = vpack.c.bf16 %v2640_v46, %v2638_v45 }
 0x215   :  { %1627 = vmatprep.mubr.f32.mxu0 %v6488_v0 }
 0x216   :  { %5590 = vmatpush1.bf16.msra.mxu1 %v5589_v47 }
 0x218   :  { %5257 = vmatmul.mubr.msk.f32.gmra.mrb[34].mxu0 %vm161_vm0, %v1342_v48  ;;  %v1806_v48 = vld [vmem:[%s7959_s0 + $0xc4] sm:$0xff] }
 0x219   :  { %1633 = vmatprep.mubr.f32.mxu0 %v6488_v0 }
 0x21c   :  { %5258 = vmatmul.mubr.msk.f32.gmra.mrb[36].mxu0 %vm161_vm0, %v1343_v49  ;;  %v2643_v49 = vld [vmem:[#allocation5 + $0x188] sm:$0xff] }
 0x21d   :  { %1639 = vmatprep.mubr.f32.mxu0 %v6488_v0 }
 0x220   :  { %5259 = vmatmul.mubr.msk.f32.gmra.mrb[38].mxu0 %vm161_vm0, %v1344_v50  ;;  %v2645_v50 = vld [vmem:[#allocation5 + $0x198] sm:$0xff] }
 0x221   :  { %1645 = vmatprep.mubr.f32.mxu0 %v6488_v0 }
 0x224   :  { %5260 = vmatmul.mubr.msk.f32.gmra.mrb[40].mxu0 %vm161_vm0, %v1345_v51  ;;  %v5591_v51 = vpack.c.bf16 %v2645_v50, %v2643_v49 }
 0x225   :  { %1651 = vmatprep.mubr.f32.mxu0 %v6488_v0 }
 0x226   :  { %5592 = vmatprep.subr.bf16.mxu1 %v5591_v51 }
 0x228   :  { %5261 = vmatmul.mubr.msk.f32.gmra.mrb[42].mxu0 %vm161_vm0, %v1346_v52  ;;  %v2642_v52 = vld [vmem:[#allocation5 + $0x180] sm:$0xff] }
 0x229   :  { %1657 = vmatprep.mubr.f32.mxu0 %v6488_v0 }
 0x22c   :  { %5262 = vmatmul.mubr.msk.f32.gmra.mrb[44].mxu0 %vm161_vm0, %v1347_v53  ;;  %v2644_v53 = vld [vmem:[#allocation5 + $0x190] sm:$0xff] }
 0x22d   :  { %1663 = vmatprep.mubr.f32.mxu0 %v6488_v0 }
 0x230   :  { %5263 = vmatmul.mubr.msk.f32.gmra.mrb[46].mxu0 %vm161_vm0, %v1348_v54  ;;  %v5593_v54 = vpack.c.bf16 %v2644_v53, %v2642_v52 }
 0x231   :  { %1669 = vmatprep.mubr.f32.mxu0 %v6488_v0 }
 0x232   :  { %5594 = vmatpush1.bf16.msra.mxu1 %v5593_v54 }
 0x234   :  { %5264 = vmatmul.mubr.msk.f32.gmra.mrb[48].mxu0 %vm161_vm0, %v1349_v55  ;;  %v1807_v55 = vld [vmem:[%s7959_s0 + $0xcc] sm:$0xff] }
 0x235   :  { %1675 = vmatprep.mubr.f32.mxu0 %v6488_v0 }
 0x238   :  { %5265 = vmatmul.mubr.msk.f32.gmra.mrb[50].mxu0 %vm161_vm0, %v1350_v56  ;;  %v2647_v56 = vld [vmem:[#allocation5 + $0x1a8] sm:$0xff] }
 0x239   :  { %1681 = vmatprep.mubr.f32.mxu0 %v6488_v0 }
 0x23c   :  { %5266 = vmatmul.mubr.msk.f32.gmra.mrb[52].mxu0 %vm161_vm0, %v1351_v57  ;;  %v2649_v57 = vld [vmem:[#allocation5 + $0x1b8] sm:$0xff] }
 0x23d   :  { %1687 = vmatprep.mubr.f32.mxu0 %v6488_v0 }
 0x240   :  { %5267 = vmatmul.mubr.msk.f32.gmra.mrb[54].mxu0 %vm161_vm0, %v1352_v58  ;;  %v5595_v58 = vpack.c.bf16 %v2649_v57, %v2647_v56 }
 0x241   :  { %1693 = vmatprep.mubr.f32.mxu0 %v6488_v0 }
 0x242   :  { %5596 = vmatprep.subr.bf16.mxu1 %v5595_v58 }
 0x244   :  { %5268 = vmatmul.mubr.msk.f32.gmra.mrb[56].mxu0 %vm161_vm0, %v1353_v59  ;;  %v2646_v59 = vld [vmem:[#allocation5 + $0x1a0] sm:$0xff] }
 0x245   :  { %1699 = vmatprep.mubr.f32.mxu0 %v6488_v0 }
 0x248   :  { %5269 = vmatmul.mubr.msk.f32.gmra.mrb[58].mxu0 %vm161_vm0, %v1354_v60  ;;  %v2648_v60 = vld [vmem:[#allocation5 + $0x1b0] sm:$0xff] }
 0x249   :  { %1705 = vmatprep.mubr.f32.mxu0 %v6488_v0 }
 0x24c   :  { %5270 = vmatmul.mubr.msk.f32.gmra.mrb[60].mxu0 %vm161_vm0, %v1355_v61  ;;  %v5597_v61 = vpack.c.bf16 %v2648_v60, %v2646_v59  ;;  %v2563_v59 = vld [vmem:[#allocation5] sm:$0xff]  ;;  %v2565_v60 = vld [vmem:[#allocation5 + $0x10] sm:$0xff] }
 0x24d   :  { %1711 = vmatprep.mubr.f32.mxu0 %v6488_v0 }
 0x24e   :  { %5598 = vmatpush1.bf16.msra.mxu1 %v5597_v61 }
 0x24f   :  { %5600 = vmatprep.subr.bf16.mxu1 %v5599_v2  ;;  %v2570_v2 = vld [vmem:[#allocation5 + $0x38] sm:$0xff] }
 0x250   :  { %5271 = vmatmul.mubr.msk.f32.gmra.mrb[62].mxu0 %vm161_vm0, %v1356_v62  ;;  %v1808_v62 = vld [vmem:[%s7959_s0 + $0xd4] sm:$0xff] }
 0x251   :  { %1982 = vmatprep.mubr.f32.mxu0 %v6488_v0 }
 0x254   :  { %5272 = vmatmul.mubr.msk.f32.vlgmr.msra.gmra.mrb[0].mxu0 %vm161_vm0, %v1782_v3  ;;  %v2650_v3 = vld [vmem:[#allocation5 + $0x1c0] sm:$0xff] }
 0x255   :  { %1988 = vmatprep.mubr.f32.mxu0 %v6488_v0  ;;  %v5601_v5 = vpack.c.bf16 %v2652_v4, %v2650_v3 }
 0x257   :  { %5602 = vmatpush1.bf16.msra.mxu1 %v5601_v5 }
 0x258   :  { %5273 = vmatmul.mubr.msk.f32.gmra.mrb[2].mxu0 %vm161_vm0, %v1783_v7  ;;  %v2655_v7 = vld [vmem:[#allocation5 + $0x1e8] sm:$0xff] }
 0x259   :  { %1994 = vmatprep.mubr.f32.mxu0 %v6488_v0 }
 0x25c   :  { %5274 = vmatmul.mubr.msk.f32.gmra.mrb[4].mxu0 %vm161_vm0, %v1784_v8  ;;  %v2657_v8 = vld [vmem:[#allocation5 + $0x1f8] sm:$0xff] }
 0x25d   :  { %2000 = vmatprep.mubr.f32.mxu0 %v6488_v0 }
 0x260   :  { %5275 = vmatmul.mubr.msk.f32.gmra.mrb[6].mxu0 %vm161_vm0, %v1785_v9  ;;  %v5603_v9 = vpack.c.bf16 %v2657_v8, %v2655_v7  ;;  %v5609_v7 = vpack.c.bf16 %v2565_v60, %v2563_v59  ;;  %v2579_v59 = vld [vmem:[#allocation5 + $0x80] sm:$0xff]  ;;  %v2581_v60 = vld [vmem:[#allocation5 + $0x90] sm:$0xff] }
 0x261   :  { %2006 = vmatprep.mubr.f32.mxu0 %v6488_v0 }
 0x262   :  { %5604 = vmatprep.subr.bf16.mxu1 %v5603_v9  ;;  %v5611_v9 = vpack.c.bf16 %v2570_v2, %v2568_v1  ;;  %v2584_v2 = vld [vmem:[#allocation5 + $0xa8] sm:$0xff] }
 0x264   :  { %5276 = vmatmul.mubr.msk.f32.gmra.mrb[8].mxu0 %vm161_vm0, %v1786_v10  ;;  %v2654_v10 = vld [vmem:[#allocation5 + $0x1e0] sm:$0xff] }
 0x265   :  { %2012 = vmatprep.mubr.f32.mxu0 %v6488_v0 }
 0x268   :  { %5277 = vmatmul.mubr.msk.f32.gmra.mrb[10].mxu0 %vm161_vm0, %v1787_v11  ;;  %v2656_v11 = vld [vmem:[#allocation5 + $0x1f0] sm:$0xff] }
 0x269   :  { %2018 = vmatprep.mubr.f32.mxu0 %v6488_v0 }
 0x26c   :  { %5278 = vmatmul.mubr.msk.f32.gmra.mrb[12].mxu0 %vm161_vm0, %v1788_v12  ;;  %v5605_v12 = vpack.c.bf16 %v2656_v11, %v2654_v10  ;;  %v2567_v10 = vld [vmem:[#allocation5 + $0x20] sm:$0xff]  ;;  %v2569_v11 = vld [vmem:[#allocation5 + $0x30] sm:$0xff] }
 0x26d   :  { %2024 = vmatprep.mubr.f32.mxu0 %v6488_v0 }
 0x26e   :  { %5606 = vmatpush1.bf16.msra.mxu1 %v5605_v12 }
 0x270   :  { %5279 = vmatmul.mubr.msk.f32.gmra.mrb[14].mxu0 %vm161_vm0, %v1789_v13  ;;  %v1810_v13 = vld [vmem:[%s7959_s0 + $0xe4] sm:$0xff] }
 0x271   :  { %2030 = vmatprep.mubr.f32.mxu0 %v6488_v0 }
 0x274   :  { %5280 = vmatmul.mubr.msk.f32.gmra.mrb[16].mxu0 %vm161_vm0, %v1790_v14  ;;  %v1811_v14 = vld [vmem:[%s7959_s0 + $0xec] sm:$0xff] }
 0x275   :  { %2036 = vmatprep.mubr.f32.mxu0 %v6488_v0 }
 0x278   :  { %5281 = vmatmul.mubr.msk.f32.gmra.mrb[18].mxu0 %vm161_vm0, %v1791_v15  ;;  %v1812_v15 = vld [vmem:[%s7959_s0 + $0xf4] sm:$0xff] }
 0x279   :  { %2042 = vmatprep.mubr.f32.mxu0 %v6488_v0 }
 0x27c   :  { %5282 = vmatmul.mubr.msk.f32.gmra.mrb[20].mxu0 %vm161_vm0, %v1792_v16  ;;  %v1813_v16 = vld [vmem:[%s7959_s0 + $0xfc] sm:$0xf] }
 0x27d   :  { %2048 = vmatprep.mubr.f32.mxu0 %v6488_v0 }
 0x280   :  { %5283 = vmatmul.mubr.msk.f32.gmra.mrb[22].mxu0 %vm161_vm0, %v1793_v17  ;;  %v2564_v17 = vld [vmem:[#allocation5 + $0x8] sm:$0xff] }
 0x281   :  { %2054 = vmatprep.mubr.f32.mxu0 %v6488_v0 }
 0x284   :  { %5284 = vmatmul.mubr.msk.f32.gmra.mrb[24].mxu0 %vm161_vm0, %v1794_v18  ;;  %v2566_v18 = vld [vmem:[#allocation5 + $0x18] sm:$0xff] }
 0x285   :  { %2060 = vmatprep.mubr.f32.mxu0 %v6488_v0 }
 0x288   :  { %5285 = vmatmul.mubr.msk.f32.gmra.mrb[26].mxu0 %vm161_vm0, %v1795_v19  ;;  %v5607_v19 = vpack.c.bf16 %v2566_v18, %v2564_v17  ;;  %v2574_v17 = vld [vmem:[#allocation5 + $0x58] sm:$0xff] }
 0x289   :  { %2066 = vmatprep.mubr.f32.mxu0 %v6488_v0 }
 0x28a   :  { %5608 = vmatprep.subr.bf16.mxu1 %v5607_v19 }
 0x28c   :  { %5286 = vmatmul.mubr.msk.f32.gmra.mrb[28].mxu0 %vm161_vm0, %v1796_v20 }
 0x28d   :  { %2072 = vmatprep.mubr.f32.mxu0 %v6488_v0 }
 0x290   :  { %5287 = vmatmul.mubr.msk.f32.gmra.mrb[30].mxu0 %vm161_vm0, %v1797_v21 }
 0x291   :  { %2078 = vmatprep.mubr.f32.mxu0 %v6488_v0 }
 0x294   :  { %5288 = vmatmul.mubr.msk.f32.gmra.mrb[32].mxu0 %vm161_vm0, %v1798_v22  ;;  %v7519_v22 = vld [vmem:[%s7965_s6] ss:$0 sm:$0xff] }
 0x295   :  { %2084 = vmatprep.mubr.f32.mxu0 %v6488_v0 }
 0x298   :  { %5289 = vmatmul.mubr.msk.f32.gmra.mrb[34].mxu0 %vm161_vm0, %v1799_v23 }
 0x299   :  { %2090 = vmatprep.mubr.f32.mxu0 %v6488_v0 }
 0x29c   :  { %5290 = vmatmul.mubr.msk.f32.gmra.mrb[36].mxu0 %vm161_vm0, %v1800_v24 }
 0x29d   :  { %2096 = vmatprep.mubr.f32.mxu0 %v6488_v0 }
 0x2a0   :  { %5291 = vmatmul.mubr.msk.f32.gmra.mrb[38].mxu0 %vm161_vm0, %v1801_v25 }
 0x2a1   :  { %2102 = vmatprep.mubr.f32.mxu0 %v6488_v0 }
 0x2a4   :  { %5292 = vmatmul.mubr.msk.f32.gmra.mrb[40].mxu0 %vm161_vm0, %v1802_v26 }
 0x2a5   :  { %2108 = vmatprep.mubr.f32.mxu0 %v6488_v0 }
 0x2a8   :  { %5293 = vmatmul.mubr.msk.f32.gmra.mrb[42].mxu0 %vm161_vm0, %v1803_v27 }
 0x2a9   :  { %2114 = vmatprep.mubr.f32.mxu0 %v6488_v0 }
 0x2ac   :  { %5294 = vmatmul.mubr.msk.f32.gmra.mrb[44].mxu0 %vm161_vm0, %v1804_v34 }
 0x2ad   :  { %2120 = vmatprep.mubr.f32.mxu0 %v6488_v0 }
 0x2b0   :  { %5295 = vmatmul.mubr.msk.f32.gmra.mrb[46].mxu0 %vm161_vm0, %v1805_v41 }
 0x2b1   :  { %2126 = vmatprep.mubr.f32.mxu0 %v6488_v0 }
 0x2b4   :  { %5296 = vmatmul.mubr.msk.f32.gmra.mrb[48].mxu0 %vm161_vm0, %v1806_v48 }
 0x2b5   :  { %2132 = vmatprep.mubr.f32.mxu0 %v6488_v0 }
 0x2b8   :  { %5297 = vmatmul.mubr.msk.f32.gmra.mrb[50].mxu0 %vm161_vm0, %v1807_v55 }
 0x2b9   :  { %2138 = vmatprep.mubr.f32.mxu0 %v6488_v0 }
 0x2bc   :  { %5298 = vmatmul.mubr.msk.f32.gmra.mrb[52].mxu0 %vm161_vm0, %v1808_v62 }
 0x2bd   :  { %2144 = vmatprep.mubr.f32.mxu0 %v6488_v0 }
 0x2c0   :  { %5299 = vmatmul.mubr.msk.f32.gmra.mrb[54].mxu0 %vm161_vm0, %v1809_v6 }
 0x2c1   :  { %2150 = vmatprep.mubr.f32.mxu0 %v6488_v0 }
 0x2c4   :  { %5300 = vmatmul.mubr.msk.f32.gmra.mrb[56].mxu0 %vm161_vm0, %v1810_v13 }
 0x2c5   :  { %2156 = vmatprep.mubr.f32.mxu0 %v6488_v0 }
 0x2c8   :  { %5301 = vmatmul.mubr.msk.f32.gmra.mrb[58].mxu0 %vm161_vm0, %v1811_v14 }
 0x2c9   :  { %2162 = vmatprep.mubr.f32.mxu0 %v6488_v0 }
 0x2cc   :  { %5302 = vmatmul.mubr.msk.f32.gmra.mrb[60].mxu0 %vm161_vm0, %v1812_v15 }
 0x2cd   :  { %2168 = vmatprep.mubr.f32.mxu0 %v6488_v0 }
 0x2d0   :  { %5303 = vmatmul.mubr.msk.f32.gmra.mrb[62].mxu0 %vm161_vm0, %v1813_v16  ;;  %v2572_v16 = vld [vmem:[#allocation5 + $0x48] sm:$0xff] }
 0x327   :  { %v1984_v20 = vpop.f32.mrb[0].mxu0 }
 0x328   :  { %v1986_v21 = vpop.f32.mrb[1].mxu0 }
 0x329   :  { %v2239_v23 = vmax.f32 %v1984_v20, %v1986_v21 }
 0x32b   :  { %v2276_v24 = vadd.f32 %v7519_v22, %v2239_v23  ;;  %v1990_v25 = vpop.f32.mrb[2].mxu0  ;;  %v5613_v23 = vpack.c.bf16 %v2569_v11, %v2567_v10 }
 0x32c   :  { %v1992_v26 = vpop.f32.mrb[3].mxu0 }
 0x32d   :  { %v2240_v27 = vmax.f32 %v1990_v25, %v1992_v26  ;;  %v2308_v28 = vmax.f32 %v2276_v24, 0.0  ;;  %v5615_v25 = vpack.c.bf16 %v2574_v17, %v2572_v16  ;;  %v2571_v26 = vld [vmem:[#allocation5 + $0x40] sm:$0xff] }
 0x32f   :  { %v2277_v29 = vadd.f32 %v7519_v22, %v2240_v27  ;;  %v1996_v30 = vpop.f32.mrb[4].mxu0  ;;  %v2373_v34 = vrot.slane %v2308_v28, 1  ;;  %v2573_v27 = vld [vmem:[#allocation5 + $0x50] sm:$0xff] }
 0x330   :  { %v1998_v31 = vpop.f32.mrb[5].mxu0 }
 0x331   :  { %v2309_v32 = vmax.f32 %v2277_v29, 0.0  ;;  %v2241_v33 = vmax.f32 %v1996_v30, %v1998_v31 }
 0x333   :  { %v2374_v35 = vrot.slane %v2309_v32, 1  ;;  %v2278_v36 = vadd.f32 %v7519_v22, %v2241_v33  ;;  %v2002_v37 = vpop.f32.mrb[6].mxu0  ;;  %v2578_v33 = vld [vmem:[#allocation5 + $0x78] sm:$0xff] }
 0x334   :  { %v2004_v38 = vpop.f32.mrb[7].mxu0 }
 0x335   :  { %v2375_v39 = vsel %vm2372_vm1, %v2373_v34, %v2374_v35  ;;  %v2310_v40 = vmax.f32 %v2278_v36, 0.0  ;;  %v2242_v41 = vmax.f32 %v2002_v37, %v2004_v38  ;;  %v5617_v38 = vpack.c.bf16 %v2573_v27, %v2571_v26 }
 0x336   :  { %v7525_v42 = vmax.f32 %v2308_v28, %v2375_v39 }
 0x337   :  { %v2376_v43 = vrot.slane %v2310_v40, 1  ;;  %v2279_v44 = vadd.f32 %v7519_v22, %v2242_v41  ;;  %v2008_v45 = vpop.f32.mrb[8].mxu0  ;;  %v2575_v41 = vld [vmem:[#allocation5 + $0x60] sm:$0xff] }
 0x338   :  { %2500 = vst [vmem:[#allocation2] sm:$0xff] %v7525_v42  ;;  %v2010_v46 = vpop.f32.mrb[9].mxu0 }
 0x339   :  { %v2377_v47 = vsel %vm2372_vm1, %v2374_v35, %v2376_v43  ;;  %v2311_v48 = vmax.f32 %v2279_v44, 0.0  ;;  %v2243_v49 = vmax.f32 %v2008_v45, %v2010_v46 }
 0x33a   :  { %v7530_v50 = vmax.f32 %v2309_v32, %v2377_v47  ;;  %v2576_v32 = vld [vmem:[#allocation5 + $0x68] sm:$0xff] }
 0x33b   :  { %v2378_v51 = vrot.slane %v2311_v48, 1  ;;  %v2280_v52 = vadd.f32 %v7519_v22, %v2243_v49  ;;  %v2014_v53 = vpop.f32.mrb[10].mxu0  ;;  %v2582_v49 = vld [vmem:[#allocation5 + $0x98] sm:$0xff] }
 0x33c   :  { %2501 = vst [vmem:[#allocation2 + $0x8] sm:$0xff] %v7530_v50  ;;  %v2016_v54 = vpop.f32.mrb[11].mxu0 }
 0x33d   :  { %v2379_v55 = vsel %vm2372_vm1, %v2376_v43, %v2378_v51  ;;  %v2312_v56 = vmax.f32 %v2280_v52, 0.0  ;;  %v2244_v57 = vmax.f32 %v2014_v53, %v2016_v54  ;;  %v2577_v43 = vld [vmem:[#allocation5 + $0x70] sm:$0xff] }
 0x33e   :  { %v7535_v58 = vmax.f32 %v2310_v40, %v2379_v55  ;;  %v5619_v40 = vpack.c.bf16 %v2578_v33, %v2576_v32  ;;  %v5621_v55 = vpack.c.bf16 %v2577_v43, %v2575_v41 }
 0x33f   :  { %v2380_v61 = vrot.slane %v2312_v56, 1  ;;  %v2281_v62 = vadd.f32 %v7519_v22, %v2244_v57  ;;  %v2020_v63 = vpop.f32.mrb[12].mxu0 }
 0x340   :  { %2502 = vst [vmem:[#allocation2 + $0x10] sm:$0xff] %v7535_v58  ;;  %v2022_v3 = vpop.f32.mrb[13].mxu0 }
 0x341   :  { %v2381_v4 = vsel %vm2372_vm1, %v2378_v51, %v2380_v61  ;;  %v2313_v5 = vmax.f32 %v2281_v62, 0.0  ;;  %v2245_v6 = vmax.f32 %v2020_v63, %v2022_v3  ;;  %v2586_v3 = vld [vmem:[#allocation5 + $0xb8] sm:$0xff] }
 0x342   :  { %v7540_v8 = vmax.f32 %v2311_v48, %v2381_v4  ;;  %v2580_v48 = vld [vmem:[#allocation5 + $0x88] sm:$0xff]  ;;  %v5627_v11 = vpack.c.bf16 %v2586_v3, %v2584_v2 }
 0x343   :  { %v2382_v12 = vrot.slane %v2313_v5, 1  ;;  %v2282_v13 = vadd.f32 %v7519_v22, %v2245_v6  ;;  %v2026_v14 = vpop.f32.mrb[14].mxu0  ;;  %v2595_v15 = vld [vmem:[#allocation2 + $0x2] sm:$0xff]  ;;  %v5623_v57 = vpack.c.bf16 %v2582_v49, %v2580_v48 }
 0x344   :  { %2503 = vst [vmem:[#allocation2 + $0x18] sm:$0xff] %v7540_v8  ;;  %v2028_v18 = vpop.f32.mrb[15].mxu0  ;;  %2723 = vmatmul.mubr.f32.vlgmr.msra.gmra.mrb[0].mxu1 %v2595_v15 }
 0x345   :  { %v2383_v19 = vsel %vm2372_vm1, %v2380_v61, %v2382_v12  ;;  %v2314_v20 = vmax.f32 %v2282_v13, 0.0  ;;  %v2246_v21 = vmax.f32 %v2026_v14, %v2028_v18  ;;  %5610 = vmatpush1.bf16.msra.mxu1 %v5609_v7  ;;  %2728 = vmatprep.mubr.f32.mxu1 %v6488_v0  ;;  %v2585_v13 = vld [vmem:[#allocation5 + $0xb0] sm:$0xff]  ;;  %v2588_v18 = vld [vmem:[#allocation5 + $0xc8] sm:$0xff] }
 0x346   :  { %v7546_v24 = vmax.f32 %v2312_v56, %v2383_v19  ;;  %5612 = vmatprep.subr.bf16.mxu1 %v5611_v9  ;;  %v5625_v9 = vpack.c.bf16 %v2581_v60, %v2579_v59  ;;  %v2590_v19 = vld [vmem:[#allocation5 + $0xd8] sm:$0xff] }
 0x347   :  { %v2384_v28 = vrot.slane %v2314_v20, 1  ;;  %v2283_v29 = vadd.f32 %v7519_v22, %v2246_v21  ;;  %v2032_v30 = vpop.f32.mrb[16].mxu0  ;;  %v2596_v31 = vld [vmem:[#allocation2 + $0xa] sm:$0xff] }
 0x348   :  { %2504 = vst [vmem:[#allocation2 + $0x20] sm:$0xff] %v7546_v24  ;;  %v2034_v34 = vpop.f32.mrb[17].mxu0  ;;  %2729 = vmatmul.mubr.f32.gmra.mrb[2].mxu1 %v2596_v31 }
 0x349   :  { %v2385_v35 = vsel %vm2372_vm1, %v2382_v12, %v2384_v28  ;;  %v2315_v36 = vmax.f32 %v2283_v29, 0.0  ;;  %v2247_v37 = vmax.f32 %v2032_v30, %v2034_v34  ;;  %2734 = vmatprep.mubr.f32.mxu1 %v6488_v0  ;;  %5614 = vmatpush1.bf16.msra.mxu1 %v5613_v23  ;;  %v2583_v12 = vld [vmem:[#allocation5 + $0xa0] sm:$0xff]  ;;  %v2589_v30 = vld [vmem:[#allocation5 + $0xd0] sm:$0xff] }
 0x34a   :  { %v7552_v39 = vmax.f32 %v2313_v5, %v2385_v35  ;;  %5616 = vmatprep.subr.bf16.mxu1 %v5615_v25  ;;  %v5629_v26 = vpack.c.bf16 %v2585_v13, %v2583_v12  ;;  %v2587_v29 = vld [vmem:[#allocation5 + $0xc0] sm:$0xff]  ;;  %v2592_v35 = vld [vmem:[#allocation5 + $0xe8] sm:$0xff] }
 0x34b   :  { %v2386_v44 = vrot.slane %v2315_v36, 1  ;;  %v2284_v45 = vadd.f32 %v7519_v22, %v2247_v37  ;;  %v2038_v46 = vpop.f32.mrb[18].mxu0  ;;  %v2597_v47 = vld [vmem:[#allocation2 + $0x12] sm:$0xff]  ;;  %v5633_v43 = vpack.c.bf16 %v2589_v30, %v2587_v29 }
 0x34c   :  { %2505 = vst [vmem:[#allocation2 + $0x28] sm:$0xff] %v7552_v39  ;;  %v2040_v51 = vpop.f32.mrb[19].mxu0  ;;  %2735 = vmatmul.mubr.f32.gmra.mrb[4].mxu1 %v2597_v47  ;;  %v2593_v47 = vld [vmem:[#allocation5 + $0xf0] sm:$0xff] }
 0x34d   :  { %v2387_v52 = vsel %vm2372_vm1, %v2384_v28, %v2386_v44  ;;  %v2316_v53 = vmax.f32 %v2284_v45, 0.0  ;;  %v2248_v54 = vmax.f32 %v2038_v46, %v2040_v51  ;;  %2740 = vmatprep.mubr.f32.mxu1 %v6488_v0  ;;  %5618 = vmatpush1.bf16.msra.mxu1 %v5617_v38  ;;  %v5631_v28 = vpack.c.bf16 %v2590_v19, %v2588_v18  ;;  %v2591_v46 = vld [vmem:[#allocation5 + $0xe0] sm:$0xff] }
 0x34e   :  { %v7558_v56 = vmax.f32 %v2314_v20, %v2387_v52  ;;  %5620 = vmatprep.subr.bf16.mxu1 %v5619_v40 }
 0x34f   :  { %v2388_v61 = vrot.slane %v2316_v53, 1  ;;  %v2285_v62 = vadd.f32 %v7519_v22, %v2248_v54  ;;  %v2044_v63 = vpop.f32.mrb[20].mxu0  ;;  %v2598_v1 = vld [vmem:[#allocation2 + $0x1a] sm:$0xff] }
 0x350   :  { %2506 = vst [vmem:[#allocation2 + $0x30] sm:$0xff] %v7558_v56  ;;  %v2046_v4 = vpop.f32.mrb[21].mxu0  ;;  %2741 = vmatmul.mubr.f32.gmra.mrb[6].mxu1 %v2598_v1  ;;  %v3194_v54 = vld [vmem:[#allocation5 + $0x218] sm:$0xff] }
 0x351   :  { %v2389_v5 = vsel %vm2372_vm1, %v2386_v44, %v2388_v61  ;;  %v2317_v6 = vmax.f32 %v2285_v62, 0.0  ;;  %v2249_v7 = vmax.f32 %v2044_v63, %v2046_v4  ;;  %2746 = vmatprep.mubr.f32.mxu1 %v6488_v0  ;;  %5622 = vmatpush1.bf16.msra.mxu1 %v5621_v55 }
 0x352   :  { %v7564_v10 = vmax.f32 %v2315_v36, %v2389_v5  ;;  %5624 = vmatprep.subr.bf16.mxu1 %v5623_v57  ;;  %v2594_v36 = vld [vmem:[#allocation5 + $0xf8] sm:$0xff] }
 0x353   :  { %v2390_v14 = vrot.slane %v2317_v6, 1  ;;  %v2286_v15 = vadd.f32 %v7519_v22, %v2249_v7  ;;  %v2050_v16 = vpop.f32.mrb[22].mxu0  ;;  %v2599_v17 = vld [vmem:[#allocation2 + $0x22] sm:$0xff]  ;;  %v5635_v45 = vpack.c.bf16 %v2594_v36, %v2592_v35 }
 0x354   :  { %2507 = vst [vmem:[#allocation2 + $0x38] sm:$0xff] %v7564_v10  ;;  %v2052_v20 = vpop.f32.mrb[23].mxu0  ;;  %2747 = vmatmul.mubr.f32.gmra.mrb[8].mxu1 %v2599_v17 }
 0x355   :  { %v2391_v21 = vsel %vm2372_vm1, %v2388_v61, %v2390_v14  ;;  %v2318_v23 = vmax.f32 %v2286_v15, 0.0  ;;  %v2250_v25 = vmax.f32 %v2050_v16, %v2052_v20  ;;  %2752 = vmatprep.mubr.f32.mxu1 %v6488_v0  ;;  %5626 = vmatpush1.bf16.msra.mxu1 %v5625_v9  ;;  %v5637_v61 = vpack.c.bf16 %v2593_v47, %v2591_v46 }
 0x356   :  { %v7570_v27 = vmax.f32 %v2316_v53, %v2391_v21  ;;  %5628 = vmatprep.subr.bf16.mxu1 %v5627_v11  ;;  %v3192_v53 = vld [vmem:[#allocation5 + $0x208] sm:$0xff] }
 0x357   :  { %v2392_v31 = vrot.slane %v2318_v23, 1  ;;  %v2287_v32 = vadd.f32 %v7519_v22, %v2250_v25  ;;  %v2056_v33 = vpop.f32.mrb[24].mxu0  ;;  %v2600_v34 = vld [vmem:[#allocation2 + $0x2a] sm:$0xff]  ;;  %v5639_v63 = vpack.c.bf16 %v3194_v54, %v3192_v53 }
 0x358   :  { %2508 = vst [vmem:[#allocation2 + $0x40] sm:$0xff] %v7570_v27  ;;  %v2058_v37 = vpop.f32.mrb[25].mxu0  ;;  %2753 = vmatmul.mubr.f32.gmra.mrb[10].mxu1 %v2600_v34 }
 0x359   :  { %v2393_v38 = vsel %vm2372_vm1, %v2390_v14, %v2392_v31  ;;  %v2319_v40 = vmax.f32 %v2287_v32, 0.0  ;;  %v2251_v41 = vmax.f32 %v2056_v33, %v2058_v37  ;;  %2758 = vmatprep.mubr.f32.mxu1 %v6488_v0  ;;  %5630 = vmatpush1.bf16.msra.mxu1 %v5629_v26 }
 0x35a   :  { %v7576_v44 = vmax.f32 %v2317_v6, %v2393_v38  ;;  %5632 = vmatprep.subr.bf16.mxu1 %v5631_v28 }
 0x35b   :  { %v2394_v48 = vrot.slane %v2319_v40, 1  ;;  %v2288_v49 = vadd.f32 %v7519_v22, %v2251_v41  ;;  %v2062_v51 = vpop.f32.mrb[26].mxu0  ;;  %v2601_v52 = vld [vmem:[#allocation2 + $0x32] sm:$0xff] }
 0x35c   :  { %2509 = vst [vmem:[#allocation2 + $0x48] sm:$0xff] %v7576_v44  ;;  %v2064_v55 = vpop.f32.mrb[27].mxu0  ;;  %2759 = vmatmul.mubr.f32.gmra.mrb[12].mxu1 %v2601_v52 }
 0x35d   :  { %v2395_v57 = vsel %vm2372_vm1, %v2392_v31, %v2394_v48  ;;  %v2320_v59 = vmax.f32 %v2288_v49, 0.0  ;;  %v2252_v60 = vmax.f32 %v2062_v51, %v2064_v55  ;;  %2764 = vmatprep.mubr.f32.mxu1 %v6488_v0  ;;  %5634 = vmatpush1.bf16.msra.mxu1 %v5633_v43 }
 0x35e   :  { %v7582_v62 = vmax.f32 %v2318_v23, %v2395_v57  ;;  %5636 = vmatprep.subr.bf16.mxu1 %v5635_v45 }
 0x35f   :  { %v2396_v1 = vrot.slane %v2320_v59, 1  ;;  %v2289_v2 = vadd.f32 %v7519_v22, %v2252_v60  ;;  %v2068_v3 = vpop.f32.mrb[28].mxu0  ;;  %v2602_v4 = vld [vmem:[#allocation2 + $0x3a] sm:$0xff] }
 0x360   :  { %2510 = vst [vmem:[#allocation2 + $0x50] sm:$0xff] %v7582_v62  ;;  %v2070_v5 = vpop.f32.mrb[29].mxu0  ;;  %2765 = vmatmul.mubr.f32.gmra.mrb[14].mxu1 %v2602_v4 }
 0x361   :  { %v2397_v6 = vsel %vm2372_vm1, %v2394_v48, %v2396_v1  ;;  %v2321_v7 = vmax.f32 %v2289_v2, 0.0  ;;  %v2253_v9 = vmax.f32 %v2068_v3, %v2070_v5  ;;  %2770 = vmatprep.mubr.f32.mxu1 %v6488_v0  ;;  %5638 = vmatpush1.bf16.msra.mxu1 %v5637_v61 }
 0x362   :  { %v7588_v11 = vmax.f32 %v2319_v40, %v2397_v6  ;;  %5640 = vmatprep.subr.bf16.mxu1 %v5639_v63 }
 0x363   :  { %v2398_v12 = vrot.slane %v2321_v7, 1  ;;  %v2290_v13 = vadd.f32 %v7519_v22, %v2253_v9  ;;  %v2074_v14 = vpop.f32.mrb[30].mxu0  ;;  %v2603_v15 = vld [vmem:[#allocation2 + $0x42] sm:$0xff] }
 0x364   :  { %2511 = vst [vmem:[#allocation2 + $0x58] sm:$0xff] %v7588_v11  ;;  %v2076_v16 = vpop.f32.mrb[31].mxu0  ;;  %2771 = vmatmul.mubr.f32.gmra.mrb[16].mxu1 %v2603_v15 }
 0x365   :  { %v2399_v17 = vsel %vm2372_vm1, %v2396_v1, %v2398_v12  ;;  %v2322_v18 = vmax.f32 %v2290_v13, 0.0  ;;  %v2254_v19 = vmax.f32 %v2074_v14, %v2076_v16  ;;  %2776 = vmatprep.mubr.f32.mxu1 %v6488_v0 }
 0x366   :  { %v7594_v20 = vmax.f32 %v2320_v59, %v2399_v17 }
 0x367   :  { %v2400_v21 = vrot.slane %v2322_v18, 1  ;;  %v2291_v23 = vadd.f32 %v7519_v22, %v2254_v19  ;;  %v2080_v25 = vpop.f32.mrb[32].mxu0  ;;  %v2604_v26 = vld [vmem:[#allocation2 + $0x4a] sm:$0xff] }
 0x368   :  { %2512 = vst [vmem:[#allocation2 + $0x60] sm:$0xff] %v7594_v20  ;;  %v2082_v28 = vpop.f32.mrb[33].mxu0  ;;  %2777 = vmatmul.mubr.f32.gmra.mrb[18].mxu1 %v2604_v26 }
 0x369   :  { %v2401_v29 = vsel %vm2372_vm1, %v2398_v12, %v2400_v21  ;;  %v2323_v30 = vmax.f32 %v2291_v23, 0.0  ;;  %v2255_v31 = vmax.f32 %v2080_v25, %v2082_v28  ;;  %2782 = vmatprep.mubr.f32.mxu1 %v6488_v0 }
 0x36a   :  { %v7600_v32 = vmax.f32 %v2321_v7, %v2401_v29 }
 0x36b   :  { %v2402_v33 = vrot.slane %v2323_v30, 1  ;;  %v2292_v34 = vadd.f32 %v7519_v22, %v2255_v31  ;;  %v2086_v35 = vpop.f32.mrb[34].mxu0  ;;  %v2605_v36 = vld [vmem:[#allocation2 + $0x52] sm:$0xff] }
 0x36c   :  { %2513 = vst [vmem:[#allocation2 + $0x68] sm:$0xff] %v7600_v32  ;;  %v2088_v37 = vpop.f32.mrb[35].mxu0  ;;  %2783 = vmatmul.mubr.f32.gmra.mrb[20].mxu1 %v2605_v36 }
 0x36d   :  { %v2403_v38 = vsel %vm2372_vm1, %v2400_v21, %v2402_v33  ;;  %v2324_v40 = vmax.f32 %v2292_v34, 0.0  ;;  %v2256_v41 = vmax.f32 %v2086_v35, %v2088_v37  ;;  %2788 = vmatprep.mubr.f32.mxu1 %v6488_v0 }
 0x36e   :  { %v7606_v43 = vmax.f32 %v2322_v18, %v2403_v38 }
 0x36f   :  { %v2404_v45 = vrot.slane %v2324_v40, 1  ;;  %v2293_v46 = vadd.f32 %v7519_v22, %v2256_v41  ;;  %v2092_v47 = vpop.f32.mrb[36].mxu0  ;;  %v2606_v48 = vld [vmem:[#allocation2 + $0x5a] sm:$0xff] }
 0x370   :  { %2514 = vst [vmem:[#allocation2 + $0x70] sm:$0xff] %v7606_v43  ;;  %v2094_v49 = vpop.f32.mrb[37].mxu0  ;;  %2789 = vmatmul.mubr.f32.gmra.mrb[22].mxu1 %v2606_v48 }
 0x371   :  { %v2405_v51 = vsel %vm2372_vm1, %v2402_v33, %v2404_v45  ;;  %v2325_v52 = vmax.f32 %v2293_v46, 0.0  ;;  %v2257_v53 = vmax.f32 %v2092_v47, %v2094_v49  ;;  %2794 = vmatprep.mubr.f32.mxu1 %v6488_v0 }
 0x372   :  { %v7612_v54 = vmax.f32 %v2323_v30, %v2405_v51 }
 0x373   :  { %v2406_v55 = vrot.slane %v2325_v52, 1  ;;  %v2294_v57 = vadd.f32 %v7519_v22, %v2257_v53  ;;  %v2098_v59 = vpop.f32.mrb[38].mxu0  ;;  %v2607_v60 = vld [vmem:[#allocation2 + $0x62] sm:$0xff] }
 0x374   :  { %2515 = vst [vmem:[#allocation2 + $0x78] sm:$0xff] %v7612_v54  ;;  %v2100_v61 = vpop.f32.mrb[39].mxu0  ;;  %2795 = vmatmul.mubr.f32.gmra.mrb[24].mxu1 %v2607_v60 }
 0x375   :  { %v2407_v63 = vsel %vm2372_vm1, %v2404_v45, %v2406_v55  ;;  %v2326_v1 = vmax.f32 %v2294_v57, 0.0  ;;  %v2258_v2 = vmax.f32 %v2098_v59, %v2100_v61  ;;  %2800 = vmatprep.mubr.f32.mxu1 %v6488_v0 }
 0x376   :  { %v7618_v3 = vmax.f32 %v2324_v40, %v2407_v63 }
 0x377   :  { %v2408_v4 = vrot.slane %v2326_v1, 1  ;;  %v2295_v5 = vadd.f32 %v7519_v22, %v2258_v2  ;;  %v2104_v6 = vpop.f32.mrb[40].mxu0  ;;  %v2608_v7 = vld [vmem:[#allocation2 + $0x6a] sm:$0xff] }
 0x378   :  { %2516 = vst [vmem:[#allocation2 + $0x80] sm:$0xff] %v7618_v3  ;;  %v2106_v9 = vpop.f32.mrb[41].mxu0  ;;  %2801 = vmatmul.mubr.f32.gmra.mrb[26].mxu1 %v2608_v7 }
 0x379   :  { %v2409_v12 = vsel %vm2372_vm1, %v2406_v55, %v2408_v4  ;;  %v2327_v13 = vmax.f32 %v2295_v5, 0.0  ;;  %v2259_v14 = vmax.f32 %v2104_v6, %v2106_v9  ;;  %2806 = vmatprep.mubr.f32.mxu1 %v6488_v0 }
 0x37a   :  { %v7624_v15 = vmax.f32 %v2325_v52, %v2409_v12 }
 0x37b   :  { %v2410_v16 = vrot.slane %v2327_v13, 1  ;;  %v2296_v17 = vadd.f32 %v7519_v22, %v2259_v14  ;;  %v2110_v18 = vpop.f32.mrb[42].mxu0  ;;  %v2609_v19 = vld [vmem:[#allocation2 + $0x72] sm:$0xff] }
 0x37c   :  { %2517 = vst [vmem:[#allocation2 + $0x88] sm:$0xff] %v7624_v15  ;;  %v2112_v21 = vpop.f32.mrb[43].mxu0  ;;  %2807 = vmatmul.mubr.f32.gmra.mrb[28].mxu1 %v2609_v19 }
 0x37d   :  { %v2411_v23 = vsel %vm2372_vm1, %v2408_v4, %v2410_v16  ;;  %v2328_v25 = vmax.f32 %v2296_v17, 0.0  ;;  %v2260_v26 = vmax.f32 %v2110_v18, %v2112_v21  ;;  %2812 = vmatprep.mubr.f32.mxu1 %v6488_v0 }
 0x37e   :  { %v7630_v28 = vmax.f32 %v2326_v1, %v2411_v23 }
 0x37f   :  { %v2412_v29 = vrot.slane %v2328_v25, 1  ;;  %v2297_v30 = vadd.f32 %v7519_v22, %v2260_v26  ;;  %v2116_v31 = vpop.f32.mrb[44].mxu0  ;;  %v2610_v33 = vld [vmem:[#allocation2 + $0x7a] sm:$0xff] }
 0x380   :  { %2518 = vst [vmem:[#allocation2 + $0x90] sm:$0xff] %v7630_v28  ;;  %v2118_v34 = vpop.f32.mrb[45].mxu0  ;;  %2813 = vmatmul.mubr.f32.gmra.mrb[30].mxu1 %v2610_v33 }
 0x381   :  { %v2413_v35 = vsel %vm2372_vm1, %v2410_v16, %v2412_v29  ;;  %v2329_v36 = vmax.f32 %v2297_v30, 0.0  ;;  %v2261_v37 = vmax.f32 %v2116_v31, %v2118_v34  ;;  %2818 = vmatprep.mubr.f32.mxu1 %v6488_v0 }
 0x382   :  { %v7636_v38 = vmax.f32 %v2327_v13, %v2413_v35 }
 0x383   :  { %v2414_v40 = vrot.slane %v2329_v36, 1  ;;  %v2298_v41 = vadd.f32 %v7519_v22, %v2261_v37  ;;  %v2122_v45 = vpop.f32.mrb[46].mxu0  ;;  %v2611_v46 = vld [vmem:[#allocation2 + $0x82] sm:$0xff] }
 0x384   :  { %2519 = vst [vmem:[#allocation2 + $0x98] sm:$0xff] %v7636_v38  ;;  %v2124_v47 = vpop.f32.mrb[47].mxu0  ;;  %2819 = vmatmul.mubr.f32.gmra.mrb[32].mxu1 %v2611_v46 }
 0x385   :  { %v2415_v48 = vsel %vm2372_vm1, %v2412_v29, %v2414_v40  ;;  %v2330_v49 = vmax.f32 %v2298_v41, 0.0  ;;  %v2262_v51 = vmax.f32 %v2122_v45, %v2124_v47  ;;  %2824 = vmatprep.mubr.f32.mxu1 %v6488_v0 }
 0x386   :  { %v7642_v52 = vmax.f32 %v2328_v25, %v2415_v48 }
 0x387   :  { %v2416_v53 = vrot.slane %v2330_v49, 1  ;;  %v2299_v55 = vadd.f32 %v7519_v22, %v2262_v51  ;;  %v2128_v57 = vpop.f32.mrb[48].mxu0  ;;  %v2612_v59 = vld [vmem:[#allocation2 + $0x8a] sm:$0xff] }
 0x388   :  { %2520 = vst [vmem:[#allocation2 + $0xa0] sm:$0xff] %v7642_v52  ;;  %v2130_v60 = vpop.f32.mrb[49].mxu0  ;;  %2825 = vmatmul.mubr.f32.gmra.mrb[34].mxu1 %v2612_v59 }
 0x389   :  { %v2417_v61 = vsel %vm2372_vm1, %v2414_v40, %v2416_v53  ;;  %v2331_v63 = vmax.f32 %v2299_v55, 0.0  ;;  %v2263_v1 = vmax.f32 %v2128_v57, %v2130_v60  ;;  %2830 = vmatprep.mubr.f32.mxu1 %v6488_v0 }
 0x38a   :  { %v7648_v2 = vmax.f32 %v2329_v36, %v2417_v61 }
 0x38b   :  { %v2418_v4 = vrot.slane %v2331_v63, 1  ;;  %v2300_v5 = vadd.f32 %v7519_v22, %v2263_v1  ;;  %v2134_v6 = vpop.f32.mrb[50].mxu0  ;;  %v2613_v7 = vld [vmem:[#allocation2 + $0x92] sm:$0xff] }
 0x38c   :  { %2521 = vst [vmem:[#allocation2 + $0xa8] sm:$0xff] %v7648_v2  ;;  %v2136_v9 = vpop.f32.mrb[51].mxu0  ;;  %2831 = vmatmul.mubr.f32.gmra.mrb[36].mxu1 %v2613_v7 }
 0x38d   :  { %v2419_v12 = vsel %vm2372_vm1, %v2416_v53, %v2418_v4  ;;  %v2332_v13 = vmax.f32 %v2300_v5, 0.0  ;;  %v2264_v14 = vmax.f32 %v2134_v6, %v2136_v9  ;;  %2836 = vmatprep.mubr.f32.mxu1 %v6488_v0 }
 0x38e   :  { %v7654_v16 = vmax.f32 %v2330_v49, %v2419_v12 }
 0x38f   :  { %v2420_v17 = vrot.slane %v2332_v13, 1  ;;  %v2301_v18 = vadd.f32 %v7519_v22, %v2264_v14  ;;  %v2140_v19 = vpop.f32.mrb[52].mxu0  ;;  %v2614_v21 = vld [vmem:[#allocation2 + $0x9a] sm:$0xff] }
 0x390   :  { %2522 = vst [vmem:[#allocation2 + $0xb0] sm:$0xff] %v7654_v16  ;;  %v2142_v23 = vpop.f32.mrb[53].mxu0  ;;  %2837 = vmatmul.mubr.f32.gmra.mrb[38].mxu1 %v2614_v21 }
 0x391   :  { %v2421_v25 = vsel %vm2372_vm1, %v2418_v4, %v2420_v17  ;;  %v2333_v26 = vmax.f32 %v2301_v18, 0.0  ;;  %v2265_v29 = vmax.f32 %v2140_v19, %v2142_v23  ;;  %2842 = vmatprep.mubr.f32.mxu1 %v6488_v0 }
 0x392   :  { %v7660_v30 = vmax.f32 %v2331_v63, %v2421_v25 }
 0x393   :  { %v2422_v31 = vrot.slane %v2333_v26, 1  ;;  %v2302_v33 = vadd.f32 %v7519_v22, %v2265_v29  ;;  %v2146_v34 = vpop.f32.mrb[54].mxu0  ;;  %v2615_v35 = vld [vmem:[#allocation2 + $0xa2] sm:$0xff] }
 0x394   :  { %2523 = vst [vmem:[#allocation2 + $0xb8] sm:$0xff] %v7660_v30  ;;  %v2148_v36 = vpop.f32.mrb[55].mxu0  ;;  %2843 = vmatmul.mubr.f32.gmra.mrb[40].mxu1 %v2615_v35 }
 0x395   :  { %v2423_v37 = vsel %vm2372_vm1, %v2420_v17, %v2422_v31  ;;  %v2334_v40 = vmax.f32 %v2302_v33, 0.0  ;;  %v2266_v41 = vmax.f32 %v2146_v34, %v2148_v36  ;;  %2848 = vmatprep.mubr.f32.mxu1 %v6488_v0 }
 0x396   :  { %v7666_v45 = vmax.f32 %v2332_v13, %v2423_v37 }
 0x397   :  { %v2424_v46 = vrot.slane %v2334_v40, 1  ;;  %v2303_v47 = vadd.f32 %v7519_v22, %v2266_v41  ;;  %v2152_v48 = vpop.f32.mrb[56].mxu0  ;;  %v2616_v49 = vld [vmem:[#allocation2 + $0xaa] sm:$0xff] }
 0x398   :  { %2524 = vst [vmem:[#allocation2 + $0xc0] sm:$0xff] %v7666_v45  ;;  %v2154_v51 = vpop.f32.mrb[57].mxu0  ;;  %2849 = vmatmul.mubr.f32.gmra.mrb[42].mxu1 %v2616_v49 }
 0x399   :  { %v2425_v53 = vsel %vm2372_vm1, %v2422_v31, %v2424_v46  ;;  %v2335_v55 = vmax.f32 %v2303_v47, 0.0  ;;  %v2267_v57 = vmax.f32 %v2152_v48, %v2154_v51  ;;  %2854 = vmatprep.mubr.f32.mxu1 %v6488_v0 }
 0x39a   :  { %v7672_v59 = vmax.f32 %v2333_v26, %v2425_v53 }
 0x39b   :  { %v2426_v60 = vrot.slane %v2335_v55, 1  ;;  %v2304_v61 = vadd.f32 %v7519_v22, %v2267_v57  ;;  %v2158_v63 = vpop.f32.mrb[58].mxu0  ;;  %v2617_v1 = vld [vmem:[#allocation2 + $0xb2] sm:$0xff] }
 0x39c   :  { %2525 = vst [vmem:[#allocation2 + $0xc8] sm:$0xff] %v7672_v59  ;;  %v2160_v4 = vpop.f32.mrb[59].mxu0  ;;  %2855 = vmatmul.mubr.f32.gmra.mrb[44].mxu1 %v2617_v1 }
 0x39d   :  { %v2427_v5 = vsel %vm2372_vm1, %v2424_v46, %v2426_v60  ;;  %v2336_v6 = vmax.f32 %v2304_v61, 0.0  ;;  %v2268_v7 = vmax.f32 %v2158_v63, %v2160_v4  ;;  %2860 = vmatprep.mubr.f32.mxu1 %v6488_v0  ;;  %v3191_v4 = vld [vmem:[#allocation5 + $0x200] sm:$0xff] }
 0x39e   :  { %v7678_v9 = vmax.f32 %v2334_v40, %v2427_v5  ;;  %v3193_v5 = vld [vmem:[#allocation5 + $0x210] sm:$0xff] }
 0x39f   :  { %v2428_v12 = vrot.slane %v2336_v6, 1  ;;  %v2305_v13 = vadd.f32 %v7519_v22, %v2268_v7  ;;  %v2164_v14 = vpop.f32.mrb[60].mxu0  ;;  %v2618_v17 = vld [vmem:[#allocation2 + $0xba] sm:$0xff]  ;;  %v3196_v7 = vld [vmem:[#allocation5 + $0x228] sm:$0xff] }
 0x3a0   :  { %2526 = vst [vmem:[#allocation2 + $0xd0] sm:$0xff] %v7678_v9  ;;  %v2166_v18 = vpop.f32.mrb[61].mxu0  ;;  %2861 = vmatmul.mubr.f32.gmra.mrb[46].mxu1 %v2618_v17  ;;  %v3195_v17 = vld [vmem:[#allocation5 + $0x220] sm:$0xff] }
 0x3a1   :  { %v2429_v19 = vsel %vm2372_vm1, %v2426_v60, %v2428_v12  ;;  %v2337_v21 = vmax.f32 %v2305_v13, 0.0  ;;  %v2269_v23 = vmax.f32 %v2164_v14, %v2166_v18  ;;  %2866 = vmatprep.mubr.f32.mxu1 %v6488_v0  ;;  %v5641_v13 = vpack.c.bf16 %v3193_v5, %v3191_v4  ;;  %v3197_v18 = vld [vmem:[#allocation5 + $0x230] sm:$0xff]  ;;  %v3215_v5 = vld [vmem:[#allocation5 + $0x2c0] sm:$0xff] }
 0x3a2   :  { %v7684_v25 = vmax.f32 %v2335_v55, %v2429_v19  ;;  %v3200_v19 = vld [vmem:[#allocation5 + $0x248] sm:$0xff] }
 0x3a3   :  { %v2430_v26 = vrot.slane %v2337_v21, 1  ;;  %v2306_v29 = vadd.f32 %v7519_v22, %v2269_v23  ;;  %v2170_v31 = vpop.f32.mrb[62].mxu0  ;;  %v2619_v33 = vld [vmem:[#allocation2 + $0xc2] sm:$0xff]  ;;  %v5645_v23 = vpack.c.bf16 %v3197_v18, %v3195_v17  ;;  %v3568_v17 = vld [vmem:[#allocation5 + $0x308] sm:$0xff] }
 0x3a4   :  { %2527 = vst [vmem:[#allocation2 + $0xd8] sm:$0xff] %v7684_v25  ;;  %v2172_v34 = vpop.f32.mrb[63].mxu0  ;;  %2867 = vmatmul.mubr.f32.gmra.mrb[48].mxu1 %v2619_v33  ;;  %v3204_v33 = vld [vmem:[#allocation5 + $0x268] sm:$0xff]  ;;  %v3570_v18 = vld [vmem:[#allocation5 + $0x318] sm:$0xff] }
 0x3a5   :  { %v2431_v35 = vsel %vm2372_vm1, %v2428_v12, %v2430_v26  ;;  %v2338_v36 = vmax.f32 %v2306_v29, 0.0  ;;  %v2270_v37 = vmax.f32 %v2170_v31, %v2172_v34  ;;  %2872 = vmatprep.mubr.f32.mxu1 %v6488_v0  ;;  %v3198_v12 = vld [vmem:[#allocation5 + $0x238] sm:$0xff]  ;;  %v3199_v29 = vld [vmem:[#allocation5 + $0x240] sm:$0xff]  ;;  %v3201_v31 = vld [vmem:[#allocation5 + $0x250] sm:$0xff] }
 0x3a6   :  { %v7690_v40 = vmax.f32 %v2336_v6, %v2431_v35  ;;  %v5643_v14 = vpack.c.bf16 %v3198_v12, %v3196_v7  ;;  %v3206_v34 = vld [vmem:[#allocation5 + $0x278] sm:$0xff]  ;;  %v5649_v35 = vpack.c.bf16 %v3201_v31, %v3199_v29  ;;  %v3583_v31 = vld [vmem:[#allocation5 + $0x380] sm:$0xff] }
 0x3a7   :  { %v2432_v41 = vrot.slane %v2338_v36, 1  ;;  %v2307_v46 = vadd.f32 %v7519_v22, %v2270_v37  ;;  %v2620_v47 = vld [vmem:[#allocation2 + $0xca] sm:$0xff]  ;;  %v3222_v7 = vld [vmem:[#allocation5 + $0x2f8] sm:$0xff] }
 0x3a8   :  { %2528 = vst [vmem:[#allocation2 + $0xe0] sm:$0xff] %v7690_v40  ;;  %2873 = vmatmul.mubr.f32.gmra.mrb[50].mxu1 %v2620_v47  ;;  %v3203_v37 = vld [vmem:[#allocation5 + $0x260] sm:$0xff] }
 0x3a9   :  { %v2433_v48 = vsel %vm2372_vm1, %v2430_v26, %v2432_v41  ;;  %v2339_v49 = vmax.f32 %v2307_v46, 0.0  ;;  %2878 = vmatprep.mubr.f32.mxu1 %v6488_v0  ;;  %v3210_v46 = vld [vmem:[#allocation5 + $0x298] sm:$0xff] }
 0x3aa   :  { %v7696_v51 = vmax.f32 %v2337_v21, %v2433_v48  ;;  %v3202_v21 = vld [vmem:[#allocation5 + $0x258] sm:$0xff] }
 0x3ab   :  { %v2434_v53 = vrot.slane %v2339_v49, 1  ;;  %v2621_v55 = vld [vmem:[#allocation2 + $0xd2] sm:$0xff]  ;;  %v5647_v26 = vpack.c.bf16 %v3202_v21, %v3200_v19  ;;  %v5671_v21 = vpack.c.bf16 %v3570_v18, %v3568_v17  ;;  %v3171_v18 = vld [vmem:[#allocation2 + $0x5c] sm:$0xff] }
 0x3ac   :  { %2529 = vst [vmem:[#allocation2 + $0xe8] sm:$0xff] %v7696_v51  ;;  %2879 = vmatmul.mubr.f32.gmra.mrb[52].mxu1 %v2621_v55  ;;  %v3214_v55 = vld [vmem:[#allocation5 + $0x2b8] sm:$0xff]  ;;  %v3170_v17 = vld [vmem:[#allocation2 + $0x54] sm:$0xff] }
 0x3ad   :  { %v2435_v57 = vsel %vm2372_vm1, %v2432_v41, %v2434_v53  ;;  %v2499_v60 = vmax.f32 %v2339_v49, %v2434_v53  ;;  %2884 = vmatprep.mubr.f32.mxu1 %v6488_v0  ;;  %v3208_v41 = vld [vmem:[#allocation5 + $0x288] sm:$0xff]  ;;  %v3207_v49 = vld [vmem:[#allocation5 + $0x280] sm:$0xff] }
 0x3ae   :  { %v2498_v22 = vmax.f32 %v2338_v36, %v2435_v57  ;;  %v5651_v36 = vpack.c.bf16 %v3206_v34, %v3204_v33  ;;  %v5655_v48 = vpack.c.bf16 %v3210_v46, %v3208_v41  ;;  %v3212_v53 = vld [vmem:[#allocation5 + $0x2a8] sm:$0xff]  ;;  %v3585_v33 = vld [vmem:[#allocation5 + $0x390] sm:$0xff]  ;;  %v3587_v41 = vld [vmem:[#allocation5 + $0x3a0] sm:$0xff] }
 0x3af   :  { %2531 = vst [vmem:[#allocation2 + $0xf8] sm:$0x7] %v2499_v60  ;;  %v2622_v61 = vld [vmem:[#allocation2 + $0xda] sm:$0xff]  ;;  %v5659_v60 = vpack.c.bf16 %v3214_v55, %v3212_v53  ;;  %v3591_v55 = vld [vmem:[#allocation5 + $0x3c0] sm:$0xff] }
 0x3b0   :  { %2530 = vst [vmem:[#allocation2 + $0xf0] sm:$0xff] %v2498_v22  ;;  %2885 = vmatmul.mubr.f32.gmra.mrb[54].mxu1 %v2622_v61  ;;  %v3211_v22 = vld [vmem:[#allocation5 + $0x2a0] sm:$0xff]  ;;  %v3216_v61 = vld [vmem:[#allocation5 + $0x2c8] sm:$0xff]  ;;  %v3163_v34 = vld [vmem:[#allocation2 + $0x1c] sm:$0xff] }
 0x3b1   :  { %2890 = vmatprep.mubr.f32.mxu1 %v6488_v0  ;;  %v3589_v46 = vld [vmem:[#allocation5 + $0x3b0] sm:$0xff] }
 0x3b3   :  { %v2623_v63 = vld [vmem:[#allocation2 + $0xe2] sm:$0xff] }
 0x3b4   :  { %2891 = vmatmul.mubr.f32.gmra.mrb[56].mxu1 %v2623_v63  ;;  %v3218_v63 = vld [vmem:[#allocation5 + $0x2d8] sm:$0xff] }
 0x3b5   :  { %2896 = vmatprep.mubr.f32.mxu1 %v6488_v0  ;;  %v5663_v4 = vpack.c.bf16 %v3218_v63, %v3216_v61 }
 0x3b7   :  { %v2624_v1 = vld [vmem:[#allocation2 + $0xea] sm:$0xff]  ;;  %v2625_v6 = vld [vmem:[#allocation2 + $0xf2] sm:$0x7] }
 0x3b8   :  { %2897 = vmatmul.mubr.f32.gmra.mrb[58].mxu1 %v2624_v1 }
 0x3b9   :  { %2902 = vmatprep.mubr.f32.mxu1 %v6488_v0 }
 0x3bc   :  { %2903 = vmatmul.mubr.f32.gmra.mrb[60].mxu1 %v2625_v6  ;;  %v3220_v6 = vld [vmem:[#allocation5 + $0x2e8] sm:$0xff] }
 0x3bd   :  { %2973 = vmatprep.mubr.f32.mxu1 %v6488_v0 }
 0x3c0   :  { %2974 = vmatmul.mubr.f32.vlgmr.msra.gmra.mrb[0].mxu1 %v7525_v42  ;;  %v3205_v42 = vld [vmem:[#allocation5 + $0x270] sm:$0xff] }
 0x3c1   :  { %5642 = vmatpush1.bf16.msra.mxu1 %v5641_v13  ;;  %2979 = vmatprep.mubr.f32.mxu1 %v6488_v0  ;;  %v5653_v47 = vpack.c.bf16 %v3205_v42, %v3203_v37  ;;  %v5667_v13 = vpack.c.bf16 %v3222_v7, %v3220_v6  ;;  %v5689_v37 = vpack.c.bf16 %v3585_v33, %v3583_v31  ;;  %v3946_v6 = vld [vmem:[#allocation5 + $0x418] sm:$0xff] }
 0x3c2   :  { %5644 = vmatprep.subr.bf16.mxu1 %v5643_v14  ;;  %v3219_v14 = vld [vmem:[#allocation5 + $0x2e0] sm:$0xff] }
 0x3c4   :  { %2980 = vmatmul.mubr.f32.gmra.mrb[2].mxu1 %v7530_v50  ;;  %v3209_v50 = vld [vmem:[#allocation5 + $0x290] sm:$0xff] }
 0x3c5   :  { %2985 = vmatprep.mubr.f32.mxu1 %v6488_v0  ;;  %5646 = vmatpush1.bf16.msra.mxu1 %v5645_v23  ;;  %v5657_v57 = vpack.c.bf16 %v3209_v50, %v3207_v49  ;;  %v3586_v23 = vld [vmem:[#allocation5 + $0x398] sm:$0xff]  ;;  %v5693_v50 = vpack.c.bf16 %v3589_v46, %v3587_v41 }
 0x3c6   :  { %5648 = vmatprep.subr.bf16.mxu1 %v5647_v26  ;;  %v3594_v49 = vld [vmem:[#allocation5 + $0x3d8] sm:$0xff] }
 0x3c8   :  { %2986 = vmatmul.mubr.f32.gmra.mrb[4].mxu1 %v7535_v58  ;;  %v3213_v58 = vld [vmem:[#allocation5 + $0x2b0] sm:$0xff] }
 0x3c9   :  { %2991 = vmatprep.mubr.f32.mxu1 %v6488_v0  ;;  %5650 = vmatpush1.bf16.msra.mxu1 %v5649_v35  ;;  %v5661_v1 = vpack.c.bf16 %v3213_v58, %v3211_v22  ;;  %v3588_v35 = vld [vmem:[#allocation5 + $0x3a8] sm:$0xff]  ;;  %v3598_v58 = vld [vmem:[#allocation5 + $0x3f8] sm:$0xff] }
 0x3ca   :  { %5652 = vmatprep.subr.bf16.mxu1 %v5651_v36  ;;  %v3590_v36 = vld [vmem:[#allocation5 + $0x3b8] sm:$0xff]  ;;  %v3596_v22 = vld [vmem:[#allocation5 + $0x3e8] sm:$0xff] }
 0x3cb   :  { %v5691_v42 = vpack.c.bf16 %v3590_v36, %v3588_v35  ;;  %v5699_v63 = vpack.c.bf16 %v3598_v58, %v3596_v22  ;;  %v3953_v35 = vld [vmem:[#allocation5 + $0x450] sm:$0xff]  ;;  %v3537_v36 = vld [vmem:[#allocation2 + $0xe] sm:$0xff] }
 0x3cc   :  { %2992 = vmatmul.mubr.f32.gmra.mrb[6].mxu1 %v7540_v8  ;;  %v3217_v8 = vld [vmem:[#allocation5 + $0x2d0] sm:$0xff] }
 0x3cd   :  { %2997 = vmatprep.mubr.f32.mxu1 %v6488_v0  ;;  %5654 = vmatpush1.bf16.msra.mxu1 %v5653_v47  ;;  %v5665_v12 = vpack.c.bf16 %v3217_v8, %v3215_v5  ;;  %v3164_v47 = vld [vmem:[#allocation2 + $0x24] sm:$0xff]  ;;  %v3166_v5 = vld [vmem:[#allocation2 + $0x34] sm:$0xff] }
 0x3ce   :  { %5656 = vmatprep.subr.bf16.mxu1 %v5655_v48  ;;  %v3592_v48 = vld [vmem:[#allocation5 + $0x3c8] sm:$0xff]  ;;  %v3961_v22 = vld [vmem:[#allocation5 + $0x490] sm:$0xff] }
 0x3cf   :  { %v5695_v53 = vpack.c.bf16 %v3594_v49, %v3592_v48  ;;  %v3944_v8 = vld [vmem:[#allocation5 + $0x408] sm:$0xff]  ;;  %v3957_v48 = vld [vmem:[#allocation5 + $0x470] sm:$0xff] }
 0x3d0   :  { %2998 = vmatmul.mubr.f32.gmra.mrb[8].mxu1 %v7546_v24  ;;  %v3221_v24 = vld [vmem:[#allocation5 + $0x2f0] sm:$0xff] }
 0x3d1   :  { %3003 = vmatprep.mubr.f32.mxu1 %v6488_v0  ;;  %5658 = vmatpush1.bf16.msra.mxu1 %v5657_v57  ;;  %v5669_v19 = vpack.c.bf16 %v3221_v24, %v3219_v14  ;;  %v3593_v57 = vld [vmem:[#allocation5 + $0x3d0] sm:$0xff]  ;;  %v3168_v14 = vld [vmem:[#allocation2 + $0x44] sm:$0xff]  ;;  %v3169_v24 = vld [vmem:[#allocation2 + $0x4c] sm:$0xff] }
 0x3d2   :  { %5660 = vmatprep.subr.bf16.mxu1 %v5659_v60  ;;  %v3165_v60 = vld [vmem:[#allocation2 + $0x2c] sm:$0xff]  ;;  %v5697_v61 = vpack.c.bf16 %v3593_v57, %v3591_v55  ;;  %v3538_v49 = vld [vmem:[#allocation2 + $0x16] sm:$0xff]  ;;  %v3539_v58 = vld [vmem:[#allocation2 + $0x1e] sm:$0xff] }
 0x3d4   :  { %3004 = vmatmul.mubr.f32.gmra.mrb[10].mxu1 %v7552_v39  ;;  %v3567_v39 = vld [vmem:[#allocation5 + $0x300] sm:$0xff] }
 0x3d5   :  { %3009 = vmatprep.mubr.f32.mxu1 %v6488_v0  ;;  %5662 = vmatpush1.bf16.msra.mxu1 %v5661_v1  ;;  %v3595_v1 = vld [vmem:[#allocation5 + $0x3e0] sm:$0xff] }
 0x3d6   :  { %5664 = vmatprep.subr.bf16.mxu1 %v5663_v4  ;;  %v3597_v4 = vld [vmem:[#allocation5 + $0x3f0] sm:$0xff] }
 0x3d7   :  { %v5701_v7 = vpack.c.bf16 %v3597_v4, %v3595_v1 }
 0x3d8   :  { %3010 = vmatmul.mubr.f32.gmra.mrb[12].mxu1 %v7558_v56  ;;  %v3569_v56 = vld [vmem:[#allocation5 + $0x310] sm:$0xff] }
 0x3d9   :  { %3015 = vmatprep.mubr.f32.mxu1 %v6488_v0  ;;  %5666 = vmatpush1.bf16.msra.mxu1 %v5665_v12  ;;  %v5703_v12 = vpack.c.bf16 %v3946_v6, %v3944_v8  ;;  %v3965_v8 = vld [vmem:[#allocation5 + $0x4b0] sm:$0xff]  ;;  %v3540_v6 = vld [vmem:[#allocation2 + $0x26] sm:$0xff] }
 0x3da   :  { %5668 = vmatprep.subr.bf16.mxu1 %v5667_v13  ;;  %v3167_v13 = vld [vmem:[#allocation2 + $0x3c] sm:$0xff] }
 0x3dc   :  { %3016 = vmatmul.mubr.f32.gmra.mrb[14].mxu1 %v7564_v10  ;;  %v2562_v10 = vld [vmem:[#allocation2 + $0xf0] sm:$0x7] }
 0x3dd   :  { %3021 = vmatprep.mubr.f32.mxu1 %v6488_v0  ;;  %5670 = vmatpush1.bf16.msra.mxu1 %v5669_v19  ;;  %v3172_v19 = vld [vmem:[#allocation2 + $0x64] sm:$0xff] }
 0x3de   :  { %5672 = vmatprep.subr.bf16.mxu1 %v5671_v21  ;;  %v3173_v21 = vld [vmem:[#allocation2 + $0x6c] sm:$0xff] }
 0x3e0   :  { %3022 = vmatmul.mubr.f32.gmra.mrb[16].mxu1 %v7570_v27  ;;  %v3572_v27 = vld [vmem:[#allocation5 + $0x328] sm:$0xff] }
 0x3e1   :  { %3027 = vmatprep.mubr.f32.mxu1 %v6488_v0 }
 0x3e4   :  { %3028 = vmatmul.mubr.f32.gmra.mrb[18].mxu1 %v7576_v44  ;;  %v3574_v44 = vld [vmem:[#allocation5 + $0x338] sm:$0xff] }
 0x3e5   :  { %3033 = vmatprep.mubr.f32.mxu1 %v6488_v0 }
 0x3e8   :  { %3034 = vmatmul.mubr.f32.gmra.mrb[20].mxu1 %v7582_v62  ;;  %v5673_v62 = vpack.c.bf16 %v3569_v56, %v3567_v39  ;;  %v3174_v39 = vld [vmem:[#allocation2 + $0x74] sm:$0xff]  ;;  %v3175_v56 = vld [vmem:[#allocation2 + $0x7c] sm:$0xff] }
 0x3e9   :  { %3039 = vmatprep.mubr.f32.mxu1 %v6488_v0 }
 0x3ec   :  { %3040 = vmatmul.mubr.f32.gmra.mrb[22].mxu1 %v7588_v11  ;;  %v5675_v11 = vpack.c.bf16 %v3574_v44, %v3572_v27  ;;  %v3177_v27 = vld [vmem:[#allocation2 + $0x8c] sm:$0xff]  ;;  %v3178_v44 = vld [vmem:[#allocation2 + $0x94] sm:$0xff] }
 0x3ed   :  { %3045 = vmatprep.mubr.f32.mxu1 %v6488_v0 }
 0x3f0   :  { %3046 = vmatmul.mubr.f32.gmra.mrb[24].mxu1 %v7594_v20  ;;  %v3571_v20 = vld [vmem:[#allocation5 + $0x320] sm:$0xff] }
 0x3f1   :  { %3051 = vmatprep.mubr.f32.mxu1 %v6488_v0 }
 0x3f4   :  { %3052 = vmatmul.mubr.f32.gmra.mrb[26].mxu1 %v7600_v32  ;;  %v3573_v32 = vld [vmem:[#allocation5 + $0x330] sm:$0xff] }
 0x3f5   :  { %3057 = vmatprep.mubr.f32.mxu1 %v6488_v0 }
 0x3f8   :  { %3058 = vmatmul.mubr.f32.gmra.mrb[28].mxu1 %v7606_v43  ;;  %v3160_v43 = vld [vmem:[#allocation2 + $0x4] sm:$0xff] }
 0x3f9   :  { %3063 = vmatprep.mubr.f32.mxu1 %v6488_v0 }
 0x3fc   :  { %3064 = vmatmul.mubr.f32.gmra.mrb[30].mxu1 %v7612_v54  ;;  %v3576_v54 = vld [vmem:[#allocation5 + $0x348] sm:$0xff] }
 0x3fd   :  { %3069 = vmatprep.mubr.f32.mxu1 %v6488_v0 }
 0x400   :  { %3070 = vmatmul.mubr.f32.gmra.mrb[32].mxu1 %v7618_v3  ;;  %v3578_v3 = vld [vmem:[#allocation5 + $0x358] sm:$0xff] }
 0x401   :  { %3075 = vmatprep.mubr.f32.mxu1 %v6488_v0 }
 0x404   :  { %3076 = vmatmul.mubr.f32.gmra.mrb[34].mxu1 %v7624_v15  ;;  %v5677_v15 = vpack.c.bf16 %v3573_v32, %v3571_v20  ;;  %v3181_v20 = vld [vmem:[#allocation2 + $0xac] sm:$0xff]  ;;  %v3182_v32 = vld [vmem:[#allocation2 + $0xb4] sm:$0xff] }
 0x405   :  { %3081 = vmatprep.mubr.f32.mxu1 %v6488_v0 }
 0x408   :  { %3082 = vmatmul.mubr.f32.gmra.mrb[36].mxu1 %v7630_v28  ;;  %v5679_v28 = vpack.c.bf16 %v3578_v3, %v3576_v54  ;;  %v3184_v54 = vld [vmem:[#allocation2 + $0xc4] sm:$0xff]  ;;  %v3185_v3 = vld [vmem:[#allocation2 + $0xcc] sm:$0xff] }
 0x409   :  { %3087 = vmatprep.mubr.f32.mxu1 %v6488_v0 }
 0x40c   :  { %3088 = vmatmul.mubr.f32.gmra.mrb[38].mxu1 %v7636_v38  ;;  %v3575_v38 = vld [vmem:[#allocation5 + $0x340] sm:$0xff] }
 0x40d   :  { %3093 = vmatprep.mubr.f32.mxu1 %v6488_v0 }
 0x410   :  { %3094 = vmatmul.mubr.f32.gmra.mrb[40].mxu1 %v7642_v52  ;;  %v3577_v52 = vld [vmem:[#allocation5 + $0x350] sm:$0xff] }
 0x411   :  { %3099 = vmatprep.mubr.f32.mxu1 %v6488_v0 }
 0x414   :  { %3100 = vmatmul.mubr.f32.gmra.mrb[42].mxu1 %v7648_v2  ;;  %v3161_v2 = vld [vmem:[#allocation2 + $0xc] sm:$0xff] }
 0x415   :  { %3105 = vmatprep.mubr.f32.mxu1 %v6488_v0 }
 0x418   :  { %3106 = vmatmul.mubr.f32.gmra.mrb[44].mxu1 %v7654_v16  ;;  %v3580_v16 = vld [vmem:[#allocation5 + $0x368] sm:$0xff] }
 0x419   :  { %3111 = vmatprep.mubr.f32.mxu1 %v6488_v0 }
 0x41c   :  { %3112 = vmatmul.mubr.f32.gmra.mrb[46].mxu1 %v7660_v30  ;;  %v3582_v30 = vld [vmem:[#allocation5 + $0x378] sm:$0xff] }
 0x41d   :  { %3117 = vmatprep.mubr.f32.mxu1 %v6488_v0 }
 0x420   :  { %3118 = vmatmul.mubr.f32.gmra.mrb[48].mxu1 %v7666_v45  ;;  %v5681_v45 = vpack.c.bf16 %v3577_v52, %v3575_v38  ;;  %v3188_v38 = vld [vmem:[#allocation2 + $0xe4] sm:$0xff]  ;;  %v3189_v52 = vld [vmem:[#allocation2 + $0xec] sm:$0xff] }
 0x421   :  { %3123 = vmatprep.mubr.f32.mxu1 %v6488_v0 }
 0x424   :  { %3124 = vmatmul.mubr.f32.gmra.mrb[50].mxu1 %v7672_v59  ;;  %v5683_v59 = vpack.c.bf16 %v3582_v30, %v3580_v16  ;;  %v3945_v16 = vld [vmem:[#allocation5 + $0x410] sm:$0xff]  ;;  %v3190_v30 = vld [vmem:[#allocation2 + $0xf4] sm:$0x7] }
 0x425   :  { %3129 = vmatprep.mubr.f32.mxu1 %v6488_v0 }
 0x428   :  { %3130 = vmatmul.mubr.f32.gmra.mrb[52].mxu1 %v7678_v9  ;;  %v3579_v9 = vld [vmem:[#allocation5 + $0x360] sm:$0xff] }
 0x429   :  { %3135 = vmatprep.mubr.f32.mxu1 %v6488_v0 }
 0x42c   :  { %3136 = vmatmul.mubr.f32.gmra.mrb[54].mxu1 %v7684_v25  ;;  %v3581_v25 = vld [vmem:[#allocation5 + $0x370] sm:$0xff] }
 0x42d   :  { %3141 = vmatprep.mubr.f32.mxu1 %v6488_v0  ;;  %v5685_v26 = vpack.c.bf16 %v3581_v25, %v3579_v9 }
 0x430   :  { %3142 = vmatmul.mubr.f32.gmra.mrb[56].mxu1 %v7690_v40  ;;  %v3162_v40 = vld [vmem:[#allocation2 + $0x14] sm:$0xff] }
 0x431   :  { %3147 = vmatprep.mubr.f32.mxu1 %v6488_v0 }
 0x434   :  { %3148 = vmatmul.mubr.f32.gmra.mrb[58].mxu1 %v7696_v51  ;;  %v3584_v51 = vld [vmem:[#allocation5 + $0x388] sm:$0xff] }
 0x435   :  { %3153 = vmatprep.mubr.f32.mxu1 %v6488_v0  ;;  %v5687_v29 = vpack.c.bf16 %v3586_v23, %v3584_v51  ;;  %v3949_v51 = vld [vmem:[#allocation5 + $0x430] sm:$0xff]  ;;  %v3536_v23 = vld [vmem:[#allocation2 + $0x6] sm:$0xff] }
 0x438   :  { %3154 = vmatmul.mubr.f32.gmra.mrb[60].mxu1 %v2562_v10  ;;  %v3176_v10 = vld [vmem:[#allocation2 + $0x84] sm:$0xff] }
 0x439   :  { %3287 = vmatprep.mubr.f32.mxu1 %v6488_v0 }
 0x43c   :  { %3288 = vmatmul.mubr.f32.vlgmr.msra.gmra.mrb[0].mxu1 %v3160_v43  ;;  %v3183_v43 = vld [vmem:[#allocation2 + $0xbc] sm:$0xff] }
 0x43d   :  { %5674 = vmatpush1.bf16.msra.mxu1 %v5673_v62  ;;  %3293 = vmatprep.mubr.f32.mxu1 %v6488_v0  ;;  %v3179_v62 = vld [vmem:[#allocation2 + $0x9c] sm:$0xff] }
 0x43e   :  { %5676 = vmatprep.subr.bf16.mxu1 %v5675_v11  ;;  %v3180_v11 = vld [vmem:[#allocation2 + $0xa4] sm:$0xff] }
 0x440   :  { %3294 = vmatmul.mubr.f32.gmra.mrb[2].mxu1 %v3161_v2  ;;  %v3943_v2 = vld [vmem:[#allocation5 + $0x400] sm:$0xff] }
 0x441   :  { %3299 = vmatprep.mubr.f32.mxu1 %v6488_v0  ;;  %5678 = vmatpush1.bf16.msra.mxu1 %v5677_v15  ;;  %v3186_v15 = vld [vmem:[#allocation2 + $0xd4] sm:$0xff]  ;;  %v5705_v9 = vpack.c.bf16 %v3945_v16, %v3943_v2 }
 0x442   :  { %5680 = vmatprep.subr.bf16.mxu1 %v5679_v28  ;;  %v3187_v28 = vld [vmem:[#allocation2 + $0xdc] sm:$0xff]  ;;  %v3553_v2 = vld [vmem:[#allocation2 + $0x8e] sm:$0xff] }
 0x443   :  { %v3554_v16 = vld [vmem:[#allocation2 + $0x96] sm:$0xff] }
 0x444   :  { %3300 = vmatmul.mubr.f32.gmra.mrb[4].mxu1 %v3162_v40  ;;  %v3947_v40 = vld [vmem:[#allocation5 + $0x420] sm:$0xff] }
 0x445   :  { %3305 = vmatprep.mubr.f32.mxu1 %v6488_v0  ;;  %5682 = vmatpush1.bf16.msra.mxu1 %v5681_v45  ;;  %v3948_v45 = vld [vmem:[#allocation5 + $0x428] sm:$0xff]  ;;  %v5709_v31 = vpack.c.bf16 %v3949_v51, %v3947_v40  ;;  %v3560_v40 = vld [vmem:[#allocation2 + $0xc6] sm:$0xff] }
 0x446   :  { %5684 = vmatprep.subr.bf16.mxu1 %v5683_v59  ;;  %v3950_v59 = vld [vmem:[#allocation5 + $0x438] sm:$0xff]  ;;  %v3561_v51 = vld [vmem:[#allocation2 + $0xce] sm:$0xff] }
 0x447   :  { %v5707_v25 = vpack.c.bf16 %v3950_v59, %v3948_v45  ;;  %v3556_v45 = vld [vmem:[#allocation2 + $0xa6] sm:$0xff]  ;;  %v3557_v59 = vld [vmem:[#allocation2 + $0xae] sm:$0xff] }
 0x448   :  { %3306 = vmatmul.mubr.f32.gmra.mrb[6].mxu1 %v3163_v34  ;;  %v3951_v34 = vld [vmem:[#allocation5 + $0x440] sm:$0xff] }
 0x449   :  { %3311 = vmatprep.mubr.f32.mxu1 %v6488_v0  ;;  %5686 = vmatpush1.bf16.msra.mxu1 %v5685_v26  ;;  %v3952_v26 = vld [vmem:[#allocation5 + $0x448] sm:$0xff]  ;;  %v5713_v41 = vpack.c.bf16 %v3953_v35, %v3951_v34  ;;  %v3912_v34 = vld [vmem:[#allocation2 + $0x8] sm:$0xff] }
 0x44a   :  { %5688 = vmatprep.subr.bf16.mxu1 %v5687_v29  ;;  %v3954_v29 = vld [vmem:[#allocation5 + $0x458] sm:$0xff]  ;;  %v3913_v35 = vld [vmem:[#allocation2 + $0x10] sm:$0xff] }
 0x44b   :  { %v5711_v33 = vpack.c.bf16 %v3954_v29, %v3952_v26  ;;  %v3563_v26 = vld [vmem:[#allocation2 + $0xde] sm:$0xff]  ;;  %v3564_v29 = vld [vmem:[#allocation2 + $0xe6] sm:$0xff] }
 0x44c   :  { %3312 = vmatmul.mubr.f32.gmra.mrb[8].mxu1 %v3164_v47  ;;  %v3955_v47 = vld [vmem:[#allocation5 + $0x460] sm:$0xff] }
 0x44d   :  { %3317 = vmatprep.mubr.f32.mxu1 %v6488_v0  ;;  %5690 = vmatpush1.bf16.msra.mxu1 %v5689_v37  ;;  %v3956_v37 = vld [vmem:[#allocation5 + $0x468] sm:$0xff]  ;;  %v5717_v55 = vpack.c.bf16 %v3957_v48, %v3955_v47  ;;  %v3919_v47 = vld [vmem:[#allocation2 + $0x40] sm:$0xff]  ;;  %v3920_v48 = vld [vmem:[#allocation2 + $0x48] sm:$0xff] }
 0x44e   :  { %5692 = vmatprep.subr.bf16.mxu1 %v5691_v42  ;;  %v3958_v42 = vld [vmem:[#allocation5 + $0x478] sm:$0xff] }
 0x44f   :  { %v5715_v46 = vpack.c.bf16 %v3958_v42, %v3956_v37  ;;  %v3915_v37 = vld [vmem:[#allocation2 + $0x20] sm:$0xff]  ;;  %v3916_v42 = vld [vmem:[#allocation2 + $0x28] sm:$0xff] }
 0x450   :  { %3318 = vmatmul.mubr.f32.gmra.mrb[10].mxu1 %v3165_v60  ;;  %v3959_v60 = vld [vmem:[#allocation5 + $0x480] sm:$0xff] }
 0x451   :  { %3323 = vmatprep.mubr.f32.mxu1 %v6488_v0  ;;  %5694 = vmatpush1.bf16.msra.mxu1 %v5693_v50  ;;  %v3960_v50 = vld [vmem:[#allocation5 + $0x488] sm:$0xff]  ;;  %v5721_v1 = vpack.c.bf16 %v3961_v22, %v3959_v60  ;;  %v3926_v60 = vld [vmem:[#allocation2 + $0x78] sm:$0xff]  ;;  %v3927_v22 = vld [vmem:[#allocation2 + $0x80] sm:$0xff] }
 0x452   :  { %5696 = vmatprep.subr.bf16.mxu1 %v5695_v53  ;;  %v3962_v53 = vld [vmem:[#allocation5 + $0x498] sm:$0xff] }
 0x453   :  { %v5719_v57 = vpack.c.bf16 %v3962_v53, %v3960_v50  ;;  %v3922_v50 = vld [vmem:[#allocation2 + $0x58] sm:$0xff]  ;;  %v3923_v53 = vld [vmem:[#allocation2 + $0x60] sm:$0xff] }
 0x454   :  { %3324 = vmatmul.mubr.f32.gmra.mrb[12].mxu1 %v3166_v5  ;;  %v3963_v5 = vld [vmem:[#allocation5 + $0x4a0] sm:$0xff] }
 0x455   :  { %3329 = vmatprep.mubr.f32.mxu1 %v6488_v0  ;;  %5698 = vmatpush1.bf16.msra.mxu1 %v5697_v61  ;;  %v3964_v61 = vld [vmem:[#allocation5 + $0x4a8] sm:$0xff] }
 0x456   :  { %5700 = vmatprep.subr.bf16.mxu1 %v5699_v63  ;;  %v3966_v63 = vld [vmem:[#allocation5 + $0x4b8] sm:$0xff] }
 0x457   :  { %v5723_v4 = vpack.c.bf16 %v3966_v63, %v3964_v61  ;;  %v3929_v61 = vld [vmem:[#allocation2 + $0x90] sm:$0xff]  ;;  %v3930_v63 = vld [vmem:[#allocation2 + $0x98] sm:$0xff] }
 0x458   :  { %3330 = vmatmul.mubr.f32.gmra.mrb[14].mxu1 %v3167_v13  ;;  %v5725_v13 = vpack.c.bf16 %v3965_v8, %v3963_v5  ;;  %v3933_v5 = vld [vmem:[#allocation2 + $0xb0] sm:$0xff]  ;;  %v3934_v8 = vld [vmem:[#allocation2 + $0xb8] sm:$0xff] }
 0x459   :  { %3335 = vmatprep.mubr.f32.mxu1 %v6488_v0  ;;  %5702 = vmatpush1.bf16.msra.mxu1 %v5701_v7  ;;  %v3968_v7 = vld [vmem:[#allocation5 + $0x4c8] sm:$0xff] }
 0x45a   :  { %5704 = vmatprep.subr.bf16.mxu1 %v5703_v12  ;;  %v3970_v12 = vld [vmem:[#allocation5 + $0x4d8] sm:$0xff] }
 0x45c   :  { %3336 = vmatmul.mubr.f32.gmra.mrb[16].mxu1 %v3168_v14  ;;  %v5727_v14 = vpack.c.bf16 %v3970_v12, %v3968_v7  ;;  %v3936_v7 = vld [vmem:[#allocation2 + $0xc8] sm:$0xff]  ;;  %v3937_v12 = vld [vmem:[#allocation2 + $0xd0] sm:$0xff] }
 0x45d   :  { %3341 = vmatprep.mubr.f32.mxu1 %v6488_v0 }
 0x460   :  { %3342 = vmatmul.mubr.f32.gmra.mrb[18].mxu1 %v3169_v24  ;;  %v3967_v24 = vld [vmem:[#allocation5 + $0x4c0] sm:$0xff] }
 0x461   :  { %3347 = vmatprep.mubr.f32.mxu1 %v6488_v0 }
 0x464   :  { %3348 = vmatmul.mubr.f32.gmra.mrb[20].mxu1 %v3170_v17  ;;  %v3969_v17 = vld [vmem:[#allocation5 + $0x4d0] sm:$0xff] }
 0x465   :  { %3353 = vmatprep.mubr.f32.mxu1 %v6488_v0 }
 0x468   :  { %3354 = vmatmul.mubr.f32.gmra.mrb[22].mxu1 %v3171_v18  ;;  %v3541_v18 = vld [vmem:[#allocation2 + $0x2e] sm:$0xff] }
 0x469   :  { %3359 = vmatprep.mubr.f32.mxu1 %v6488_v0 }
 0x46c   :  { %3360 = vmatmul.mubr.f32.gmra.mrb[24].mxu1 %v3172_v19  ;;  %v3972_v19 = vld [vmem:[#allocation5 + $0x4e8] sm:$0xff] }
 0x46d   :  { %3365 = vmatprep.mubr.f32.mxu1 %v6488_v0 }
 0x470   :  { %3366 = vmatmul.mubr.f32.gmra.mrb[26].mxu1 %v3173_v21  ;;  %v3974_v21 = vld [vmem:[#allocation5 + $0x4f8] sm:$0xff] }
 0x471   :  { %3371 = vmatprep.mubr.f32.mxu1 %v6488_v0 }
 0x474   :  { %3372 = vmatmul.mubr.f32.gmra.mrb[28].mxu1 %v3174_v39  ;;  %v5729_v39 = vpack.c.bf16 %v3969_v17, %v3967_v24  ;;  %v3940_v24 = vld [vmem:[#allocation2 + $0xe8] sm:$0xff] }
 0x475   :  { %3377 = vmatprep.mubr.f32.mxu1 %v6488_v0  ;;  %v4673_v17 = vld [vmem:[#allocation7 + $0x80] sm:$0xff] }
 0x478   :  { %3378 = vmatmul.mubr.f32.gmra.mrb[30].mxu1 %v3175_v56  ;;  %v5731_v56 = vpack.c.bf16 %v3974_v21, %v3972_v19  ;;  %v4657_v19 = vld [vmem:[#allocation7] sm:$0xff] }
 0x479   :  { %3383 = vmatprep.mubr.f32.mxu1 %v6488_v0 }
 0x47c   :  { %3384 = vmatmul.mubr.f32.gmra.mrb[32].mxu1 %v3176_v10  ;;  %v3971_v10 = vld [vmem:[#allocation5 + $0x4e0] sm:$0xff] }
 0x47d   :  { %3389 = vmatprep.mubr.f32.mxu1 %v6488_v0 }
 0x480   :  { %3390 = vmatmul.mubr.f32.gmra.mrb[34].mxu1 %v3177_v27  ;;  %v3973_v27 = vld [vmem:[#allocation5 + $0x4f0] sm:$0xff] }
 0x481   :  { %3395 = vmatprep.mubr.f32.mxu1 %v6488_v0 }
 0x484   :  { %3396 = vmatmul.mubr.f32.gmra.mrb[36].mxu1 %v3178_v44  ;;  %v3542_v44 = vld [vmem:[#allocation2 + $0x36] sm:$0xff] }
 0x485   :  { %3401 = vmatprep.mubr.f32.mxu1 %v6488_v0 }
 0x488   :  { %3402 = vmatmul.mubr.f32.gmra.mrb[38].mxu1 %v3179_v62  ;;  %v5733_v62 = vpack.c.bf16 %v3973_v27, %v3971_v10  ;;  %v3941_v10 = vld [vmem:[#allocation2 + $0xf0] sm:$0xff]  ;;  %v3942_v27 = vld [vmem:[#allocation2 + $0xf8] sm:$0x7] }
 0x489   :  { %3407 = vmatprep.mubr.f32.mxu1 %v6488_v0 }
 0x48c   :  { %3408 = vmatmul.mubr.f32.gmra.mrb[40].mxu1 %v3180_v11  ;;  %v3543_v11 = vld [vmem:[#allocation2 + $0x3e] sm:$0xff] }
 0x48d   :  { %3413 = vmatprep.mubr.f32.mxu1 %v6488_v0 }
 0x490   :  { %3414 = vmatmul.mubr.f32.gmra.mrb[42].mxu1 %v3181_v20  ;;  %v3544_v20 = vld [vmem:[#allocation2 + $0x46] sm:$0xff] }
 0x491   :  { %3419 = vmatprep.mubr.f32.mxu1 %v6488_v0 }
 0x494   :  { %3420 = vmatmul.mubr.f32.gmra.mrb[44].mxu1 %v3182_v32  ;;  %v3545_v32 = vld [vmem:[#allocation2 + $0x4e] sm:$0xff] }
 0x495   :  { %3425 = vmatprep.mubr.f32.mxu1 %v6488_v0 }
 0x498   :  { %3426 = vmatmul.mubr.f32.gmra.mrb[46].mxu1 %v3183_v43  ;;  %v3546_v43 = vld [vmem:[#allocation2 + $0x56] sm:$0xff] }
 0x499   :  { %3431 = vmatprep.mubr.f32.mxu1 %v6488_v0 }
 0x49c   :  { %3432 = vmatmul.mubr.f32.gmra.mrb[48].mxu1 %v3184_v54  ;;  %v3547_v54 = vld [vmem:[#allocation2 + $0x5e] sm:$0xff] }
 0x49d   :  { %3437 = vmatprep.mubr.f32.mxu1 %v6488_v0 }
 0x4a0   :  { %3438 = vmatmul.mubr.f32.gmra.mrb[50].mxu1 %v3185_v3  ;;  %v3548_v3 = vld [vmem:[#allocation2 + $0x66] sm:$0xff] }
 0x4a1   :  { %3443 = vmatprep.mubr.f32.mxu1 %v6488_v0 }
 0x4a4   :  { %3444 = vmatmul.mubr.f32.gmra.mrb[52].mxu1 %v3186_v15  ;;  %v3549_v15 = vld [vmem:[#allocation2 + $0x6e] sm:$0xff] }
 0x4a5   :  { %3449 = vmatprep.mubr.f32.mxu1 %v6488_v0 }
 0x4a8   :  { %3450 = vmatmul.mubr.f32.gmra.mrb[54].mxu1 %v3187_v28  ;;  %v3550_v28 = vld [vmem:[#allocation2 + $0x76] sm:$0xff] }
 0x4a9   :  { %3455 = vmatprep.mubr.f32.mxu1 %v6488_v0 }
 0x4ac   :  { %3456 = vmatmul.mubr.f32.gmra.mrb[56].mxu1 %v3188_v38  ;;  %v3551_v38 = vld [vmem:[#allocation2 + $0x7e] sm:$0xff] }
 0x4ad   :  { %3461 = vmatprep.mubr.f32.mxu1 %v6488_v0 }
 0x4b0   :  { %3462 = vmatmul.mubr.f32.gmra.mrb[58].mxu1 %v3189_v52  ;;  %v3552_v52 = vld [vmem:[#allocation2 + $0x86] sm:$0xff] }
 0x4b1   :  { %3467 = vmatprep.mubr.f32.mxu1 %v6488_v0 }
 0x4b4   :  { %3468 = vmatmul.mubr.f32.gmra.mrb[60].mxu1 %v3190_v30  ;;  %v3555_v30 = vld [vmem:[#allocation2 + $0x9e] sm:$0xff] }
 0x4b5   :  { %3663 = vmatprep.mubr.f32.mxu1 %v6488_v0 }
 0x4b8   :  { %3664 = vmatmul.mubr.f32.vlgmr.msra.gmra.mrb[0].mxu1 %v3536_v23  ;;  %v3562_v23 = vld [vmem:[#allocation2 + $0xd6] sm:$0xff] }
 0x4b9   :  { %5706 = vmatpush1.bf16.msra.mxu1 %v5705_v9  ;;  %3669 = vmatprep.mubr.f32.mxu1 %v6488_v0  ;;  %v3558_v9 = vld [vmem:[#allocation2 + $0xb6] sm:$0xff] }
 0x4ba   :  { %5708 = vmatprep.subr.bf16.mxu1 %v5707_v25  ;;  %v3559_v25 = vld [vmem:[#allocation2 + $0xbe] sm:$0xff] }
 0x4bc   :  { %3670 = vmatmul.mubr.f32.gmra.mrb[2].mxu1 %v3537_v36  ;;  %v3914_v36 = vld [vmem:[#allocation2 + $0x18] sm:$0xff] }
 0x4bd   :  { %3675 = vmatprep.mubr.f32.mxu1 %v6488_v0  ;;  %5710 = vmatpush1.bf16.msra.mxu1 %v5709_v31  ;;  %v3565_v31 = vld [vmem:[#allocation2 + $0xee] sm:$0xff] }
 0x4be   :  { %5712 = vmatprep.subr.bf16.mxu1 %v5711_v33  ;;  %v3566_v33 = vld [vmem:[#allocation2 + $0xf6] sm:$0x7] }
 0x4c0   :  { %3676 = vmatmul.mubr.f32.gmra.mrb[4].mxu1 %v3538_v49  ;;  %v3921_v49 = vld [vmem:[#allocation2 + $0x50] sm:$0xff] }
 0x4c1   :  { %3681 = vmatprep.mubr.f32.mxu1 %v6488_v0  ;;  %5714 = vmatpush1.bf16.msra.mxu1 %v5713_v41  ;;  %v3917_v41 = vld [vmem:[#allocation2 + $0x30] sm:$0xff] }
 0x4c2   :  { %5716 = vmatprep.subr.bf16.mxu1 %v5715_v46  ;;  %v3918_v46 = vld [vmem:[#allocation2 + $0x38] sm:$0xff] }
 0x4c4   :  { %3682 = vmatmul.mubr.f32.gmra.mrb[6].mxu1 %v3539_v58  ;;  %v3928_v58 = vld [vmem:[#allocation2 + $0x88] sm:$0xff] }
 0x4c5   :  { %3687 = vmatprep.mubr.f32.mxu1 %v6488_v0  ;;  %5718 = vmatpush1.bf16.msra.mxu1 %v5717_v55  ;;  %v3924_v55 = vld [vmem:[#allocation2 + $0x68] sm:$0xff] }
 0x4c6   :  { %5720 = vmatprep.subr.bf16.mxu1 %v5719_v57  ;;  %v3925_v57 = vld [vmem:[#allocation2 + $0x70] sm:$0xff] }
 0x4c8   :  { %3688 = vmatmul.mubr.f32.gmra.mrb[8].mxu1 %v3540_v6  ;;  %v3935_v6 = vld [vmem:[#allocation2 + $0xc0] sm:$0xff] }
 0x4c9   :  { %3693 = vmatprep.mubr.f32.mxu1 %v6488_v0  ;;  %5722 = vmatpush1.bf16.msra.mxu1 %v5721_v1  ;;  %v3931_v1 = vld [vmem:[#allocation2 + $0xa0] sm:$0xff] }
 0x4ca   :  { %5724 = vmatprep.subr.bf16.mxu1 %v5723_v4  ;;  %v3932_v4 = vld [vmem:[#allocation2 + $0xa8] sm:$0xff] }
 0x4cc   :  { %3694 = vmatmul.mubr.f32.gmra.mrb[10].mxu1 %v3541_v18  ;;  %v4674_v18 = vld [vmem:[#allocation7 + $0x88] sm:$0xff] }
 0x4cd   :  { %3699 = vmatprep.mubr.f32.mxu1 %v6488_v0  ;;  %5726 = vmatpush1.bf16.msra.mxu1 %v5725_v13  ;;  %v3938_v13 = vld [vmem:[#allocation2 + $0xd8] sm:$0xff]  ;;  %v5735_v21 = vpack.c.bf16 %v4674_v18, %v4673_v17  ;;  %v4714_v17 = vld [vmem:[#allocation7 + $0x1c8] sm:$0xff]  ;;  %v4697_v18 = vld [vmem:[#allocation7 + $0x140] sm:$0xff] }
 0x4ce   :  { %5728 = vmatprep.subr.bf16.mxu1 %v5727_v14  ;;  %v3939_v14 = vld [vmem:[#allocation2 + $0xe0] sm:$0xff] }
 0x4cf   :  { %5736 = vmatprep.subr.bf16.mxu0 %v5735_v21  ;;  %v4698_v21 = vld [vmem:[#allocation7 + $0x148] sm:$0xff] }
 0x4d0   :  { %3700 = vmatmul.mubr.f32.gmra.mrb[12].mxu1 %v3542_v44  ;;  %v4675_v44 = vld [vmem:[#allocation7 + $0x90] sm:$0xff] }
 0x4d1   :  { %3705 = vmatprep.mubr.f32.mxu1 %v6488_v0  ;;  %5730 = vmatpush1.bf16.msra.mxu1 %v5729_v39  ;;  %v4658_v39 = vld [vmem:[#allocation7 + $0x8] sm:$0xff] }
 0x4d2   :  { %5732 = vmatprep.subr.bf16.mxu1 %v5731_v56  ;;  %v5737_v56 = vpack.c.bf16 %v4658_v39, %v4657_v19  ;;  %v5785_v39 = vpack.c.bf16 %v4698_v21, %v4697_v18  ;;  %v4704_v18 = vld [vmem:[#allocation7 + $0x178] sm:$0xff] }
 0x4d4   :  { %3706 = vmatmul.mubr.f32.gmra.mrb[14].mxu1 %v3543_v11  ;;  %5738 = vmatpush3.bf16.msra.mxu0 %v5737_v56  ;;  %v4659_v11 = vld [vmem:[#allocation7 + $0x10] sm:$0xff]  ;;  %v4685_v56 = vld [vmem:[#allocation7 + $0xe0] sm:$0xff] }
 0x4d5   :  { %3711 = vmatprep.mubr.f32.mxu1 %v6488_v0  ;;  %5734 = vmatpush1.bf16.msra.mxu1 %v5733_v62  ;;  %v4676_v62 = vld [vmem:[#allocation7 + $0x98] sm:$0xff] }
 0x4d8   :  { %3712 = vmatmul.mubr.f32.gmra.mrb[16].mxu1 %v3544_v20  ;;  %v5739_v20 = vpack.c.bf16 %v4676_v62, %v4675_v44  ;;  %v4670_v62 = vld [vmem:[#allocation7 + $0x68] sm:$0xff] }
 0x4d9   :  { %3717 = vmatprep.mubr.f32.mxu1 %v6488_v0 }
 0x4da   :  { %5740 = vmatprep.subr.bf16.mxu0 %v5739_v20 }
 0x4dc   :  { %3718 = vmatmul.mubr.f32.gmra.mrb[18].mxu1 %v3545_v32  ;;  %v4660_v32 = vld [vmem:[#allocation7 + $0x18] sm:$0xff] }
 0x4dd   :  { %3723 = vmatprep.mubr.f32.mxu1 %v6488_v0 }
 0x4e0   :  { %3724 = vmatmul.mubr.f32.gmra.mrb[20].mxu1 %v3546_v43  ;;  %v5741_v43 = vpack.c.bf16 %v4660_v32, %v4659_v11 }
 0x4e1   :  { %3729 = vmatprep.mubr.f32.mxu1 %v6488_v0 }
 0x4e2   :  { %5742 = vmatpush3.bf16.msra.mxu0 %v5741_v43  ;;  %v7861_v43 = vld [vmem:[%s7965_s6 + $0x1] ss:$0 sm:$0xff] }
 0x4e4   :  { %3730 = vmatmul.mubr.f32.gmra.mrb[22].mxu1 %v3547_v54  ;;  %v4705_v54 = vld [vmem:[#allocation7 + $0x180] sm:$0xff] }
 0x4e5   :  { %3735 = vmatprep.mubr.f32.mxu1 %v6488_v0 }
 0x4e8   :  { %3736 = vmatmul.mubr.f32.gmra.mrb[24].mxu1 %v3548_v3  ;;  %v4706_v3 = vld [vmem:[#allocation7 + $0x188] sm:$0xff] }
 0x4e9   :  { %3741 = vmatprep.mubr.f32.mxu1 %v6488_v0 }
 0x4ec   :  { %3742 = vmatmul.mubr.f32.gmra.mrb[26].mxu1 %v3549_v15  ;;  %v5767_v15 = vpack.c.bf16 %v4706_v3, %v4705_v54 }
 0x4ed   :  { %3747 = vmatprep.mubr.f32.mxu1 %v6488_v0 }
 0x4ee   :  { %5768 = vmatprep.subr.bf16.mxu1 %v5767_v15 }
 0x4f0   :  { %3748 = vmatmul.mubr.f32.gmra.mrb[28].mxu1 %v3550_v28  ;;  %v4689_v28 = vld [vmem:[#allocation7 + $0x100] sm:$0xff] }
 0x4f1   :  { %3753 = vmatprep.mubr.f32.mxu1 %v6488_v0 }
 0x4f4   :  { %3754 = vmatmul.mubr.f32.gmra.mrb[30].mxu1 %v3551_v38  ;;  %v4690_v38 = vld [vmem:[#allocation7 + $0x108] sm:$0xff] }
 0x4f5   :  { %3759 = vmatprep.mubr.f32.mxu1 %v6488_v0 }
 0x4f8   :  { %3760 = vmatmul.mubr.f32.gmra.mrb[32].mxu1 %v3552_v52  ;;  %v4677_v52 = vld [vmem:[#allocation7 + $0xa0] sm:$0xff] }
 0x4f9   :  { %3765 = vmatprep.mubr.f32.mxu1 %v6488_v0 }
 0x4fc   :  { %3766 = vmatmul.mubr.f32.gmra.mrb[34].mxu1 %v3553_v2  ;;  %v5769_v2 = vpack.c.bf16 %v4690_v38, %v4689_v28  ;;  %v4715_v38 = vld [vmem:[#allocation7 + $0x1d0] sm:$0xff] }
 0x4fd   :  { %3771 = vmatprep.mubr.f32.mxu1 %v6488_v0 }
 0x500   :  { %3772 = vmatmul.mubr.f32.gmra.mrb[36].mxu1 %v3554_v16  ;;  %v4678_v16 = vld [vmem:[#allocation7 + $0xa8] sm:$0xff] }
 0x501   :  { %3777 = vmatprep.mubr.f32.mxu1 %v6488_v0 }
 0x504   :  { %3778 = vmatmul.mubr.f32.gmra.mrb[38].mxu1 %v3555_v30  ;;  %v4661_v30 = vld [vmem:[#allocation7 + $0x20] sm:$0xff] }
 0x505   :  { %3783 = vmatprep.mubr.f32.mxu1 %v6488_v0 }
 0x508   :  { %3784 = vmatmul.mubr.f32.gmra.mrb[40].mxu1 %v3556_v45  ;;  %v4662_v45 = vld [vmem:[#allocation7 + $0x28] sm:$0xff] }
 0x509   :  { %3789 = vmatprep.mubr.f32.mxu1 %v6488_v0 }
 0x50c   :  { %3790 = vmatmul.mubr.f32.gmra.mrb[42].mxu1 %v3557_v59  ;;  %v5743_v59 = vpack.c.bf16 %v4678_v16, %v4677_v52  ;;  %v4716_v52 = vld [vmem:[#allocation7 + $0x1d8] sm:$0xff] }
 0x50d   :  { %3795 = vmatprep.mubr.f32.mxu1 %v6488_v0 }
 0x50e   :  { %5744 = vmatprep.subr.bf16.mxu0 %v5743_v59  ;;  %v4687_v59 = vld [vmem:[#allocation7 + $0xf0] sm:$0xff] }
 0x510   :  { %3796 = vmatmul.mubr.f32.gmra.mrb[44].mxu1 %v3558_v9  ;;  %v5745_v9 = vpack.c.bf16 %v4662_v45, %v4661_v30  ;;  %v5787_v30 = vpack.c.bf16 %v4716_v52, %v4715_v38  ;;  %v4700_v45 = vld [vmem:[#allocation7 + $0x158] sm:$0xff] }
 0x511   :  { %3801 = vmatprep.mubr.f32.mxu1 %v6488_v0 }
 0x512   :  { %5746 = vmatpush3.bf16.msra.mxu0 %v5745_v9  ;;  %v4688_v9 = vld [vmem:[#allocation7 + $0xf8] sm:$0xff] }
 0x514   :  { %3802 = vmatmul.mubr.f32.gmra.mrb[46].mxu1 %v3559_v25  ;;  %v4707_v25 = vld [vmem:[#allocation7 + $0x190] sm:$0xff] }
 0x515   :  { %3807 = vmatprep.mubr.f32.mxu1 %v6488_v0 }
 0x518   :  { %3808 = vmatmul.mubr.f32.gmra.mrb[48].mxu1 %v3560_v40  ;;  %v4708_v40 = vld [vmem:[#allocation7 + $0x198] sm:$0xff] }
 0x519   :  { %3813 = vmatprep.mubr.f32.mxu1 %v6488_v0 }
 0x51c   :  { %3814 = vmatmul.mubr.f32.gmra.mrb[50].mxu1 %v3561_v51  ;;  %v5771_v51 = vpack.c.bf16 %v4708_v40, %v4707_v25  ;;  %v5763_v40 = vpack.c.bf16 %v4688_v9, %v4687_v59 }
 0x51d   :  { %3819 = vmatprep.mubr.f32.mxu1 %v6488_v0 }
 0x520   :  { %3820 = vmatmul.mubr.f32.gmra.mrb[52].mxu1 %v3562_v23  ;;  %v4691_v23 = vld [vmem:[#allocation7 + $0x110] sm:$0xff] }
 0x521   :  { %3825 = vmatprep.mubr.f32.mxu1 %v6488_v0 }
 0x524   :  { %3826 = vmatmul.mubr.f32.gmra.mrb[54].mxu1 %v3563_v26  ;;  %v4692_v26 = vld [vmem:[#allocation7 + $0x118] sm:$0xff] }
 0x525   :  { %3831 = vmatprep.mubr.f32.mxu1 %v6488_v0 }
 0x528   :  { %3832 = vmatmul.mubr.f32.gmra.mrb[56].mxu1 %v3564_v29  ;;  %v4679_v29 = vld [vmem:[#allocation7 + $0xb0] sm:$0xff] }
 0x529   :  { %3837 = vmatprep.mubr.f32.mxu1 %v6488_v0 }
 0x52c   :  { %3838 = vmatmul.mubr.f32.gmra.mrb[58].mxu1 %v3565_v31  ;;  %v5773_v31 = vpack.c.bf16 %v4692_v26, %v4691_v23  ;;  %v4672_v23 = vld [vmem:[#allocation7 + $0x78] sm:$0xff]  ;;  %v4717_v26 = vld [vmem:[#allocation7 + $0x1e0] sm:$0xff] }
 0x52d   :  { %3843 = vmatprep.mubr.f32.mxu1 %v6488_v0 }
 0x530   :  { %3844 = vmatmul.mubr.f32.gmra.mrb[60].mxu1 %v3566_v33  ;;  %v4680_v33 = vld [vmem:[#allocation7 + $0xb8] sm:$0xff] }
 0x531   :  { %4039 = vmatprep.mubr.f32.mxu1 %v6488_v0 }
 0x534   :  { %4040 = vmatmul.mubr.f32.vlgmr.msra.gmra.mrb[0].mxu1 %v3912_v34  ;;  %v4663_v34 = vld [vmem:[#allocation7 + $0x30] sm:$0xff] }
 0x535   :  { %4045 = vmatprep.mubr.f32.mxu1 %v6488_v0  ;;  %5770 = vmatpush3.bf16.msra.mxu1 %v5769_v2  ;;  %v4699_v2 = vld [vmem:[#allocation7 + $0x150] sm:$0xff] }
 0x536   :  { %5772 = vmatprep.subr.bf16.mxu1 %v5771_v51  ;;  %v5789_v25 = vpack.c.bf16 %v4700_v45, %v4699_v2  ;;  %v4671_v51 = vld [vmem:[#allocation7 + $0x70] sm:$0xff] }
 0x538   :  { %4046 = vmatmul.mubr.f32.gmra.mrb[2].mxu1 %v3913_v35  ;;  %v4664_v35 = vld [vmem:[#allocation7 + $0x38] sm:$0xff] }
 0x539   :  { %4051 = vmatprep.mubr.f32.mxu1 %v6488_v0  ;;  %5774 = vmatpush3.bf16.msra.mxu1 %v5773_v31 }
 0x53c   :  { %4052 = vmatmul.mubr.f32.gmra.mrb[4].mxu1 %v3914_v36  ;;  %v5747_v36 = vpack.c.bf16 %v4680_v33, %v4679_v29 }
 0x53d   :  { %4057 = vmatprep.mubr.f32.mxu1 %v6488_v0 }
 0x53e   :  { %5748 = vmatprep.subr.bf16.mxu0 %v5747_v36  ;;  %v4701_v36 = vld [vmem:[#allocation7 + $0x160] sm:$0xff] }
 0x540   :  { %4058 = vmatmul.mubr.f32.gmra.mrb[6].mxu1 %v3915_v37  ;;  %v5749_v37 = vpack.c.bf16 %v4664_v35, %v4663_v34  ;;  %v5765_v34 = vpack.c.bf16 %v4672_v23, %v4671_v51  ;;  %v4718_v35 = vld [vmem:[#allocation7 + $0x1e8] sm:$0xff] }
 0x541   :  { %4063 = vmatprep.mubr.f32.mxu1 %v6488_v0 }
 0x542   :  { %5750 = vmatpush3.bf16.msra.mxu0 %v5749_v37  ;;  %v4702_v37 = vld [vmem:[#allocation7 + $0x168] sm:$0xff] }
 0x544   :  { %4064 = vmatmul.mubr.f32.gmra.mrb[8].mxu1 %v3916_v42  ;;  %v4709_v42 = vld [vmem:[#allocation7 + $0x1a0] sm:$0xff] }
 0x545   :  { %4069 = vmatprep.mubr.f32.mxu1 %v6488_v0 }
 0x548   :  { %4070 = vmatmul.mubr.f32.gmra.mrb[10].mxu1 %v3917_v41  ;;  %v4710_v41 = vld [vmem:[#allocation7 + $0x1a8] sm:$0xff] }
 0x549   :  { %4075 = vmatprep.mubr.f32.mxu1 %v6488_v0 }
 0x54c   :  { %4076 = vmatmul.mubr.f32.gmra.mrb[12].mxu1 %v3918_v46  ;;  %v4693_v46 = vld [vmem:[#allocation7 + $0x120] sm:$0xff] }
 0x54d   :  { %4081 = vmatprep.mubr.f32.mxu1 %v6488_v0 }
 0x550   :  { %4082 = vmatmul.mubr.f32.gmra.mrb[14].mxu1 %v3919_v47  ;;  %v5775_v47 = vpack.c.bf16 %v4710_v41, %v4709_v42  ;;  %v5791_v41 = vpack.c.bf16 %v4718_v35, %v4717_v26 }
 0x551   :  { %4087 = vmatprep.mubr.f32.mxu1 %v6488_v0 }
 0x552   :  { %5776 = vmatprep.subr.bf16.mxu1 %v5775_v47 }
 0x554   :  { %4088 = vmatmul.mubr.f32.gmra.mrb[16].mxu1 %v3920_v48  ;;  %v4694_v48 = vld [vmem:[#allocation7 + $0x128] sm:$0xff] }
 0x555   :  { %4093 = vmatprep.mubr.f32.mxu1 %v6488_v0 }
 0x558   :  { %4094 = vmatmul.mubr.f32.gmra.mrb[18].mxu1 %v3921_v49  ;;  %v5777_v49 = vpack.c.bf16 %v4694_v48, %v4693_v46  ;;  %v5793_v46 = vpack.c.bf16 %v4702_v37, %v4701_v36 }
 0x559   :  { %4099 = vmatprep.mubr.f32.mxu1 %v6488_v0 }
 0x55a   :  { %5778 = vmatpush3.bf16.msra.mxu1 %v5777_v49 }
 0x55c   :  { %4100 = vmatmul.mubr.f32.gmra.mrb[20].mxu1 %v3922_v50  ;;  %v4681_v50 = vld [vmem:[#allocation7 + $0xc0] sm:$0xff] }
 0x55d   :  { %4105 = vmatprep.mubr.f32.mxu1 %v6488_v0 }
 0x560   :  { %4106 = vmatmul.mubr.f32.gmra.mrb[22].mxu1 %v3923_v53  ;;  %v4682_v53 = vld [vmem:[#allocation7 + $0xc8] sm:$0xff] }
 0x561   :  { %4111 = vmatprep.mubr.f32.mxu1 %v6488_v0 }
 0x564   :  { %4112 = vmatmul.mubr.f32.gmra.mrb[24].mxu1 %v3924_v55  ;;  %v4665_v55 = vld [vmem:[#allocation7 + $0x40] sm:$0xff] }
 0x565   :  { %4117 = vmatprep.mubr.f32.mxu1 %v6488_v0 }
 0x568   :  { %4118 = vmatmul.mubr.f32.gmra.mrb[26].mxu1 %v3925_v57  ;;  %v5751_v57 = vpack.c.bf16 %v4682_v53, %v4681_v50 }
 0x569   :  { %4123 = vmatprep.mubr.f32.mxu1 %v6488_v0 }
 0x56a   :  { %5752 = vmatprep.subr.bf16.mxu0 %v5751_v57 }
 0x56c   :  { %4124 = vmatmul.mubr.f32.gmra.mrb[28].mxu1 %v3926_v60  ;;  %v4666_v60 = vld [vmem:[#allocation7 + $0x48] sm:$0xff] }
 0x56d   :  { %4129 = vmatprep.mubr.f32.mxu1 %v6488_v0 }
 0x570   :  { %4130 = vmatmul.mubr.f32.gmra.mrb[30].mxu1 %v3927_v22  ;;  %v5753_v22 = vpack.c.bf16 %v4666_v60, %v4665_v55 }
 0x571   :  { %4135 = vmatprep.mubr.f32.mxu1 %v6488_v0 }
 0x572   :  { %5754 = vmatpush3.bf16.msra.mxu0 %v5753_v22 }
 0x574   :  { %4136 = vmatmul.mubr.f32.gmra.mrb[32].mxu1 %v3928_v58  ;;  %v4711_v58 = vld [vmem:[#allocation7 + $0x1b0] sm:$0xff] }
 0x575   :  { %4141 = vmatprep.mubr.f32.mxu1 %v6488_v0 }
 0x578   :  { %4142 = vmatmul.mubr.f32.gmra.mrb[34].mxu1 %v3929_v61  ;;  %v4712_v61 = vld [vmem:[#allocation7 + $0x1b8] sm:$0xff] }
 0x579   :  { %4147 = vmatprep.mubr.f32.mxu1 %v6488_v0 }
 0x57c   :  { %4148 = vmatmul.mubr.f32.gmra.mrb[36].mxu1 %v3930_v63  ;;  %v4695_v63 = vld [vmem:[#allocation7 + $0x130] sm:$0xff] }
 0x57d   :  { %4153 = vmatprep.mubr.f32.mxu1 %v6488_v0 }
 0x580   :  { %4154 = vmatmul.mubr.f32.gmra.mrb[38].mxu1 %v3931_v1  ;;  %v5779_v1 = vpack.c.bf16 %v4712_v61, %v4711_v58 }
 0x581   :  { %4159 = vmatprep.mubr.f32.mxu1 %v6488_v0 }
 0x582   :  { %5780 = vmatprep.subr.bf16.mxu1 %v5779_v1 }
 0x584   :  { %4160 = vmatmul.mubr.f32.gmra.mrb[40].mxu1 %v3932_v4  ;;  %v4696_v4 = vld [vmem:[#allocation7 + $0x138] sm:$0xff] }
 0x585   :  { %4165 = vmatprep.mubr.f32.mxu1 %v6488_v0 }
 0x588   :  { %4166 = vmatmul.mubr.f32.gmra.mrb[42].mxu1 %v3933_v5  ;;  %v5781_v5 = vpack.c.bf16 %v4696_v4, %v4695_v63 }
 0x589   :  { %4171 = vmatprep.mubr.f32.mxu1 %v6488_v0 }
 0x58a   :  { %5782 = vmatpush3.bf16.msra.mxu1 %v5781_v5 }
 0x58c   :  { %4172 = vmatmul.mubr.f32.gmra.mrb[44].mxu1 %v3934_v8  ;;  %v4683_v8 = vld [vmem:[#allocation7 + $0xd0] sm:$0xff] }
 0x58d   :  { %4177 = vmatprep.mubr.f32.mxu1 %v6488_v0 }
 0x590   :  { %4178 = vmatmul.mubr.f32.gmra.mrb[46].mxu1 %v3935_v6  ;;  %v4684_v6 = vld [vmem:[#allocation7 + $0xd8] sm:$0xff] }
 0x591   :  { %4183 = vmatprep.mubr.f32.mxu1 %v6488_v0 }
 0x594   :  { %4184 = vmatmul.mubr.f32.gmra.mrb[48].mxu1 %v3936_v7  ;;  %v4667_v7 = vld [vmem:[#allocation7 + $0x50] sm:$0xff] }
 0x595   :  { %4189 = vmatprep.mubr.f32.mxu1 %v6488_v0 }
 0x598   :  { %4190 = vmatmul.mubr.f32.gmra.mrb[50].mxu1 %v3937_v12  ;;  %v5755_v12 = vpack.c.bf16 %v4684_v6, %v4683_v8  ;;  %v4719_v8 = vld [vmem:[#allocation7 + $0x1f0] sm:$0xff]  ;;  %v4720_v6 = vld [vmem:[#allocation7 + $0x1f8] sm:$0xff] }
 0x599   :  { %4195 = vmatprep.mubr.f32.mxu1 %v6488_v0 }
 0x59a   :  { %5756 = vmatprep.subr.bf16.mxu0 %v5755_v12 }
 0x59c   :  { %4196 = vmatmul.mubr.f32.gmra.mrb[52].mxu1 %v3938_v13  ;;  %v4668_v13 = vld [vmem:[#allocation7 + $0x58] sm:$0xff] }
 0x59d   :  { %4201 = vmatprep.mubr.f32.mxu1 %v6488_v0 }
 0x5a0   :  { %4202 = vmatmul.mubr.f32.gmra.mrb[54].mxu1 %v3939_v14  ;;  %v5757_v14 = vpack.c.bf16 %v4668_v13, %v4667_v7 }
 0x5a1   :  { %4207 = vmatprep.mubr.f32.mxu1 %v6488_v0 }
 0x5a2   :  { %5758 = vmatpush3.bf16.msra.mxu0 %v5757_v14  ;;  %v6489_v14 = vmov 0.0|0.0  }
 0x5a4   :  { %4208 = vmatmul.mubr.f32.gmra.mrb[56].mxu1 %v3940_v24  ;;  %v4713_v24 = vld [vmem:[#allocation7 + $0x1c0] sm:$0xff] }
 0x5a5   :  { %4213 = vmatprep.mubr.f32.mxu1 %v6488_v0  ;;  %v5783_v19 = vpack.c.bf16 %v4714_v17, %v4713_v24  ;;  %v5795_v24 = vpack.c.bf16 %v4720_v6, %v4719_v8  ;;  %v4703_v17 = vld [vmem:[#allocation7 + $0x170] sm:$0xff] }
 0x5a6   :  { %v5797_v21 = vpack.c.bf16 %v4704_v18, %v4703_v17 }
 0x5a7   :  { %5784 = vmatprep.subr.bf16.mxu1 %v5783_v19 }
 0x5a8   :  { %4214 = vmatmul.mubr.f32.gmra.mrb[58].mxu1 %v3941_v10  ;;  %v4686_v10 = vld [vmem:[#allocation7 + $0xe8] sm:$0xff] }
 0x5a9   :  { %4219 = vmatprep.mubr.f32.mxu1 %v6488_v0  ;;  %5786 = vmatpush3.bf16.msra.mxu1 %v5785_v39  ;;  %v5759_v44 = vpack.c.bf16 %v4686_v10, %v4685_v56 }
 0x5aa   :  { %5788 = vmatprep.subr.bf16.mxu1 %v5787_v30 }
 0x5ab   :  { %5760 = vmatprep.subr.bf16.mxu0 %v5759_v44 }
 0x5ac   :  { %4220 = vmatmul.mubr.f32.gmra.mrb[60].mxu1 %v3942_v27  ;;  %v4669_v27 = vld [vmem:[#allocation7 + $0x60] sm:$0xff] }
 0x5ad   :  { %v5761_v11 = vpack.c.bf16 %v4670_v62, %v4669_v27  ;;  %5790 = vmatpush3.bf16.msra.mxu1 %v5789_v25 }
 0x5ae   :  { %5792 = vmatprep.subr.bf16.mxu1 %v5791_v41 }
 0x5af   :  { %5762 = vmatpush3.bf16.msra.mxu0 %v5761_v11 }
 0x5b0   :  { %5764 = vmatprep.subr.bf16.mxu0 %v5763_v40 }
 0x5b1   :  { %5794 = vmatpush3.bf16.msra.mxu1 %v5793_v46 }
 0x5b2   :  { %5796 = vmatprep.subr.bf16.mxu1 %v5795_v24 }
 0x5b3   :  { %5766 = vmatpush3.bf16.msra.mxu0 %v5765_v34 }
 0x5b4   :  { %5799 = vmatprep.subr.bf16.mxu0 %v6489_v14 }
 0x5b5   :  { %5798 = vmatpush3.bf16.msra.mxu1 %v5797_v21 }
 0x5b6   :  { %5823 = vmatprep.subr.bf16.mxu1 %v6489_v14 }
 0x607   :  { %v4041_v20 = vpop.f32.mrb[0].mxu1 }
 0x608   :  { %v4043_v32 = vpop.f32.mrb[1].mxu1 }
 0x609   :  { %v4288_v54 = vmax.f32 %v4041_v20, %v4043_v32 }
 0x60b   :  { %v4324_v3 = vadd.f32 %v7861_v43, %v4288_v54  ;;  %v4047_v15 = vpop.f32.mrb[2].mxu1 }
 0x60c   :  { %v4049_v28 = vpop.f32.mrb[3].mxu1 }
 0x60d   :  { %v4289_v16 = vmax.f32 %v4047_v15, %v4049_v28  ;;  %v4355_v29 = vmax.f32 %v4324_v3, 0.0 }
 0x60f   :  { %v4325_v31 = vadd.f32 %v7861_v43, %v4289_v16  ;;  %v4053_v33 = vpop.f32.mrb[4].mxu1  ;;  %v4418_v49 = vrot.slane %v4355_v29, 2 }
 0x610   :  { %v4055_v42 = vpop.f32.mrb[5].mxu1 }
 0x611   :  { %v4356_v47 = vmax.f32 %v4325_v31, 0.0  ;;  %v4290_v48 = vmax.f32 %v4053_v33, %v4055_v42 }
 0x613   :  { %v4419_v50 = vrot.slane %v4356_v47, 2  ;;  %v4326_v53 = vadd.f32 %v7861_v43, %v4290_v48  ;;  %v4059_v55 = vpop.f32.mrb[6].mxu1 }
 0x614   :  { %v4061_v57 = vpop.f32.mrb[7].mxu1 }
 0x615   :  { %v4420_v60 = vsel %vm4417_vm2, %v4418_v49, %v4419_v50  ;;  %v4357_v22 = vmax.f32 %v4326_v53, 0.0  ;;  %v4291_v58 = vmax.f32 %v4059_v55, %v4061_v57 }
 0x616   :  { %v4510_v61 = vmax.f32 %v4355_v29, %v4420_v60 }
 0x617   :  { %v4421_v63 = vrot.slane %v4357_v22, 2  ;;  %v4327_v1 = vadd.f32 %v7861_v43, %v4291_v58  ;;  %v4065_v4 = vpop.f32.mrb[8].mxu1 }
 0x618   :  { %4541 = vst [vmem:[#allocation3] sm:$0xff] %v4510_v61  ;;  %v4067_v5 = vpop.f32.mrb[9].mxu1 }
 0x619   :  { %v4422_v7 = vsel %vm4417_vm2, %v4419_v50, %v4421_v63  ;;  %v4358_v12 = vmax.f32 %v4327_v1, 0.0  ;;  %v4292_v13 = vmax.f32 %v4065_v4, %v4067_v5 }
 0x61a   :  { %v4511_v19 = vmax.f32 %v4356_v47, %v4422_v7 }
 0x61b   :  { %v4423_v39 = vrot.slane %v4358_v12, 2  ;;  %v4328_v56 = vadd.f32 %v7861_v43, %v4292_v13  ;;  %v4071_v10 = vpop.f32.mrb[10].mxu1 }
 0x61c   :  { %4542 = vst [vmem:[#allocation3 + $0x8] sm:$0xff] %v4511_v19  ;;  %v4073_v27 = vpop.f32.mrb[11].mxu1 }
 0x61d   :  { %v4424_v44 = vsel %vm4417_vm2, %v4421_v63, %v4423_v39  ;;  %v4359_v62 = vmax.f32 %v4328_v56, 0.0  ;;  %v4293_v11 = vmax.f32 %v4071_v10, %v4073_v27 }
 0x61e   :  { %v4512_v20 = vmax.f32 %v4357_v22, %v4424_v44 }
 0x61f   :  { %v4425_v32 = vrot.slane %v4359_v62, 2  ;;  %v4329_v54 = vadd.f32 %v7861_v43, %v4293_v11  ;;  %v4077_v3 = vpop.f32.mrb[12].mxu1  ;;  %v4574_v15 = vld [vmem:[#allocation3 + $0x4] sm:$0x1]  ;;  %v4572_v28 = vld [vmem:[#allocation3] sm:$0x1] }
 0x620   :  { %4543 = vst [vmem:[#allocation3 + $0x10] sm:$0xff] %v4512_v20  ;;  %v4079_v38 = vpop.f32.mrb[13].mxu1  ;;  %4575 = vst [vmem:[#allocation4 + $0x8] sm:$0x1] %v4574_v15 }
 0x621   :  { %4573 = vst [vmem:[#allocation4] sm:$0x1] %v4572_v28  ;;  %v4360_v52 = vmax.f32 %v4329_v54, 0.0  ;;  %v4294_v2 = vmax.f32 %v4077_v3, %v4079_v38 }
 0x623   :  { %v4427_v16 = vrot.slane %v4360_v52, 2  ;;  %v4330_v30 = vadd.f32 %v7861_v43, %v4294_v2  ;;  %v4083_v45 = vpop.f32.mrb[14].mxu1  ;;  %v4578_v59 = vld [vmem:[#allocation3 + $0xc] sm:$0x1]  ;;  %v4576_v9 = vld [vmem:[#allocation3 + $0x8] sm:$0x1] }
 0x624   :  { %v4085_v25 = vpop.f32.mrb[15].mxu1  ;;  %4579 = vst [vmem:[#allocation4 + $0x18] sm:$0x1] %v4578_v59  ;;  %4577 = vst [vmem:[#allocation4 + $0x10] sm:$0x1] %v4576_v9 }
 0x625   :  { %v4428_v40 = vsel %vm4417_vm2, %v4425_v32, %v4427_v16  ;;  %v4361_v51 = vmax.f32 %v4330_v30, 0.0  ;;  %v4295_v23 = vmax.f32 %v4083_v45, %v4085_v25 }
 0x626   :  { %v4514_v26 = vmax.f32 %v4359_v62, %v4428_v40 }
 0x627   :  { %v4429_v29 = vrot.slane %v4361_v51, 2  ;;  %v4331_v31 = vadd.f32 %v7861_v43, %v4295_v23  ;;  %v4089_v33 = vpop.f32.mrb[16].mxu1  ;;  %v4580_v34 = vld [vmem:[#allocation3 + $0x10] sm:$0x1] }
 0x628   :  { %4545 = vst [vmem:[#allocation3 + $0x20] sm:$0xff] %v4514_v26  ;;  %v4091_v35 = vpop.f32.mrb[17].mxu1  ;;  %4581 = vst [vmem:[#allocation4 + $0x20] sm:$0x1] %v4580_v34 }
 0x629   :  { %v4430_v36 = vsel %vm4417_vm2, %v4427_v16, %v4429_v29  ;;  %v4362_v37 = vmax.f32 %v4331_v31, 0.0  ;;  %v4296_v42 = vmax.f32 %v4089_v33, %v4091_v35 }
 0x62a   :  { %v4515_v41 = vmax.f32 %v4360_v52, %v4430_v36 }
 0x62b   :  { %v4431_v46 = vrot.slane %v4362_v37, 2  ;;  %v4332_v47 = vadd.f32 %v7861_v43, %v4296_v42  ;;  %v4095_v48 = vpop.f32.mrb[18].mxu1 }
 0x62c   :  { %4546 = vst [vmem:[#allocation3 + $0x28] sm:$0xff] %v4515_v41  ;;  %v4097_v49 = vpop.f32.mrb[19].mxu1 }
 0x62d   :  { %v4432_v50 = vsel %vm4417_vm2, %v4429_v29, %v4431_v46  ;;  %v4363_v53 = vmax.f32 %v4332_v47, 0.0  ;;  %v4297_v55 = vmax.f32 %v4095_v48, %v4097_v49 }
 0x62e   :  { %v4516_v57 = vmax.f32 %v4361_v51, %v4432_v50 }
 0x62f   :  { %v4433_v60 = vrot.slane %v4363_v53, 2  ;;  %v4333_v22 = vadd.f32 %v7861_v43, %v4297_v55  ;;  %v4101_v58 = vpop.f32.mrb[20].mxu1  ;;  %v4584_v61 = vld [vmem:[#allocation3 + $0x24] sm:$0x1]  ;;  %v4582_v63 = vld [vmem:[#allocation3 + $0x20] sm:$0x1] }
 0x630   :  { %4547 = vst [vmem:[#allocation3 + $0x30] sm:$0xff] %v4516_v57  ;;  %v4103_v1 = vpop.f32.mrb[21].mxu1  ;;  %4585 = vst [vmem:[#allocation4 + $0x9] sm:$0x1] %v4584_v61 }
 0x631   :  { %4583 = vst [vmem:[#allocation4 + $0x1] sm:$0x1] %v4582_v63  ;;  %v4364_v4 = vmax.f32 %v4333_v22, 0.0  ;;  %v4298_v5 = vmax.f32 %v4101_v58, %v4103_v1 }
 0x633   :  { %v4435_v8 = vrot.slane %v4364_v4, 2  ;;  %v4334_v6 = vadd.f32 %v7861_v43, %v4298_v5  ;;  %v4107_v7 = vpop.f32.mrb[22].mxu1  ;;  %v4588_v12 = vld [vmem:[#allocation3 + $0x2c] sm:$0x1]  ;;  %v4586_v13 = vld [vmem:[#allocation3 + $0x28] sm:$0x1] }
 0x634   :  { %v4109_v24 = vpop.f32.mrb[23].mxu1  ;;  %4589 = vst [vmem:[#allocation4 + $0x19] sm:$0x1] %v4588_v12  ;;  %4587 = vst [vmem:[#allocation4 + $0x11] sm:$0x1] %v4586_v13 }
 0x635   :  { %v4436_v17 = vsel %vm4417_vm2, %v4433_v60, %v4435_v8  ;;  %v4365_v18 = vmax.f32 %v4334_v6, 0.0  ;;  %v4299_v19 = vmax.f32 %v4107_v7, %v4109_v24 }
 0x636   :  { %v4518_v21 = vmax.f32 %v4363_v53, %v4436_v17 }
 0x637   :  { %v4437_v39 = vrot.slane %v4365_v18, 2  ;;  %v4335_v56 = vadd.f32 %v7861_v43, %v4299_v19  ;;  %v4113_v10 = vpop.f32.mrb[24].mxu1  ;;  %v4590_v27 = vld [vmem:[#allocation3 + $0x30] sm:$0x1] }
 0x638   :  { %4549 = vst [vmem:[#allocation3 + $0x40] sm:$0xff] %v4518_v21  ;;  %v4115_v44 = vpop.f32.mrb[25].mxu1  ;;  %4591 = vst [vmem:[#allocation4 + $0x21] sm:$0x1] %v4590_v27 }
 0x639   :  { %v4438_v62 = vsel %vm4417_vm2, %v4435_v8, %v4437_v39  ;;  %v4366_v11 = vmax.f32 %v4335_v56, 0.0  ;;  %v4300_v20 = vmax.f32 %v4113_v10, %v4115_v44 }
 0x63a   :  { %v4519_v32 = vmax.f32 %v4364_v4, %v4438_v62 }
 0x63b   :  { %v4439_v54 = vrot.slane %v4366_v11, 2  ;;  %v4336_v3 = vadd.f32 %v7861_v43, %v4300_v20  ;;  %v4119_v15 = vpop.f32.mrb[26].mxu1 }
 0x63c   :  { %4550 = vst [vmem:[#allocation3 + $0x48] sm:$0xff] %v4519_v32  ;;  %v4121_v28 = vpop.f32.mrb[27].mxu1 }
 0x63d   :  { %v4440_v38 = vsel %vm4417_vm2, %v4437_v39, %v4439_v54  ;;  %v4367_v52 = vmax.f32 %v4336_v3, 0.0  ;;  %v4301_v2 = vmax.f32 %v4119_v15, %v4121_v28 }
 0x63e   :  { %v4520_v16 = vmax.f32 %v4365_v18, %v4440_v38 }
 0x63f   :  { %v4441_v30 = vrot.slane %v4367_v52, 2  ;;  %v4337_v45 = vadd.f32 %v7861_v43, %v4301_v2  ;;  %v4125_v59 = vpop.f32.mrb[28].mxu1  ;;  %v4594_v9 = vld [vmem:[#allocation3 + $0x44] sm:$0x1]  ;;  %v4592_v25 = vld [vmem:[#allocation3 + $0x40] sm:$0x1] }
 0x640   :  { %4551 = vst [vmem:[#allocation3 + $0x50] sm:$0xff] %v4520_v16  ;;  %v4127_v40 = vpop.f32.mrb[29].mxu1  ;;  %4595 = vst [vmem:[#allocation4 + $0xa] sm:$0x1] %v4594_v9 }
 0x641   :  { %4593 = vst [vmem:[#allocation4 + $0x2] sm:$0x1] %v4592_v25  ;;  %v4368_v51 = vmax.f32 %v4337_v45, 0.0  ;;  %v4302_v23 = vmax.f32 %v4125_v59, %v4127_v40 }
 0x643   :  { %v4443_v26 = vrot.slane %v4368_v51, 2  ;;  %v4338_v29 = vadd.f32 %v7861_v43, %v4302_v23  ;;  %v4131_v31 = vpop.f32.mrb[30].mxu1  ;;  %v4598_v33 = vld [vmem:[#allocation3 + $0x4c] sm:$0x1]  ;;  %v4596_v34 = vld [vmem:[#allocation3 + $0x48] sm:$0x1] }
 0x644   :  { %v4133_v35 = vpop.f32.mrb[31].mxu1  ;;  %4599 = vst [vmem:[#allocation4 + $0x1a] sm:$0x1] %v4598_v33  ;;  %4597 = vst [vmem:[#allocation4 + $0x12] sm:$0x1] %v4596_v34 }
 0x645   :  { %v4444_v36 = vsel %vm4417_vm2, %v4441_v30, %v4443_v26  ;;  %v4369_v37 = vmax.f32 %v4338_v29, 0.0  ;;  %v4303_v42 = vmax.f32 %v4131_v31, %v4133_v35 }
 0x646   :  { %v4522_v41 = vmax.f32 %v4367_v52, %v4444_v36 }
 0x647   :  { %v4445_v46 = vrot.slane %v4369_v37, 2  ;;  %v4339_v47 = vadd.f32 %v7861_v43, %v4303_v42  ;;  %v4137_v48 = vpop.f32.mrb[32].mxu1  ;;  %v4600_v49 = vld [vmem:[#allocation3 + $0x50] sm:$0x1] }
 0x648   :  { %4553 = vst [vmem:[#allocation3 + $0x60] sm:$0xff] %v4522_v41  ;;  %v4139_v50 = vpop.f32.mrb[33].mxu1  ;;  %4601 = vst [vmem:[#allocation4 + $0x22] sm:$0x1] %v4600_v49 }
 0x649   :  { %v4446_v53 = vsel %vm4417_vm2, %v4443_v26, %v4445_v46  ;;  %v4370_v55 = vmax.f32 %v4339_v47, 0.0  ;;  %v4304_v57 = vmax.f32 %v4137_v48, %v4139_v50 }
 0x64a   :  { %v4523_v60 = vmax.f32 %v4368_v51, %v4446_v53 }
 0x64b   :  { %v4447_v22 = vrot.slane %v4370_v55, 2  ;;  %v4340_v58 = vadd.f32 %v7861_v43, %v4304_v57  ;;  %v4143_v61 = vpop.f32.mrb[34].mxu1 }
 0x64c   :  { %4554 = vst [vmem:[#allocation3 + $0x68] sm:$0xff] %v4523_v60  ;;  %v4145_v63 = vpop.f32.mrb[35].mxu1 }
 0x64d   :  { %v4448_v1 = vsel %vm4417_vm2, %v4445_v46, %v4447_v22  ;;  %v4371_v4 = vmax.f32 %v4340_v58, 0.0  ;;  %v4305_v5 = vmax.f32 %v4143_v61, %v4145_v63 }
 0x64e   :  { %v4524_v8 = vmax.f32 %v4369_v37, %v4448_v1 }
 0x64f   :  { %v4449_v6 = vrot.slane %v4371_v4, 2  ;;  %v4341_v7 = vadd.f32 %v7861_v43, %v4305_v5  ;;  %v4149_v12 = vpop.f32.mrb[36].mxu1  ;;  %v4604_v13 = vld [vmem:[#allocation3 + $0x64] sm:$0x1]  ;;  %v4602_v24 = vld [vmem:[#allocation3 + $0x60] sm:$0x1] }
 0x650   :  { %4555 = vst [vmem:[#allocation3 + $0x70] sm:$0xff] %v4524_v8  ;;  %v4151_v17 = vpop.f32.mrb[37].mxu1  ;;  %4605 = vst [vmem:[#allocation4 + $0xb] sm:$0x1] %v4604_v13 }
 0x651   :  { %4603 = vst [vmem:[#allocation4 + $0x3] sm:$0x1] %v4602_v24  ;;  %v4372_v18 = vmax.f32 %v4341_v7, 0.0  ;;  %v4306_v19 = vmax.f32 %v4149_v12, %v4151_v17 }
 0x653   :  { %v4451_v21 = vrot.slane %v4372_v18, 2  ;;  %v4342_v39 = vadd.f32 %v7861_v43, %v4306_v19  ;;  %v4155_v56 = vpop.f32.mrb[38].mxu1  ;;  %v4608_v10 = vld [vmem:[#allocation3 + $0x6c] sm:$0x1]  ;;  %v4606_v27 = vld [vmem:[#allocation3 + $0x68] sm:$0x1] }
 0x654   :  { %v4157_v44 = vpop.f32.mrb[39].mxu1  ;;  %4609 = vst [vmem:[#allocation4 + $0x1b] sm:$0x1] %v4608_v10  ;;  %4607 = vst [vmem:[#allocation4 + $0x13] sm:$0x1] %v4606_v27 }
 0x655   :  { %v4452_v62 = vsel %vm4417_vm2, %v4449_v6, %v4451_v21  ;;  %v4373_v11 = vmax.f32 %v4342_v39, 0.0  ;;  %v4307_v20 = vmax.f32 %v4155_v56, %v4157_v44 }
 0x656   :  { %v4526_v32 = vmax.f32 %v4371_v4, %v4452_v62 }
 0x657   :  { %v4453_v54 = vrot.slane %v4373_v11, 2  ;;  %v4343_v3 = vadd.f32 %v7861_v43, %v4307_v20  ;;  %v4161_v15 = vpop.f32.mrb[40].mxu1  ;;  %v4610_v28 = vld [vmem:[#allocation3 + $0x70] sm:$0x1] }
 0x658   :  { %4557 = vst [vmem:[#allocation3 + $0x80] sm:$0xff] %v4526_v32  ;;  %v4163_v38 = vpop.f32.mrb[41].mxu1  ;;  %4611 = vst [vmem:[#allocation4 + $0x23] sm:$0x1] %v4610_v28 }
 0x659   :  { %v4454_v52 = vsel %vm4417_vm2, %v4451_v21, %v4453_v54  ;;  %v4374_v2 = vmax.f32 %v4343_v3, 0.0  ;;  %v4308_v16 = vmax.f32 %v4161_v15, %v4163_v38 }
 0x65a   :  { %v4527_v30 = vmax.f32 %v4372_v18, %v4454_v52 }
 0x65b   :  { %v4455_v45 = vrot.slane %v4374_v2, 2  ;;  %v4344_v59 = vadd.f32 %v7861_v43, %v4308_v16  ;;  %v4167_v9 = vpop.f32.mrb[42].mxu1 }
 0x65c   :  { %4558 = vst [vmem:[#allocation3 + $0x88] sm:$0xff] %v4527_v30  ;;  %v4169_v25 = vpop.f32.mrb[43].mxu1 }
 0x65d   :  { %v4456_v40 = vsel %vm4417_vm2, %v4453_v54, %v4455_v45  ;;  %v4375_v51 = vmax.f32 %v4344_v59, 0.0  ;;  %v4309_v23 = vmax.f32 %v4167_v9, %v4169_v25 }
 0x65e   :  { %v4528_v26 = vmax.f32 %v4373_v11, %v4456_v40 }
 0x65f   :  { %v4457_v29 = vrot.slane %v4375_v51, 2  ;;  %v4345_v31 = vadd.f32 %v7861_v43, %v4309_v23  ;;  %v4173_v33 = vpop.f32.mrb[44].mxu1  ;;  %v4614_v34 = vld [vmem:[#allocation3 + $0x84] sm:$0x1]  ;;  %v4612_v35 = vld [vmem:[#allocation3 + $0x80] sm:$0x1] }
 0x660   :  { %4559 = vst [vmem:[#allocation3 + $0x90] sm:$0xff] %v4528_v26  ;;  %v4175_v36 = vpop.f32.mrb[45].mxu1  ;;  %4615 = vst [vmem:[#allocation4 + $0xc] sm:$0x1] %v4614_v34 }
 0x661   :  { %4613 = vst [vmem:[#allocation4 + $0x4] sm:$0x1] %v4612_v35  ;;  %v4376_v37 = vmax.f32 %v4345_v31, 0.0  ;;  %v4310_v42 = vmax.f32 %v4173_v33, %v4175_v36 }
 0x663   :  { %v4459_v41 = vrot.slane %v4376_v37, 2  ;;  %v4346_v46 = vadd.f32 %v7861_v43, %v4310_v42  ;;  %v4179_v47 = vpop.f32.mrb[46].mxu1  ;;  %v4618_v48 = vld [vmem:[#allocation3 + $0x8c] sm:$0x1]  ;;  %v4616_v49 = vld [vmem:[#allocation3 + $0x88] sm:$0x1] }
 0x664   :  { %v4181_v50 = vpop.f32.mrb[47].mxu1  ;;  %4619 = vst [vmem:[#allocation4 + $0x1c] sm:$0x1] %v4618_v48  ;;  %4617 = vst [vmem:[#allocation4 + $0x14] sm:$0x1] %v4616_v49 }
 0x665   :  { %v4460_v53 = vsel %vm4417_vm2, %v4457_v29, %v4459_v41  ;;  %v4377_v55 = vmax.f32 %v4346_v46, 0.0  ;;  %v4311_v57 = vmax.f32 %v4179_v47, %v4181_v50 }
 0x666   :  { %v4530_v60 = vmax.f32 %v4375_v51, %v4460_v53 }
 0x667   :  { %v4461_v22 = vrot.slane %v4377_v55, 2  ;;  %v4347_v58 = vadd.f32 %v7861_v43, %v4311_v57  ;;  %v4185_v61 = vpop.f32.mrb[48].mxu1  ;;  %v4620_v63 = vld [vmem:[#allocation3 + $0x90] sm:$0x1] }
 0x668   :  { %4561 = vst [vmem:[#allocation3 + $0xa0] sm:$0xff] %v4530_v60  ;;  %v4187_v1 = vpop.f32.mrb[49].mxu1  ;;  %4621 = vst [vmem:[#allocation4 + $0x24] sm:$0x1] %v4620_v63 }
 0x669   :  { %v4462_v4 = vsel %vm4417_vm2, %v4459_v41, %v4461_v22  ;;  %v4378_v5 = vmax.f32 %v4347_v58, 0.0  ;;  %v4312_v8 = vmax.f32 %v4185_v61, %v4187_v1 }
 0x66a   :  { %v4531_v6 = vmax.f32 %v4376_v37, %v4462_v4 }
 0x66b   :  { %v4463_v7 = vrot.slane %v4378_v5, 2  ;;  %v4348_v12 = vadd.f32 %v7861_v43, %v4312_v8  ;;  %v4191_v13 = vpop.f32.mrb[50].mxu1 }
 0x66c   :  { %4562 = vst [vmem:[#allocation3 + $0xa8] sm:$0xff] %v4531_v6  ;;  %v4193_v24 = vpop.f32.mrb[51].mxu1 }
 0x66d   :  { %v4464_v17 = vsel %vm4417_vm2, %v4461_v22, %v4463_v7  ;;  %v4379_v18 = vmax.f32 %v4348_v12, 0.0  ;;  %v4313_v19 = vmax.f32 %v4191_v13, %v4193_v24  ;;  %v4721_v24 = vld [vmem:[#allocation7 + $0x200] sm:$0xff] }
 0x66e   :  { %v4532_v21 = vmax.f32 %v4377_v55, %v4464_v17 }
 0x66f   :  { %v4465_v39 = vrot.slane %v4379_v18, 2  ;;  %v4349_v56 = vadd.f32 %v7861_v43, %v4313_v19  ;;  %v4197_v10 = vpop.f32.mrb[52].mxu1  ;;  %v4624_v27 = vld [vmem:[#allocation3 + $0xa4] sm:$0x1]  ;;  %v4622_v44 = vld [vmem:[#allocation3 + $0xa0] sm:$0x1] }
 0x670   :  { %4563 = vst [vmem:[#allocation3 + $0xb0] sm:$0xff] %v4532_v21  ;;  %v4199_v62 = vpop.f32.mrb[53].mxu1  ;;  %4625 = vst [vmem:[#allocation4 + $0xd] sm:$0x1] %v4624_v27 }
 0x671   :  { %4623 = vst [vmem:[#allocation4 + $0x5] sm:$0x1] %v4622_v44  ;;  %v4380_v11 = vmax.f32 %v4349_v56, 0.0  ;;  %v4314_v20 = vmax.f32 %v4197_v10, %v4199_v62  ;;  %v4723_v56 = vld [vmem:[#allocation7 + $0x210] sm:$0xff]  ;;  %v4724_v44 = vld [vmem:[#allocation7 + $0x218] sm:$0xff] }
 0x672   :  { %v5803_v62 = vpack.c.bf16 %v4724_v44, %v4723_v56  ;;  %v5054_v56 = vld [vmem:[#allocation10 + $0x48] sm:$0xff]  ;;  %v5056_v44 = vld [vmem:[#allocation10 + $0x58] sm:$0xff] }
 0x673   :  { %v4467_v32 = vrot.slane %v4380_v11, 2  ;;  %v4350_v54 = vadd.f32 %v7861_v43, %v4314_v20  ;;  %v4203_v3 = vpop.f32.mrb[54].mxu1  ;;  %v4628_v15 = vld [vmem:[#allocation3 + $0xac] sm:$0x1]  ;;  %v4626_v28 = vld [vmem:[#allocation3 + $0xa8] sm:$0x1] }
 0x674   :  { %v4205_v38 = vpop.f32.mrb[55].mxu1  ;;  %4629 = vst [vmem:[#allocation4 + $0x1d] sm:$0x1] %v4628_v15  ;;  %4627 = vst [vmem:[#allocation4 + $0x15] sm:$0x1] %v4626_v28  ;;  %v4727_v15 = vld [vmem:[#allocation7 + $0x230] sm:$0xff] }
 0x675   :  { %v4468_v52 = vsel %vm4417_vm2, %v4465_v39, %v4467_v32  ;;  %v4381_v2 = vmax.f32 %v4350_v54, 0.0  ;;  %v4315_v16 = vmax.f32 %v4203_v3, %v4205_v38  ;;  %v4726_v54 = vld [vmem:[#allocation7 + $0x228] sm:$0xff]  ;;  %v4728_v28 = vld [vmem:[#allocation7 + $0x238] sm:$0xff] }
 0x676   :  { %v4534_v30 = vmax.f32 %v4379_v18, %v4468_v52  ;;  %v4722_v18 = vld [vmem:[#allocation7 + $0x208] sm:$0xff]  ;;  %v5809_v38 = vpack.c.bf16 %v4728_v28, %v4727_v15  ;;  %v4729_v52 = vld [vmem:[#allocation7 + $0x240] sm:$0xff]  ;;  %v5306_v28 = vld [vmem:[%s7965_s6 + $0x2] ss:$0 sm:$0xff] }
 0x677   :  { %v4469_v45 = vrot.slane %v4381_v2, 2  ;;  %v4351_v59 = vadd.f32 %v7861_v43, %v4315_v16  ;;  %v4209_v9 = vpop.f32.mrb[56].mxu1  ;;  %v4630_v25 = vld [vmem:[#allocation3 + $0xb0] sm:$0x1]  ;;  %v5800_v39 = vpack.c.bf16 %v4722_v18, %v4721_v24  ;;  %v5051_v18 = vld [vmem:[#allocation10 + $0x30] sm:$0xff] }
 0x678   :  { %4565 = vst [vmem:[#allocation3 + $0xc0] sm:$0xff] %v4534_v30  ;;  %v4211_v40 = vpop.f32.mrb[57].mxu1  ;;  %4631 = vst [vmem:[#allocation4 + $0x25] sm:$0x1] %v4630_v25  ;;  %v4731_v30 = vld [vmem:[#allocation7 + $0x250] sm:$0xff]  ;;  %v4734_v25 = vld [vmem:[#allocation7 + $0x268] sm:$0xff] }
 0x679   :  { %v4470_v51 = vsel %vm4417_vm2, %v4467_v32, %v4469_v45  ;;  %v4382_v23 = vmax.f32 %v4351_v59, 0.0  ;;  %v4316_v26 = vmax.f32 %v4209_v9, %v4211_v40  ;;  %v4733_v9 = vld [vmem:[#allocation7 + $0x260] sm:$0xff]  ;;  %v5050_v24 = vld [vmem:[#allocation10 + $0x28] sm:$0xff] }
 0x67a   :  { %v4535_v29 = vmax.f32 %v4380_v11, %v4470_v51  ;;  %v4725_v11 = vld [vmem:[#allocation7 + $0x220] sm:$0xff]  ;;  %v5818_v40 = vpack.c.bf16 %v4734_v25, %v4733_v9  ;;  %v4735_v51 = vld [vmem:[#allocation7 + $0x270] sm:$0xff] }
 0x67b   :  { %v4471_v31 = vrot.slane %v4382_v23, 2  ;;  %v4352_v33 = vadd.f32 %v7861_v43, %v4316_v26  ;;  %v4215_v34 = vpop.f32.mrb[58].mxu1  ;;  %v5806_v3 = vpack.c.bf16 %v4726_v54, %v4725_v11  ;;  %v4736_v23 = vld [vmem:[#allocation7 + $0x278] sm:$0xff]  ;;  %v5057_v11 = vld [vmem:[#allocation10 + $0x60] sm:$0xff] }
 0x67c   :  { %4566 = vst [vmem:[#allocation3 + $0xc8] sm:$0xff] %v4535_v29  ;;  %v4217_v35 = vpop.f32.mrb[59].mxu1  ;;  %v5821_v26 = vpack.c.bf16 %v4736_v23, %v4735_v51  ;;  %v5060_v51 = vld [vmem:[#allocation10 + $0x78] sm:$0xff] }
 0x67d   :  { %v4472_v36 = vsel %vm4417_vm2, %v4469_v45, %v4471_v31  ;;  %v4383_v37 = vmax.f32 %v4352_v33, 0.0  ;;  %v4317_v42 = vmax.f32 %v4215_v34, %v4217_v35  ;;  %v4732_v45 = vld [vmem:[#allocation7 + $0x258] sm:$0xff]  ;;  %v4953_v31 = vld [vmem:[#allocation9] sm:$0xff]  ;;  %v4954_v33 = vld [vmem:[#allocation9 + $0x8] sm:$0xff] }
 0x67e   :  { %v4536_v41 = vmax.f32 %v4381_v2, %v4472_v36  ;;  %v4730_v2 = vld [vmem:[#allocation7 + $0x248] sm:$0xff]  ;;  %v5815_v59 = vpack.c.bf16 %v4732_v45, %v4731_v30  ;;  %v5824_v34 = vpack.c.bf16 %v4954_v33, %v4953_v31  ;;  %v4955_v35 = vld [vmem:[#allocation9 + $0x10] sm:$0xff]  ;;  %v4956_v36 = vld [vmem:[#allocation9 + $0x18] sm:$0xff] }
 0x67f   :  { %v4473_v46 = vrot.slane %v4383_v37, 2  ;;  %v4353_v47 = vadd.f32 %v7861_v43, %v4317_v42  ;;  %v4221_v48 = vpop.f32.mrb[60].mxu1  ;;  %v4634_v49 = vld [vmem:[#allocation3 + $0xc4] sm:$0x1]  ;;  %v4632_v50 = vld [vmem:[#allocation3 + $0xc0] sm:$0x1]  ;;  %v5812_v16 = vpack.c.bf16 %v4730_v2, %v4729_v52 }
 0x680   :  { %4567 = vst [vmem:[#allocation3 + $0xd0] sm:$0xff] %v4536_v41  ;;  %v4223_v53 = vpop.f32.mrb[61].mxu1  ;;  %4635 = vst [vmem:[#allocation4 + $0xe] sm:$0x1] %v4634_v49  ;;  %v4957_v42 = vld [vmem:[#allocation9 + $0x20] sm:$0xff]  ;;  %v4958_v41 = vld [vmem:[#allocation9 + $0x28] sm:$0xff] }
 0x681   :  { %4633 = vst [vmem:[#allocation4 + $0x6] sm:$0x1] %v4632_v50  ;;  %v4384_v55 = vmax.f32 %v4353_v47, 0.0  ;;  %v4318_v57 = vmax.f32 %v4221_v48, %v4223_v53  ;;  %v4959_v47 = vld [vmem:[#allocation9 + $0x30] sm:$0xff]  ;;  %v4960_v48 = vld [vmem:[#allocation9 + $0x38] sm:$0xff]  ;;  %v4962_v50 = vld [vmem:[#allocation9 + $0x48] sm:$0xff] }
 0x682   :  { %v5833_v49 = vpack.c.bf16 %v4960_v48, %v4959_v47  ;;  %v5307_v23 = vld [vmem:[%s7965_s6 + $0x3] ss:$0 sm:$0xff] }
 0x683   :  { %v4475_v60 = vrot.slane %v4384_v55, 2  ;;  %v4354_v22 = vadd.f32 %v7861_v43, %v4318_v57  ;;  %v4638_v58 = vld [vmem:[#allocation3 + $0xcc] sm:$0x1]  ;;  %v4636_v61 = vld [vmem:[#allocation3 + $0xc8] sm:$0x1]  ;;  %v4964_v57 = vld [vmem:[#allocation9 + $0x58] sm:$0xff] }
 0x684   :  { %4639 = vst [vmem:[#allocation4 + $0x1e] sm:$0x1] %v4638_v58  ;;  %4637 = vst [vmem:[#allocation4 + $0x16] sm:$0x1] %v4636_v61  ;;  %v4966_v58 = vld [vmem:[#allocation9 + $0x68] sm:$0xff] }
 0x685   :  { %v4476_v63 = vsel %vm4417_vm2, %v4473_v46, %v4475_v60  ;;  %v4385_v1 = vmax.f32 %v4354_v22, 0.0  ;;  %v5830_v46 = vpack.c.bf16 %v4958_v41, %v4957_v42  ;;  %v4965_v22 = vld [vmem:[#allocation9 + $0x60] sm:$0xff] }
 0x686   :  { %v4538_v4 = vmax.f32 %v4383_v37, %v4476_v63  ;;  %v5827_v37 = vpack.c.bf16 %v4956_v36, %v4955_v35  ;;  %v5842_v61 = vpack.c.bf16 %v4966_v58, %v4965_v22  ;;  %v4967_v63 = vld [vmem:[#allocation9 + $0x70] sm:$0xff] }
 0x687   :  { %v4477_v5 = vrot.slane %v4385_v1, 2  ;;  %v4640_v8 = vld [vmem:[#allocation3 + $0xd0] sm:$0x1] }
 0x688   :  { %4569 = vst [vmem:[#allocation3 + $0xe0] sm:$0xff] %v4538_v4  ;;  %4641 = vst [vmem:[#allocation4 + $0x26] sm:$0x1] %v4640_v8  ;;  %v5046_v8 = vld [vmem:[#allocation10 + $0x8] sm:$0xff] }
 0x689   :  { %v4478_v6 = vsel %vm4417_vm2, %v4475_v60, %v4477_v5  ;;  %v4540_v7 = vmax.f32 %v4385_v1, %v4477_v5  ;;  %v4968_v1 = vld [vmem:[#allocation9 + $0x78] sm:$0xff]  ;;  %v5045_v5 = vld [vmem:[#allocation10] sm:$0xff] }
 0x68a   :  { %v4539_v12 = vmax.f32 %v4384_v55, %v4478_v6  ;;  %v4963_v55 = vld [vmem:[#allocation9 + $0x50] sm:$0xff]  ;;  %v5845_v4 = vpack.c.bf16 %v4968_v1, %v4967_v63 }
 0x68b   :  { %4571 = vst [vmem:[#allocation3 + $0xf0] sm:$0x1] %v4540_v7  ;;  %v5839_v60 = vpack.c.bf16 %v4964_v57, %v4963_v55  ;;  %v5047_v6 = vld [vmem:[#allocation10 + $0x10] sm:$0xff]  ;;  %v5848_v7 = vpack.c.bf16 %v5046_v8, %v5045_v5 }
 0x68c   :  { %4570 = vst [vmem:[#allocation3 + $0xe8] sm:$0xff] %v4539_v12  ;;  %v5048_v12 = vld [vmem:[#allocation10 + $0x18] sm:$0xff] }
 0x68f   :  { %v4644_v13 = vld [vmem:[#allocation3 + $0xe4] sm:$0x1]  ;;  %v4642_v43 = vld [vmem:[#allocation3 + $0xe0] sm:$0x1] }
 0x690   :  { %4645 = vst [vmem:[#allocation4 + $0xf] sm:$0x1] %v4644_v13  ;;  %4643 = vst [vmem:[#allocation4 + $0x7] sm:$0x1] %v4642_v43  ;;  %v5851_v13 = vpack.c.bf16 %v5048_v12, %v5047_v6  ;;  %v5049_v43 = vld [vmem:[#allocation10 + $0x20] sm:$0xff] }
 0x692   :  { %v4650_v17 = vld [vmem:[#allocation3 + $0xf0] sm:$0x1] }
 0x693   :  { %v4648_v19 = vld [vmem:[#allocation3 + $0xec] sm:$0x1]  ;;  %v4646_v21 = vld [vmem:[#allocation3 + $0xe8] sm:$0x1]  ;;  %4651 = vst [vmem:[#allocation4 + $0x27] sm:$0x1] %v4650_v17  ;;  %v5854_v17 = vpack.c.bf16 %v5050_v24, %v5049_v43 }
 0x694   :  { %4649 = vst [vmem:[#allocation4 + $0x1f] sm:$0x1] %v4648_v19  ;;  %4647 = vst [vmem:[#allocation4 + $0x17] sm:$0x1] %v4646_v21  ;;  %v5052_v19 = vld [vmem:[#allocation10 + $0x38] sm:$0xff] }
 0x695   :  { %v5857_v21 = vpack.c.bf16 %v5052_v19, %v5051_v18 }
 0x697   :  { %v4653_v10 = vld [vmem:[#allocation4 + $0x8] sm:$0xff]  ;;  %v4652_v27 = vld [vmem:[#allocation4] sm:$0xff] }
 0x698   :  { %4806 = vmatprep.mubr.f32.mxu0 %v4653_v10 }
 0x699   :  { %4807 = vmatmul.mubr.f32.vlgmr.msra.gmra.mrb[64].mxu0 %v4652_v27  ;;  %v5055_v27 = vld [vmem:[#allocation10 + $0x50] sm:$0xff] }
 0x69a   :  { %5801 = vmatpush3.bf16.msra.mxu0 %v5800_v39  ;;  %5462 = vmatprep.mubr.msk.f32.mxu0 %vm6490_vm3, %v6488_v0  ;;  %v4656_v29 = vld [vmem:[#allocation4 + $0x20] sm:$0xff]  ;;  %v5053_v39 = vld [vmem:[#allocation10 + $0x40] sm:$0xff] }
 0x69b   :  { %v4655_v20 = vld [vmem:[#allocation4 + $0x18] sm:$0xff]  ;;  %5802 = vmatprep.subr.bf16.mxu0 %v6489_v14  ;;  %v4654_v32 = vld [vmem:[#allocation4 + $0x10] sm:$0xff]  ;;  %v5860_v10 = vpack.c.bf16 %v5054_v56, %v5053_v39 }
 0x69c   :  { %4876 = vmatprep.mubr.f32.mxu1 %v4655_v20  ;;  %v5058_v20 = vld [vmem:[#allocation10 + $0x68] sm:$0xff] }
 0x69d   :  { %4877 = vmatmul.mubr.f32.vlgmr.msra.gmra.mrb[62].mxu1 %v4654_v32  ;;  %v5866_v32 = vpack.c.bf16 %v5058_v20, %v5057_v11 }
 0x69e   :  { %5804 = vmatpush3.bf16.msra.mxu0 %v5803_v62  ;;  %5497 = vmatprep.mubr.msk.f32.mxu1 %vm6490_vm3, %v6488_v0  ;;  %v5863_v62 = vpack.c.bf16 %v5056_v44, %v5055_v27 }
 0x69f   :  { %5805 = vmatprep.subr.bf16.mxu0 %v6489_v14  ;;  %5825 = vmatpush3.bf16.msra.mxu1 %v5824_v34  ;;  %v5308_v34 = vld [vmem:[%s7965_s6 + $0x4] ss:$0 sm:$0xff] }
 0x6a0   :  { %5826 = vmatprep.subr.bf16.mxu1 %v6489_v14 }
 0x6a2   :  { %5807 = vmatpush3.bf16.msra.mxu0 %v5806_v3 }
 0x6a3   :  { %5808 = vmatprep.subr.bf16.mxu0 %v6489_v14  ;;  %5828 = vmatpush3.bf16.msra.mxu1 %v5827_v37 }
 0x6a4   :  { %5829 = vmatprep.subr.bf16.mxu1 %v6489_v14 }
 0x6a6   :  { %5810 = vmatpush3.bf16.msra.mxu0 %v5809_v38 }
 0x6a7   :  { %5811 = vmatprep.subr.bf16.mxu0 %v6489_v14  ;;  %5831 = vmatpush3.bf16.msra.mxu1 %v5830_v46 }
 0x6a8   :  { %5832 = vmatprep.subr.bf16.mxu1 %v6489_v14 }
 0x6aa   :  { %5813 = vmatpush3.bf16.msra.mxu0 %v5812_v16 }
 0x6ab   :  { %5814 = vmatprep.subr.bf16.mxu0 %v6489_v14  ;;  %5834 = vmatpush3.bf16.msra.mxu1 %v5833_v49 }
 0x6ac   :  { %5835 = vmatprep.subr.bf16.mxu1 %v6489_v14 }
 0x6ae   :  { %5816 = vmatpush3.bf16.msra.mxu0 %v5815_v59 }
 0x6af   :  { %5817 = vmatprep.subr.bf16.mxu0 %v6489_v14 }
 0x6b2   :  { %5819 = vmatpush3.bf16.msra.mxu0 %v5818_v40  ;;  %v5059_v40 = vld [vmem:[#allocation10 + $0x70] sm:$0xff] }
 0x6b3   :  { %5820 = vmatprep.subr.bf16.mxu0 %v6489_v14 }
 0x6b6   :  { %5822 = vmatpush3.bf16.msra.mxu0 %v5821_v26 }
 0x6b7   :  { %5847 = vmatprep.subr.bf16.mxu0 %v6489_v14 }
 0x6b9   :  { %5463 = vmatmul.mubr.f32.vlgmr.msra.gmra.mrb[66].mxu0 %v4656_v29 }
 0x6ba   :  { %5532 = vmatprep.mubr.msk.f32.mxu0 %vm6490_vm3, %v6488_v0  ;;  %v4961_v0 = vld [vmem:[#allocation9 + $0x40] sm:$0xff]  ;;  %5849 = vmatpush3.bf16.msra.mxu0 %v5848_v7 }
 0x6bb   :  { %v5836_v53 = vpack.c.bf16 %v4962_v50, %v4961_v0  ;;  %5850 = vmatprep.subr.bf16.mxu0 %v6489_v14 }
 0x6bd   :  { %5837 = vmatpush3.bf16.msra.mxu1 %v5836_v53 }
 0x6be   :  { %5838 = vmatprep.subr.bf16.mxu1 %v6489_v14  ;;  %5852 = vmatpush3.bf16.msra.mxu0 %v5851_v13 }
 0x6bf   :  { %5853 = vmatprep.subr.bf16.mxu0 %v6489_v14 }
 0x6c1   :  { %5840 = vmatpush3.bf16.msra.mxu1 %v5839_v60 }
 0x6c2   :  { %5841 = vmatprep.subr.bf16.mxu1 %v6489_v14  ;;  %5855 = vmatpush3.bf16.msra.mxu0 %v5854_v17 }
 0x6c3   :  { %5856 = vmatprep.subr.bf16.mxu0 %v6489_v14 }
 0x6c5   :  { %5843 = vmatpush3.bf16.msra.mxu1 %v5842_v61 }
 0x6c6   :  { %5844 = vmatprep.subr.bf16.mxu1 %v6489_v14  ;;  %5858 = vmatpush3.bf16.msra.mxu0 %v5857_v21 }
 0x6c7   :  { %5859 = vmatprep.subr.bf16.mxu0 %v6489_v14 }
 0x6c9   :  { %5846 = vmatpush3.bf16.msra.mxu1 %v5845_v4 }
 0x6ca   :  { %5861 = vmatpush3.bf16.msra.mxu0 %v5860_v10 }
 0x6cb   :  { %5862 = vmatprep.subr.bf16.mxu0 %v6489_v14 }
 0x6ce   :  { %5864 = vmatpush3.bf16.msra.mxu0 %v5863_v62 }
 0x6cf   :  { %5865 = vmatprep.subr.bf16.mxu0 %v6489_v14 }
 0x6d2   :  { %5867 = vmatpush3.bf16.msra.mxu0 %v5866_v32 }
 0x6d3   :  { %5868 = vmatprep.subr.bf16.mxu0 %v6489_v14  ;;  %v5869_v14 = vpack.c.bf16 %v5060_v51, %v5059_v40 }
 0x6d6   :  { %5870 = vmatpush3.bf16.msra.mxu0 %v5869_v14 }
 0x76c   :  { %v5341_v54 = vpop.f32.mrb[64].mxu0 }
 0x76d   :  { %v5342_v3 = vpop.f32.mrb[65].mxu0 }
 0x76e   :  { %v5343_v15 = vadd.f32 %v5342_v3, %v5341_v54 }
 0x770   :  { %v5376_v38 = vpop.f32.mrb[62].mxu1  ;;  %v4809_v2 = vadd.f32 %v5343_v15, %v5306_v28 }
 0x771   :  { %v5377_v52 = vpop.f32.mrb[63].mxu1 }
 0x772   :  { %v5378_v16 = vadd.f32 %v5377_v52, %v5376_v38 }
 0x774   :  { %v4879_v30 = vadd.f32 %v5378_v16, %v4809_v2 }
 0x78c   :  { %v4948_v45 = vpop.f32.mrb[66].mxu0 }
 0x78d   :  { %v4949_v59 = vadd.f32 %v4948_v45, %v4879_v30  ;;  %v5464_v9 = vpop.f32.mrb[67].mxu0 }
 0x78f   :  { %v4952_v25 = vmax.f32 %v4949_v59, 0.0 }
 0x791   :  { %5498 = vmatmul.mubr.f32.vlgmr.msra.gmra.mrb[64].mxu1 %v4952_v25 }
 0x864   :  { %v5040_v26 = vpop.f32.mrb[64].mxu1 }
 0x865   :  { %v5041_v29 = vadd.f32 %v5307_v23, %v5040_v26  ;;  %v5499_v31 = vpop.f32.mrb[65].mxu1 }
 0x867   :  { %v5044_v33 = vmax.f32 %v5041_v29, 0.0 }
 0x869   :  { %5533 = vmatmul.mubr.f32.vlgmr.msra.gmra.mrb[68].mxu0 %v5044_v33 }
 0x93c   :  { %v5132_v35 = vpop.f32.mrb[68].mxu0 }
 0x93d   :  { %v5133_v36 = vadd.f32 %v5308_v34, %v5132_v35  ;;  %v5534_v37 = vpop.f32.mrb[69].mxu0 }
 0x93f   :  { %5136 = vst [vmem:[%s7966_s7] sm:$0xff] %v5133_v36 }
 0x940   :  { %5141 = vsyncpa [#allocation6], 1 }
 0x941   :  { %5142 = vsyncpa [#allocation8], 1 }
 0x942   :  { %5143 = vsyncpa [#allocation11], 1 }

</bundles_post_ra>
